<compile_context>
chip_gen: v5e
topology: v5e:2x2
jax: 0.10.0
libtpu: 0.0.40
codegen_flags: <defaults>
</compile_context>

<pallas_src>
import functools
import math

import jax
import jax.numpy as jnp
import numpy as np
from jax import lax
from jax.experimental import pallas as pl
from jax.experimental.pallas import tpu as pltpu


# ----------------------------------------------------------------------------
# In-kernel helpers (operate on VMEM values)
# ----------------------------------------------------------------------------
def _opennmt_layernorm(x, g, b, eps):
    """OpenNMT modules.LayerNorm: a_2*(x-mean)/(std+eps)+b_2, unbiased std."""
    mean = jnp.mean(x, axis=-1, keepdims=True)
    centered = x - mean
    var = jnp.sum(centered * centered, axis=-1, keepdims=True) / (x.shape[-1] - 1)
    return g * centered / (jnp.sqrt(var) + eps) + b


def _proj(x, w, b):
    """x @ w + b with bf16 MXU operands and f32 accumulation (bias f32)."""
    return jnp.dot(x.astype(w.dtype), w, preferred_element_type=jnp.float32) + b


def _multi_head_attention(q_bf, k_bf, v_bf, bias, heads, ctx_ref, need_head0):
    """q_bf:[Lq,D]  k_bf,v_bf:[Lk,D] (bf16, heads packed on lanes).

    `bias` is an additive f32 mask bias ([Lq,Lk] or [1,Lk]), precomputed once.
    Per-head scores / softmax in f32 with bf16 MXU operands; head contexts are
    written to `ctx_ref` (VMEM scratch, [Lq,D] f32) at static lane offsets.
    Returns head-0 probabilities only when requested (last layer cross-attn).
    """
    D = q_bf.shape[-1]
    dk = D // heads
    head0 = None
    for h in range(heads):
        sl = slice(h * dk, (h + 1) * dk)
        scores = lax.dot_general(                      # qh @ kh^T   [Lq, Lk]
            q_bf[:, sl], k_bf[:, sl], (((1,), (1,)), ((), ())),
            preferred_element_type=jnp.float32)
        scores = scores + bias
        smax = jnp.max(scores, axis=-1, keepdims=True)
        p = jnp.exp(scores - smax)
        denom = jnp.sum(p, axis=-1, keepdims=True)     # >= 1 (exp(0) present)
        p = p * pl.reciprocal(denom, approx=True)      # EUP slot
        if need_head0 and h == 0:
            head0 = p
        ctx_ref[:, sl] = jnp.dot(p.astype(jnp.bfloat16), v_bf[:, sl],
                                 preferred_element_type=jnp.float32)
    return head0


# ----------------------------------------------------------------------------
# Fused decoder-layer kernel (one grid step == one (batch, query-tile))
# ----------------------------------------------------------------------------
def _decoder_layer_kernel(*refs, heads, d_model, eps, apply_final_ln,
                          need_attn, tq):
    (x_ref, mem_ref, tpad_ref, spad_ref,
     ln1_g_ref, ln1_b_ref, w_qkv_ref, b_qkv_ref, w_os_ref, b_os_ref,
     ln2_g_ref, ln2_b_ref, w_qc_ref, b_qc_ref, w_kvc_ref, b_kvc_ref,
     w_oc_ref, b_oc_ref,
     ln3_g_ref, ln3_b_ref, w1_ref, b1_ref, w2_ref, b2_ref,
     fin_g_ref, fin_b_ref) = refs[:26]
    if need_attn:
        out_ref, attn_ref, allinp_ref, ctx_ref = refs[26:]
    else:
        out_ref, allinp_ref, ctx_ref = refs[26:]
        attn_ref = None

    D = d_model
    T = x_ref.shape[1]                                  # full target length
    q0 = pl.multiple_of(pl.program_id(1) * tq, tq)      # query-tile row offset

    x_full = x_ref[0]                                   # [T, D]   f32
    x_tile = x_ref[0, pl.ds(q0, tq), :]                 # [TQ, D]  f32
    mem = mem_ref[0]                                    # [S, D]   bf16

    # Masks -> additive biases, built in-kernel (no [T,T] mask in HBM) and
    # hoisted out of the per-head loop.
    rows = q0 + lax.broadcasted_iota(jnp.int32, (tq, T), 0)
    cols = lax.broadcasted_iota(jnp.int32, (tq, T), 1)
    dec_bias = jnp.where((cols > rows) | (tpad_ref[0] > 0.0),
                         jnp.float32(-1e18), jnp.float32(0.0))   # [TQ, T]
    src_bias = jnp.where(spad_ref[0] > 0.0,
                         jnp.float32(-1e18), jnp.float32(0.0))   # [1, S]

    # ---- self attention block -------------------------------------------
    ln_tile = _opennmt_layernorm(x_tile, ln1_g_ref[...], ln1_b_ref[...], eps)
    allinp_ref[0] = ln_tile                   # all_input (previous_input=None)
    ln_full = _opennmt_layernorm(x_full, ln1_g_ref[...], ln1_b_ref[...], eps)

    # 1/sqrt(dk) is pre-folded into the Q weight/bias columns.
    q_self = _proj(ln_tile, w_qkv_ref[:, :D], b_qkv_ref[:, :D])     # [TQ, D]
    kv_self = _proj(ln_full, w_qkv_ref[:, D:], b_qkv_ref[:, D:])    # [T, 2D]
    kv_bf = kv_self.astype(jnp.bfloat16)
    _multi_head_attention(q_self.astype(jnp.bfloat16),
                          kv_bf[:, :D], kv_bf[:, D:], dec_bias, heads,
                          ctx_ref, False)
    query = _proj(ctx_ref[...], w_os_ref[...], b_os_ref[...]) + x_tile

    # ---- cross (context) attention block ----------------------------------
    query_norm = _opennmt_layernorm(query, ln2_g_ref[...], ln2_b_ref[...], eps)
    q_cross = _proj(query_norm, w_qc_ref[...], b_qc_ref[...])       # [TQ, D]
    kv_cross = _proj(mem, w_kvc_ref[...], b_kvc_ref[...]).astype(jnp.bfloat16)
    head0 = _multi_head_attention(q_cross.astype(jnp.bfloat16),
                                  kv_cross[:, :D], kv_cross[:, D:],
                                  src_bias, heads, ctx_ref, need_attn)
    mid = _proj(ctx_ref[...], w_oc_ref[...], b_oc_ref[...]) + query
    if need_attn:
        attn_ref[0] = head0                              # head 0, last layer

    # ---- position-wise feed-forward ----------------------------------------
    ffn_in = _opennmt_layernorm(mid, ln3_g_ref[...], ln3_b_ref[...], eps)
    hidden = jnp.maximum(_proj(ffn_in, w1_ref[...], b1_ref[...]), 0.0)
    out = _proj(hidden, w2_ref[...], b2_ref[...]) + mid

    if apply_final_ln:                 # decoder-final LayerNorm fused in
        out = _opennmt_layernorm(out, fin_g_ref[...], fin_b_ref[...], eps)
    out_ref[0] = out


_LAYER_WEIGHT_NAMES = (
    "ln1_g", "ln1_b", "w_qkv", "b_qkv", "w_os", "b_os",
    "ln2_g", "ln2_b", "w_qc", "b_qc", "w_kvc", "b_kvc", "w_oc", "b_oc",
    "ln3_g", "ln3_b", "w1", "b1", "w2", "b2")


def decoder_layer(lp, x, mem, tgt_pad, src_pad, fin_g, fin_b, *,
                  heads, apply_final_ln, need_attn, tq):
    """One fused decoder layer.  x:[B,T,D] f32, mem:[B,S,D] bf16.

    Returns (output [B,T,D], attn [B,T,S] or None, all_input [B,T,D])."""
    B, T, D = x.shape
    S = mem.shape[1]
    if T % tq != 0:
        tq = T                         # fall back to whole-sequence tiles
    nq = T // tq
    weights = [lp[n] for n in _LAYER_WEIGHT_NAMES] + [fin_g, fin_b]

    def _rep(shape):                   # whole-array block, constant block index
        n = len(shape)
        return pl.BlockSpec(shape, lambda b, q, n=n: (0,) * n)

    in_specs = (
        [pl.BlockSpec((1, T, D), lambda b, q: (b, 0, 0)),     # layer input
         pl.BlockSpec((1, S, D), lambda b, q: (b, 0, 0)),     # memory (bf16)
         pl.BlockSpec((1, 1, T), lambda b, q: (b, 0, 0)),     # tgt pad row
         pl.BlockSpec((1, 1, S), lambda b, q: (b, 0, 0))]     # src pad row
        + [_rep(w.shape) for w in weights])

    out_specs = [pl.BlockSpec((1, tq, D), lambda b, q: (b, q, 0))]
    out_shape = [jax.ShapeDtypeStruct((B, T, D), jnp.float32)]
    if need_attn:                      # only the last layer emits attn to HBM
        out_specs.append(pl.BlockSpec((1, tq, S), lambda b, q: (b, q, 0)))
        out_shape.append(jax.ShapeDtypeStruct((B, T, S), jnp.float32))
    out_specs.append(pl.BlockSpec((1, tq, D), lambda b, q: (b, q, 0)))
    out_shape.append(jax.ShapeDtypeStruct((B, T, D), jnp.float32))

    kernel = functools.partial(
        _decoder_layer_kernel, heads=heads, d_model=D, eps=1e-6,
        apply_final_ln=apply_final_ln, need_attn=need_attn, tq=tq)

    outs = pl.pallas_call(
        kernel,
        grid=(B, nq),
        in_specs=in_specs,
        out_specs=out_specs,
        out_shape=out_shape,
        scratch_shapes=[pltpu.VMEM((tq, D), jnp.float32)],   # head-ctx scratch
        compiler_params=pltpu.CompilerParams(
            dimension_semantics=("parallel", "parallel"),
            # 48 MiB leaves headroom on v7x's 64 MiB physical VMEM; raise (and
            # pick a larger tq) on v6e/v5e's 128 MiB parts.
            vmem_limit_bytes=48 * 1024 * 1024),
    )(x, mem, tgt_pad, src_pad, *weights)

    if need_attn:
        out, attn, allinp = outs
        return out, attn, allinp
    out, allinp = outs
    return out, None, allinp


# ----------------------------------------------------------------------------
# Module glue (embeddings / pad masks / layer loop in plain JAX)
# ----------------------------------------------------------------------------
def embed(p, tgt_ids, d_model):
    """OpenNMT Embeddings w/ positional encoding: table[ids]*sqrt(D) + PE."""
    emb = p["table"][tgt_ids] * math.sqrt(d_model)           # [T, B, D]
    return emb + p["pe"][: tgt_ids.shape[0]][:, None, :]


def transformer_decoder_forward(packed, tgt, src, memory_bank, *, num_layers,
                                heads, d_model, pad_idx, tq):
    """tgt [T,B,1] int32, src [S,B,1] int32, memory_bank [S,B,D] f32."""
    src_words = src[:, :, 0].T            # [B, S]
    tgt_words = tgt[:, :, 0].T            # [B, T]

    emb = embed(packed["embeddings"], tgt[:, :, 0], d_model)  # [T, B, D]
    output = jnp.transpose(emb, (1, 0, 2))                    # [B, T, D] f32
    mem = jnp.transpose(memory_bank, (1, 0, 2)).astype(jnp.bfloat16)  # [B,S,D]

    # Only the pad rows go to the kernel (1.0 == pad); causal part is in-kernel.
    tgt_pad = (tgt_words == pad_idx).astype(jnp.float32)[:, None, :]   # [B,1,T]
    src_pad = (src_words == pad_idx).astype(jnp.float32)[:, None, :]   # [B,1,S]

    saved_inputs = []
    attn = None
    for i in range(num_layers):
        last = (i == num_layers - 1)
        output, attn_i, all_input = decoder_layer(
            packed["layers"][i], output, mem, tgt_pad, src_pad,
            packed["ln_g"], packed["ln_b"], heads=heads,
            apply_final_ln=last, need_attn=last, tq=tq)
        if attn_i is not None:
            attn = attn_i
        saved_inputs.append(all_input)
    saved_inputs = jnp.stack(saved_inputs)        # [L, B, T, D]

    outputs = jnp.transpose(output, (1, 0, 2))    # [T, B, D] (final LN fused)
    attn_std = jnp.transpose(attn, (1, 0, 2))     # [T, B, S]
    # state.update_state(tgt, saved_inputs) -> saved_inputs returned directly.
    return outputs, attn_std, saved_inputs


# ----------------------------------------------------------------------------
# Parameter init (reference layout) + packing into kernel-ready form
# ----------------------------------------------------------------------------
def _dense(key, d_in, d_out):
    kw, kb = jax.random.split(key)
    w = jax.random.normal(kw, (d_in, d_out), jnp.float32) * 0.05
    b = jax.random.normal(kb, (d_out,), jnp.float32) * 0.01
    return w, b


def _mha_params(key, d_model):
    ks = jax.random.split(key, 4)
    wk, bk = _dense(ks[0], d_model, d_model)
    wv, bv = _dense(ks[1], d_model, d_model)
    wq, bq = _dense(ks[2], d_model, d_model)
    wo, bo = _dense(ks[3], d_model, d_model)
    return dict(wk=wk, bk=bk, wv=wv, bv=bv, wq=wq, bq=bq, wo=wo, bo=bo)


def _layer_params(key, d_model, d_ff):
    ks = jax.random.split(key, 4)
    w1, b1 = _dense(ks[2], d_model, d_ff)
    w2, b2 = _dense(ks[3], d_ff, d_model)
    return dict(
        self_attn=_mha_params(ks[0], d_model),
        ctx_attn=_mha_params(ks[1], d_model),
        ffn=dict(ln_g=jnp.ones((d_model,), jnp.float32),
                 ln_b=jnp.zeros((d_model,), jnp.float32),
                 w1=w1, b1=b1, w2=w2, b2=b2),
        ln1_g=jnp.ones((d_model,), jnp.float32),
        ln1_b=jnp.zeros((d_model,), jnp.float32),
        ln2_g=jnp.ones((d_model,), jnp.float32),
        ln2_b=jnp.zeros((d_model,), jnp.float32),
    )


def _sinusoidal_pe(max_len, dim):
    pe = np.zeros((max_len, dim), dtype=np.float32)
    position = np.arange(max_len)[:, None].astype(np.float32)
    div_term = np.exp(np.arange(0, dim, 2).astype(np.float32)
                      * -(math.log(10000.0) / dim))
    pe[:, 0::2] = np.sin(position * div_term)
    pe[:, 1::2] = np.cos(position * div_term)
    return jnp.asarray(pe)


def init_params(key, num_layers, d_model, d_ff, vocab, max_len, pad_idx):
    keys = jax.random.split(key, num_layers + 2)
    table = jax.random.normal(keys[0], (vocab, d_model), jnp.float32) * 0.05
    table = table.at[pad_idx].set(0.0)          # padding_idx row is zeros
    return dict(
        embeddings=dict(table=table, pe=_sinusoidal_pe(max_len, d_model)),
        layers=[_layer_params(keys[1 + i], d_model, d_ff)
                for i in range(num_layers)],
        ln_g=jnp.ones((d_model,), jnp.float32),
        ln_b=jnp.zeros((d_model,), jnp.float32),
    )


def pack_params(params, d_model, heads):
    """Fuse QKV / KV weights, fold 1/sqrt(dk) into Q, reshape biases to [1,N],
    cast weight matrices to bf16."""
    D = d_model
    bf = jnp.bfloat16
    scale = 1.0 / math.sqrt(D // heads)

    def pack_layer(lp):
        sa, ca, ff = lp["self_attn"], lp["ctx_attn"], lp["ffn"]
        return dict(
            ln1_g=lp["ln1_g"].reshape(1, D), ln1_b=lp["ln1_b"].reshape(1, D),
            # 1/sqrt(dk) folded into the Q weight/bias columns.
            w_qkv=jnp.concatenate([sa["wq"] * scale, sa["wk"], sa["wv"]],
                                  1).astype(bf),
            b_qkv=jnp.concatenate([sa["bq"] * scale, sa["bk"],
                                   sa["bv"]]).reshape(1, 3 * D),
            w_os=sa["wo"].astype(bf), b_os=sa["bo"].reshape(1, D),
            ln2_g=lp["ln2_g"].reshape(1, D), ln2_b=lp["ln2_b"].reshape(1, D),
            w_qc=(ca["wq"] * scale).astype(bf),
            b_qc=(ca["bq"] * scale).reshape(1, D),
            w_kvc=jnp.concatenate([ca["wk"], ca["wv"]], 1).astype(bf),
            b_kvc=jnp.concatenate([ca["bk"], ca["bv"]]).reshape(1, 2 * D),
            w_oc=ca["wo"].astype(bf), b_oc=ca["bo"].reshape(1, D),
            ln3_g=ff["ln_g"].reshape(1, D), ln3_b=ff["ln_b"].reshape(1, D),
            w1=ff["w1"].astype(bf), b1=ff["b1"].reshape(1, -1),
            w2=ff["w2"].astype(bf), b2=ff["b2"].reshape(1, D),
        )

    return dict(
        embeddings=params["embeddings"],
        layers=[pack_layer(lp) for lp in params["layers"]],
        ln_g=params["ln_g"].reshape(1, D),
        ln_b=params["ln_b"].reshape(1, D),
    )


# ----------------------------------------------------------------------------
# Main
# ----------------------------------------------------------------------------
if __name__ == "__main__":
    NUM_LAYERS = 2
    D_MODEL = 32
    HEADS = 4
    D_FF = 64
    VOCAB = 50
    PAD_IDX = 0
    B = 2
    TGT_LEN = 16
    SRC_LEN = 16
    MAX_LEN = 64
    TQ = 8           # query-row tile -> grid (B, TGT_LEN // TQ) = (2, 2)

    root = jax.random.PRNGKey(0)
    k_par, k_tgt, k_src, k_mem = jax.random.split(root, 4)

    params = init_params(k_par, NUM_LAYERS, D_MODEL, D_FF, VOCAB, MAX_LEN,
                         PAD_IDX)
    packed = pack_params(params, D_MODEL, HEADS)

    # token ids in [1, VOCAB) plus a bit of padding
    tgt = jax.random.randint(k_tgt, (TGT_LEN, B, 1), 1, VOCAB, jnp.int32)
    tgt = tgt.at[-1, 0, 0].set(PAD_IDX)           # pad last tgt token, batch 0
    src = jax.random.randint(k_src, (SRC_LEN, B, 1), 1, VOCAB, jnp.int32)
    src = src.at[-2:, 1, 0].set(PAD_IDX)          # pad last 2 src tokens, batch 1
    memory_bank = jax.random.normal(k_mem, (SRC_LEN, B, D_MODEL), jnp.float32)

    fwd = jax.jit(functools.partial(
        transformer_decoder_forward,
        num_layers=NUM_LAYERS, heads=HEADS, d_model=D_MODEL, pad_idx=PAD_IDX,
        tq=TQ))

    outputs, attn_std, saved_inputs = fwd(packed, tgt, src, memory_bank)
    jax.block_until_ready((outputs, attn_std, saved_inputs))

    assert outputs.shape == (TGT_LEN, B, D_MODEL)
    assert attn_std.shape == (TGT_LEN, B, SRC_LEN)
    assert saved_inputs.shape == (NUM_LAYERS, B, TGT_LEN, D_MODEL)
    assert bool(jnp.all(jnp.isfinite(outputs)))
    # attention rows must sum to ~1 (approx-reciprocal softmax denominator)
    assert bool(jnp.allclose(jnp.sum(attn_std, axis=-1), 1.0, atol=1e-2))

    print("KERNEL_OK")
</pallas_src>

<mosaic_0001>
module attributes {stable_mosaic.version = 11 : i64} {
  func.func @_decoder_layer_kernel(%arg0: i32, %arg1: i32, %arg2: memref<1x16x32xf32, #tpu.memory_space<vmem>>, %arg3: memref<1x16x32xbf16, #tpu.memory_space<vmem>>, %arg4: memref<1x1x16xf32, #tpu.memory_space<vmem>>, %arg5: memref<1x1x16xf32, #tpu.memory_space<vmem>>, %arg6: memref<1x32xf32, #tpu.memory_space<vmem>>, %arg7: memref<1x32xf32, #tpu.memory_space<vmem>>, %arg8: memref<32x96xbf16, #tpu.memory_space<vmem>>, %arg9: memref<1x96xf32, #tpu.memory_space<vmem>>, %arg10: memref<32x32xbf16, #tpu.memory_space<vmem>>, %arg11: memref<1x32xf32, #tpu.memory_space<vmem>>, %arg12: memref<1x32xf32, #tpu.memory_space<vmem>>, %arg13: memref<1x32xf32, #tpu.memory_space<vmem>>, %arg14: memref<32x32xbf16, #tpu.memory_space<vmem>>, %arg15: memref<1x32xf32, #tpu.memory_space<vmem>>, %arg16: memref<32x64xbf16, #tpu.memory_space<vmem>>, %arg17: memref<1x64xf32, #tpu.memory_space<vmem>>, %arg18: memref<32x32xbf16, #tpu.memory_space<vmem>>, %arg19: memref<1x32xf32, #tpu.memory_space<vmem>>, %arg20: memref<1x32xf32, #tpu.memory_space<vmem>>, %arg21: memref<1x32xf32, #tpu.memory_space<vmem>>, %arg22: memref<32x64xbf16, #tpu.memory_space<vmem>>, %arg23: memref<1x64xf32, #tpu.memory_space<vmem>>, %arg24: memref<64x32xbf16, #tpu.memory_space<vmem>>, %arg25: memref<1x32xf32, #tpu.memory_space<vmem>>, %arg26: memref<1x32xf32, #tpu.memory_space<vmem>>, %arg27: memref<1x32xf32, #tpu.memory_space<vmem>>, %arg28: memref<1x8x32xf32, #tpu.memory_space<vmem>>, %arg29: memref<1x8x32xf32, #tpu.memory_space<vmem>>, %arg30: memref<8x32xf32, #tpu.memory_space<vmem>>) attributes {dimension_semantics = [#tpu.dimension_semantics<parallel>, #tpu.dimension_semantics<parallel>], iteration_bounds = array<i64: 2, 2>, scalar_prefetch = 0 : i64, scratch_operands = 1 : i64, tpu.core_type = #tpu.core_type<tc>, window_params = [{transform_indices = @transform_0, window_bounds = array<i64: 1, 16, 32>}, {transform_indices = @transform_1, window_bounds = array<i64: 1, 16, 32>}, {transform_indices = @transform_2, window_bounds = array<i64: 1, 1, 16>}, {transform_indices = @transform_3, window_bounds = array<i64: 1, 1, 16>}, {pipeline_mode = #tpu.pipeline_mode<synchronous>, transform_indices = @transform_4, window_bounds = array<i64: 1, 32>}, {pipeline_mode = #tpu.pipeline_mode<synchronous>, transform_indices = @transform_5, window_bounds = array<i64: 1, 32>}, {pipeline_mode = #tpu.pipeline_mode<synchronous>, transform_indices = @transform_6, window_bounds = array<i64: 32, 96>}, {pipeline_mode = #tpu.pipeline_mode<synchronous>, transform_indices = @transform_7, window_bounds = array<i64: 1, 96>}, {pipeline_mode = #tpu.pipeline_mode<synchronous>, transform_indices = @transform_8, window_bounds = array<i64: 32, 32>}, {pipeline_mode = #tpu.pipeline_mode<synchronous>, transform_indices = @transform_9, window_bounds = array<i64: 1, 32>}, {pipeline_mode = #tpu.pipeline_mode<synchronous>, transform_indices = @transform_10, window_bounds = array<i64: 1, 32>}, {pipeline_mode = #tpu.pipeline_mode<synchronous>, transform_indices = @transform_11, window_bounds = array<i64: 1, 32>}, {pipeline_mode = #tpu.pipeline_mode<synchronous>, transform_indices = @transform_12, window_bounds = array<i64: 32, 32>}, {pipeline_mode = #tpu.pipeline_mode<synchronous>, transform_indices = @transform_13, window_bounds = array<i64: 1, 32>}, {pipeline_mode = #tpu.pipeline_mode<synchronous>, transform_indices = @transform_14, window_bounds = array<i64: 32, 64>}, {pipeline_mode = #tpu.pipeline_mode<synchronous>, transform_indices = @transform_15, window_bounds = array<i64: 1, 64>}, {pipeline_mode = #tpu.pipeline_mode<synchronous>, transform_indices = @transform_16, window_bounds = array<i64: 32, 32>}, {pipeline_mode = #tpu.pipeline_mode<synchronous>, transform_indices = @transform_17, window_bounds = array<i64: 1, 32>}, {pipeline_mode = #tpu.pipeline_mode<synchronous>, transform_indices = @transform_18, window_bounds = array<i64: 1, 32>}, {pipeline_mode = #tpu.pipeline_mode<synchronous>, transform_indices = @transform_19, window_bounds = array<i64: 1, 32>}, {pipeline_mode = #tpu.pipeline_mode<synchronous>, transform_indices = @transform_20, window_bounds = array<i64: 32, 64>}, {pipeline_mode = #tpu.pipeline_mode<synchronous>, transform_indices = @transform_21, window_bounds = array<i64: 1, 64>}, {pipeline_mode = #tpu.pipeline_mode<synchronous>, transform_indices = @transform_22, window_bounds = array<i64: 64, 32>}, {pipeline_mode = #tpu.pipeline_mode<synchronous>, transform_indices = @transform_23, window_bounds = array<i64: 1, 32>}, {pipeline_mode = #tpu.pipeline_mode<synchronous>, transform_indices = @transform_24, window_bounds = array<i64: 1, 32>}, {pipeline_mode = #tpu.pipeline_mode<synchronous>, transform_indices = @transform_25, window_bounds = array<i64: 1, 32>}, {transform_indices = @transform_26, window_bounds = array<i64: 1, 8, 32>}, {transform_indices = @transform_27, window_bounds = array<i64: 1, 8, 32>}]} {
    %c8_i32 = arith.constant 8 : i32
    %0 = arith.muli %arg1, %c8_i32 : i32
    %1 = tpu.assume_multiple %0, 8 : i32
    %c0 = arith.constant 0 : index
    %c0_0 = arith.constant 0 : index
    %c0_1 = arith.constant 0 : index
    %2 = vector.load %arg2[%c0, %c0_0, %c0_1] : memref<1x16x32xf32, #tpu.memory_space<vmem>>, vector<1x16x32xf32>
    %3 = vector.shape_cast %2 : vector<1x16x32xf32> to vector<16x32xf32>
    %c0_2 = arith.constant 0 : index
    %4 = arith.index_cast %1 : i32 to index
    %c0_3 = arith.constant 0 : index
    %5 = vector.load %arg2[%c0_2, %4, %c0_3] : memref<1x16x32xf32, #tpu.memory_space<vmem>>, vector<1x8x32xf32>
    %6 = vector.shape_cast %5 : vector<1x8x32xf32> to vector<8x32xf32>
    %c0_4 = arith.constant 0 : index
    %c0_5 = arith.constant 0 : index
    %c0_6 = arith.constant 0 : index
    %7 = vector.load %arg3[%c0_4, %c0_5, %c0_6] : memref<1x16x32xbf16, #tpu.memory_space<vmem>>, vector<1x16x32xbf16>
    %8 = vector.shape_cast %7 : vector<1x16x32xbf16> to vector<16x32xbf16>
    %9 = tpu.iota {dimensions = array<i32: 0>} : vector<8x16xi32>
    %10 = vector.broadcast %1 : i32 to vector<8x16xi32>
    %11 = arith.addi %10, %9 : vector<8x16xi32>
    %12 = tpu.iota {dimensions = array<i32: 1>} : vector<8x16xi32>
    %13 = arith.cmpi sgt, %12, %11 : vector<8x16xi32>
    %c0_7 = arith.constant 0 : index
    %c0_8 = arith.constant 0 : index
    %c0_9 = arith.constant 0 : index
    %14 = vector.load %arg4[%c0_7, %c0_8, %c0_9] : memref<1x1x16xf32, #tpu.memory_space<vmem>>, vector<1x1x16xf32>
    %15 = vector.shape_cast %14 : vector<1x1x16xf32> to vector<1x16xf32>
    %cst = arith.constant 0.000000e+00 : f32
    %16 = vector.broadcast %cst : f32 to vector<1x16xf32>
    %17 = arith.cmpf ogt, %15, %16 : vector<1x16xf32>
    %18 = vector.broadcast %17 : vector<1x16xi1> to vector<8x16xi1>
    %19 = arith.ori %13, %18 : vector<8x16xi1>
    %cst_10 = arith.constant -9.99999984E+17 : f32
    %cst_11 = arith.constant 0.000000e+00 : f32
    %20 = vector.broadcast %cst_10 : f32 to vector<8x16xf32>
    %21 = vector.broadcast %cst_11 : f32 to vector<8x16xf32>
    %22 = arith.select %19, %20, %21 : vector<8x16xi1>, vector<8x16xf32>
    %c0_12 = arith.constant 0 : index
    %c0_13 = arith.constant 0 : index
    %c0_14 = arith.constant 0 : index
    %23 = vector.load %arg5[%c0_12, %c0_13, %c0_14] : memref<1x1x16xf32, #tpu.memory_space<vmem>>, vector<1x1x16xf32>
    %24 = vector.shape_cast %23 : vector<1x1x16xf32> to vector<1x16xf32>
    %cst_15 = arith.constant 0.000000e+00 : f32
    %25 = vector.broadcast %cst_15 : f32 to vector<1x16xf32>
    %26 = arith.cmpf ogt, %24, %25 : vector<1x16xf32>
    %cst_16 = arith.constant -9.99999984E+17 : f32
    %cst_17 = arith.constant 0.000000e+00 : f32
    %27 = vector.broadcast %cst_16 : f32 to vector<1x16xf32>
    %28 = vector.broadcast %cst_17 : f32 to vector<1x16xf32>
    %29 = arith.select %26, %27, %28 : vector<1x16xi1>, vector<1x16xf32>
    %c0_18 = arith.constant 0 : index
    %c0_19 = arith.constant 0 : index
    %30 = vector.load %arg6[%c0_18, %c0_19] : memref<1x32xf32, #tpu.memory_space<vmem>>, vector<1x32xf32>
    %c0_20 = arith.constant 0 : index
    %c0_21 = arith.constant 0 : index
    %31 = vector.load %arg7[%c0_20, %c0_21] : memref<1x32xf32, #tpu.memory_space<vmem>>, vector<1x32xf32>
    %cst_22 = arith.constant dense<0.000000e+00> : vector<8xf32>
    %32 = vector.multi_reduction <add>, %6, %cst_22 [1] : vector<8x32xf32> to vector<8xf32>
    %33 = vector.shape_cast %32 : vector<8xf32> to vector<8x1xf32>
    %cst_23 = arith.constant 3.200000e+01 : f32
    %34 = vector.broadcast %cst_23 : f32 to vector<8x1xf32>
    %35 = arith.divf %33, %34 : vector<8x1xf32>
    %36 = vector.broadcast %35 : vector<8x1xf32> to vector<8x32xf32>
    %37 = arith.subf %6, %36 : vector<8x32xf32>
    %38 = arith.mulf %37, %37 : vector<8x32xf32>
    %cst_24 = arith.constant dense<0.000000e+00> : vector<8xf32>
    %39 = vector.multi_reduction <add>, %38, %cst_24 [1] : vector<8x32xf32> to vector<8xf32>
    %40 = vector.shape_cast %39 : vector<8xf32> to vector<8x1xf32>
    %cst_25 = arith.constant 3.100000e+01 : f32
    %41 = vector.broadcast %cst_25 : f32 to vector<8x1xf32>
    %42 = arith.divf %40, %41 : vector<8x1xf32>
    %43 = vector.broadcast %30 : vector<1x32xf32> to vector<8x32xf32>
    %44 = arith.mulf %43, %37 : vector<8x32xf32>
    %45 = math.sqrt %42 : vector<8x1xf32>
    %cst_26 = arith.constant 9.99999997E-7 : f32
    %46 = vector.broadcast %cst_26 : f32 to vector<8x1xf32>
    %47 = arith.addf %45, %46 : vector<8x1xf32>
    %48 = vector.broadcast %47 : vector<8x1xf32> to vector<8x32xf32>
    %49 = arith.divf %44, %48 : vector<8x32xf32>
    %50 = vector.broadcast %31 : vector<1x32xf32> to vector<8x32xf32>
    %51 = arith.addf %49, %50 : vector<8x32xf32>
    %c0_27 = arith.constant 0 : index
    %c0_28 = arith.constant 0 : index
    %c0_29 = arith.constant 0 : index
    %52 = vector.load %arg29[%c0_27, %c0_28, %c0_29] : memref<1x8x32xf32, #tpu.memory_space<vmem>>, vector<1x8x32xf32>
    %53 = vector.shape_cast %52 : vector<1x8x32xf32> to vector<8x32xf32>
    %54 = vector.shape_cast %51 : vector<8x32xf32> to vector<1x8x32xf32>
    tpu.vector_store %arg29[%c0_27, %c0_28, %c0_29], %54 {strides = array<i32>} : memref<1x8x32xf32, #tpu.memory_space<vmem>>, vector<1x8x32xf32>,
    %c0_30 = arith.constant 0 : index
    %c0_31 = arith.constant 0 : index
    %55 = vector.load %arg6[%c0_30, %c0_31] : memref<1x32xf32, #tpu.memory_space<vmem>>, vector<1x32xf32>
    %c0_32 = arith.constant 0 : index
    %c0_33 = arith.constant 0 : index
    %56 = vector.load %arg7[%c0_32, %c0_33] : memref<1x32xf32, #tpu.memory_space<vmem>>, vector<1x32xf32>
    %cst_34 = arith.constant dense<0.000000e+00> : vector<16xf32>
    %57 = vector.multi_reduction <add>, %3, %cst_34 [1] : vector<16x32xf32> to vector<16xf32>
    %58 = vector.shape_cast %57 : vector<16xf32> to vector<16x1xf32>
    %cst_35 = arith.constant 3.200000e+01 : f32
    %59 = vector.broadcast %cst_35 : f32 to vector<16x1xf32>
    %60 = arith.divf %58, %59 : vector<16x1xf32>
    %61 = vector.broadcast %60 : vector<16x1xf32> to vector<16x32xf32>
    %62 = arith.subf %3, %61 : vector<16x32xf32>
    %63 = arith.mulf %62, %62 : vector<16x32xf32>
    %cst_36 = arith.constant dense<0.000000e+00> : vector<16xf32>
    %64 = vector.multi_reduction <add>, %63, %cst_36 [1] : vector<16x32xf32> to vector<16xf32>
    %65 = vector.shape_cast %64 : vector<16xf32> to vector<16x1xf32>
    %cst_37 = arith.constant 3.100000e+01 : f32
    %66 = vector.broadcast %cst_37 : f32 to vector<16x1xf32>
    %67 = arith.divf %65, %66 : vector<16x1xf32>
    %68 = vector.broadcast %55 : vector<1x32xf32> to vector<16x32xf32>
    %69 = arith.mulf %68, %62 : vector<16x32xf32>
    %70 = math.sqrt %67 : vector<16x1xf32>
    %cst_38 = arith.constant 9.99999997E-7 : f32
    %71 = vector.broadcast %cst_38 : f32 to vector<16x1xf32>
    %72 = arith.addf %70, %71 : vector<16x1xf32>
    %73 = vector.broadcast %72 : vector<16x1xf32> to vector<16x32xf32>
    %74 = arith.divf %69, %73 : vector<16x32xf32>
    %75 = vector.broadcast %56 : vector<1x32xf32> to vector<16x32xf32>
    %76 = arith.addf %74, %75 : vector<16x32xf32>
    %c0_39 = arith.constant 0 : index
    %c0_40 = arith.constant 0 : index
    %77 = vector.load %arg8[%c0_39, %c0_40] : memref<32x96xbf16, #tpu.memory_space<vmem>>, vector<32x32xbf16>
    %c0_41 = arith.constant 0 : index
    %c0_42 = arith.constant 0 : index
    %78 = vector.load %arg9[%c0_41, %c0_42] : memref<1x96xf32, #tpu.memory_space<vmem>>, vector<1x32xf32>
    %79 = arith.truncf %51 : vector<8x32xf32> to vector<8x32xbf16>
    %cst_43 = arith.constant dense<0.000000e+00> : vector<8x32xf32>
    %80 = tpu.matmul %79, %77, %cst_43 {dimension_numbers = #tpu.dot_dimension_numbers<[1], [0], [0], [1], [0, 0, 1, 1], [], []>} : vector<8x32xbf16>, vector<32x32xbf16>, vector<8x32xf32> -> vector<8x32xf32>
    %81 = vector.broadcast %78 : vector<1x32xf32> to vector<8x32xf32>
    %82 = arith.addf %80, %81 : vector<8x32xf32>
    %c0_44 = arith.constant 0 : index
    %c32 = arith.constant 32 : index
    %83 = vector.load %arg8[%c0_44, %c32] : memref<32x96xbf16, #tpu.memory_space<vmem>>, vector<32x64xbf16>
    %c0_45 = arith.constant 0 : index
    %c32_46 = arith.constant 32 : index
    %84 = vector.load %arg9[%c0_45, %c32_46] : memref<1x96xf32, #tpu.memory_space<vmem>>, vector<1x64xf32>
    %85 = arith.truncf %76 : vector<16x32xf32> to vector<16x32xbf16>
    %cst_47 = arith.constant dense<0.000000e+00> : vector<16x64xf32>
    %86 = tpu.matmul %85, %83, %cst_47 {dimension_numbers = #tpu.dot_dimension_numbers<[1], [0], [0], [1], [0, 0, 1, 1], [], []>} : vector<16x32xbf16>, vector<32x64xbf16>, vector<16x64xf32> -> vector<16x64xf32>
    %87 = vector.broadcast %84 : vector<1x64xf32> to vector<16x64xf32>
    %88 = arith.addf %86, %87 : vector<16x64xf32>
    %89 = arith.truncf %88 : vector<16x64xf32> to vector<16x64xbf16>
    %90 = arith.truncf %82 : vector<8x32xf32> to vector<8x32xbf16>
    %91 = vector.extract_strided_slice %89 {offsets = [0, 0], sizes = [16, 32], strides = [1, 1]} : vector<16x64xbf16> to vector<16x32xbf16>
    %92 = vector.extract_strided_slice %89 {offsets = [0, 32], sizes = [16, 32], strides = [1, 1]} : vector<16x64xbf16> to vector<16x32xbf16>
    %93 = vector.extract_strided_slice %90 {offsets = [0, 0], sizes = [8, 8], strides = [1, 1]} : vector<8x32xbf16> to vector<8x8xbf16>
    %94 = vector.extract_strided_slice %91 {offsets = [0, 0], sizes = [16, 8], strides = [1, 1]} : vector<16x32xbf16> to vector<16x8xbf16>
    %cst_48 = arith.constant dense<0.000000e+00> : vector<8x16xf32>
    %95 = tpu.matmul %93, %94, %cst_48 {dimension_numbers = #tpu.dot_dimension_numbers<[1], [1], [0], [0], [0, 0, 1, 0], [], []>} : vector<8x8xbf16>, vector<16x8xbf16>, vector<8x16xf32> -> vector<8x16xf32>
    %96 = arith.addf %95, %22 : vector<8x16xf32>
    %cst_49 = arith.constant dense<0xFF800000> : vector<8xf32>
    %97 = vector.multi_reduction <maximumf>, %96, %cst_49 [1] : vector<8x16xf32> to vector<8xf32>
    %98 = vector.shape_cast %97 : vector<8xf32> to vector<8x1xf32>
    %99 = vector.broadcast %98 : vector<8x1xf32> to vector<8x16xf32>
    %100 = arith.subf %96, %99 : vector<8x16xf32>
    %101 = math.exp %100 : vector<8x16xf32>
    %cst_50 = arith.constant dense<0.000000e+00> : vector<8xf32>
    %102 = vector.multi_reduction <add>, %101, %cst_50 [1] : vector<8x16xf32> to vector<8xf32>
    %103 = vector.shape_cast %102 : vector<8xf32> to vector<8x1xf32>
    %104 = tpu.reciprocal %103 {approx = true} : vector<8x1xf32> -> vector<8x1xf32>
    %105 = vector.broadcast %104 : vector<8x1xf32> to vector<8x16xf32>
    %106 = arith.mulf %101, %105 : vector<8x16xf32>
    %107 = arith.truncf %106 : vector<8x16xf32> to vector<8x16xbf16>
    %108 = vector.extract_strided_slice %92 {offsets = [0, 0], sizes = [16, 8], strides = [1, 1]} : vector<16x32xbf16> to vector<16x8xbf16>
    %cst_51 = arith.constant dense<0.000000e+00> : vector<8x8xf32>
    %109 = tpu.matmul %107, %108, %cst_51 {dimension_numbers = #tpu.dot_dimension_numbers<[1], [0], [0], [1], [0, 0, 1, 1], [], []>} : vector<8x16xbf16>, vector<16x8xbf16>, vector<8x8xf32> -> vector<8x8xf32>
    %c0_52 = arith.constant 0 : index
    %c0_53 = arith.constant 0 : index
    %110 = vector.load %arg30[%c0_52, %c0_53] : memref<8x32xf32, #tpu.memory_space<vmem>>, vector<8x8xf32>
    tpu.vector_store %arg30[%c0_52, %c0_53], %109 {strides = array<i32>} : memref<8x32xf32, #tpu.memory_space<vmem>>, vector<8x8xf32>,
    %111 = vector.extract_strided_slice %90 {offsets = [0, 8], sizes = [8, 8], strides = [1, 1]} : vector<8x32xbf16> to vector<8x8xbf16>
    %112 = vector.extract_strided_slice %91 {offsets = [0, 8], sizes = [16, 8], strides = [1, 1]} : vector<16x32xbf16> to vector<16x8xbf16>
    %cst_54 = arith.constant dense<0.000000e+00> : vector<8x16xf32>
    %113 = tpu.matmul %111, %112, %cst_54 {dimension_numbers = #tpu.dot_dimension_numbers<[1], [1], [0], [0], [0, 0, 1, 0], [], []>} : vector<8x8xbf16>, vector<16x8xbf16>, vector<8x16xf32> -> vector<8x16xf32>
    %114 = arith.addf %113, %22 : vector<8x16xf32>
    %cst_55 = arith.constant dense<0xFF800000> : vector<8xf32>
    %115 = vector.multi_reduction <maximumf>, %114, %cst_55 [1] : vector<8x16xf32> to vector<8xf32>
    %116 = vector.shape_cast %115 : vector<8xf32> to vector<8x1xf32>
    %117 = vector.broadcast %116 : vector<8x1xf32> to vector<8x16xf32>
    %118 = arith.subf %114, %117 : vector<8x16xf32>
    %119 = math.exp %118 : vector<8x16xf32>
    %cst_56 = arith.constant dense<0.000000e+00> : vector<8xf32>
    %120 = vector.multi_reduction <add>, %119, %cst_56 [1] : vector<8x16xf32> to vector<8xf32>
    %121 = vector.shape_cast %120 : vector<8xf32> to vector<8x1xf32>
    %122 = tpu.reciprocal %121 {approx = true} : vector<8x1xf32> -> vector<8x1xf32>
    %123 = vector.broadcast %122 : vector<8x1xf32> to vector<8x16xf32>
    %124 = arith.mulf %119, %123 : vector<8x16xf32>
    %125 = arith.truncf %124 : vector<8x16xf32> to vector<8x16xbf16>
    %126 = vector.extract_strided_slice %92 {offsets = [0, 8], sizes = [16, 8], strides = [1, 1]} : vector<16x32xbf16> to vector<16x8xbf16>
    %cst_57 = arith.constant dense<0.000000e+00> : vector<8x8xf32>
    %127 = tpu.matmul %125, %126, %cst_57 {dimension_numbers = #tpu.dot_dimension_numbers<[1], [0], [0], [1], [0, 0, 1, 1], [], []>} : vector<8x16xbf16>, vector<16x8xbf16>, vector<8x8xf32> -> vector<8x8xf32>
    %c0_58 = arith.constant 0 : index
    %c8 = arith.constant 8 : index
    %128 = vector.load %arg30[%c0_58, %c8] : memref<8x32xf32, #tpu.memory_space<vmem>>, vector<8x8xf32>
    tpu.vector_store %arg30[%c0_58, %c8], %127 {strides = array<i32>} : memref<8x32xf32, #tpu.memory_space<vmem>>, vector<8x8xf32>,
    %129 = vector.extract_strided_slice %90 {offsets = [0, 16], sizes = [8, 8], strides = [1, 1]} : vector<8x32xbf16> to vector<8x8xbf16>
    %130 = vector.extract_strided_slice %91 {offsets = [0, 16], sizes = [16, 8], strides = [1, 1]} : vector<16x32xbf16> to vector<16x8xbf16>
    %cst_59 = arith.constant dense<0.000000e+00> : vector<8x16xf32>
    %131 = tpu.matmul %129, %130, %cst_59 {dimension_numbers = #tpu.dot_dimension_numbers<[1], [1], [0], [0], [0, 0, 1, 0], [], []>} : vector<8x8xbf16>, vector<16x8xbf16>, vector<8x16xf32> -> vector<8x16xf32>
    %132 = arith.addf %131, %22 : vector<8x16xf32>
    %cst_60 = arith.constant dense<0xFF800000> : vector<8xf32>
    %133 = vector.multi_reduction <maximumf>, %132, %cst_60 [1] : vector<8x16xf32> to vector<8xf32>
    %134 = vector.shape_cast %133 : vector<8xf32> to vector<8x1xf32>
    %135 = vector.broadcast %134 : vector<8x1xf32> to vector<8x16xf32>
    %136 = arith.subf %132, %135 : vector<8x16xf32>
    %137 = math.exp %136 : vector<8x16xf32>
    %cst_61 = arith.constant dense<0.000000e+00> : vector<8xf32>
    %138 = vector.multi_reduction <add>, %137, %cst_61 [1] : vector<8x16xf32> to vector<8xf32>
    %139 = vector.shape_cast %138 : vector<8xf32> to vector<8x1xf32>
    %140 = tpu.reciprocal %139 {approx = true} : vector<8x1xf32> -> vector<8x1xf32>
    %141 = vector.broadcast %140 : vector<8x1xf32> to vector<8x16xf32>
    %142 = arith.mulf %137, %141 : vector<8x16xf32>
    %143 = arith.truncf %142 : vector<8x16xf32> to vector<8x16xbf16>
    %144 = vector.extract_strided_slice %92 {offsets = [0, 16], sizes = [16, 8], strides = [1, 1]} : vector<16x32xbf16> to vector<16x8xbf16>
    %cst_62 = arith.constant dense<0.000000e+00> : vector<8x8xf32>
    %145 = tpu.matmul %143, %144, %cst_62 {dimension_numbers = #tpu.dot_dimension_numbers<[1], [0], [0], [1], [0, 0, 1, 1], [], []>} : vector<8x16xbf16>, vector<16x8xbf16>, vector<8x8xf32> -> vector<8x8xf32>
    %c0_63 = arith.constant 0 : index
    %c16 = arith.constant 16 : index
    %146 = vector.load %arg30[%c0_63, %c16] : memref<8x32xf32, #tpu.memory_space<vmem>>, vector<8x8xf32>
    tpu.vector_store %arg30[%c0_63, %c16], %145 {strides = array<i32>} : memref<8x32xf32, #tpu.memory_space<vmem>>, vector<8x8xf32>,
    %147 = vector.extract_strided_slice %90 {offsets = [0, 24], sizes = [8, 8], strides = [1, 1]} : vector<8x32xbf16> to vector<8x8xbf16>
    %148 = vector.extract_strided_slice %91 {offsets = [0, 24], sizes = [16, 8], strides = [1, 1]} : vector<16x32xbf16> to vector<16x8xbf16>
    %cst_64 = arith.constant dense<0.000000e+00> : vector<8x16xf32>
    %149 = tpu.matmul %147, %148, %cst_64 {dimension_numbers = #tpu.dot_dimension_numbers<[1], [1], [0], [0], [0, 0, 1, 0], [], []>} : vector<8x8xbf16>, vector<16x8xbf16>, vector<8x16xf32> -> vector<8x16xf32>
    %150 = arith.addf %149, %22 : vector<8x16xf32>
    %cst_65 = arith.constant dense<0xFF800000> : vector<8xf32>
    %151 = vector.multi_reduction <maximumf>, %150, %cst_65 [1] : vector<8x16xf32> to vector<8xf32>
    %152 = vector.shape_cast %151 : vector<8xf32> to vector<8x1xf32>
    %153 = vector.broadcast %152 : vector<8x1xf32> to vector<8x16xf32>
    %154 = arith.subf %150, %153 : vector<8x16xf32>
    %155 = math.exp %154 : vector<8x16xf32>
    %cst_66 = arith.constant dense<0.000000e+00> : vector<8xf32>
    %156 = vector.multi_reduction <add>, %155, %cst_66 [1] : vector<8x16xf32> to vector<8xf32>
    %157 = vector.shape_cast %156 : vector<8xf32> to vector<8x1xf32>
    %158 = tpu.reciprocal %157 {approx = true} : vector<8x1xf32> -> vector<8x1xf32>
    %159 = vector.broadcast %158 : vector<8x1xf32> to vector<8x16xf32>
    %160 = arith.mulf %155, %159 : vector<8x16xf32>
    %161 = arith.truncf %160 : vector<8x16xf32> to vector<8x16xbf16>
    %162 = vector.extract_strided_slice %92 {offsets = [0, 24], sizes = [16, 8], strides = [1, 1]} : vector<16x32xbf16> to vector<16x8xbf16>
    %cst_67 = arith.constant dense<0.000000e+00> : vector<8x8xf32>
    %163 = tpu.matmul %161, %162, %cst_67 {dimension_numbers = #tpu.dot_dimension_numbers<[1], [0], [0], [1], [0, 0, 1, 1], [], []>} : vector<8x16xbf16>, vector<16x8xbf16>, vector<8x8xf32> -> vector<8x8xf32>
    %c0_68 = arith.constant 0 : index
    %c24 = arith.constant 24 : index
    %164 = vector.load %arg30[%c0_68, %c24] : memref<8x32xf32, #tpu.memory_space<vmem>>, vector<8x8xf32>
    tpu.vector_store %arg30[%c0_68, %c24], %163 {strides = array<i32>} : memref<8x32xf32, #tpu.memory_space<vmem>>, vector<8x8xf32>,
    %c0_69 = arith.constant 0 : index
    %c0_70 = arith.constant 0 : index
    %165 = vector.load %arg30[%c0_69, %c0_70] : memref<8x32xf32, #tpu.memory_space<vmem>>, vector<8x32xf32>
    %c0_71 = arith.constant 0 : index
    %c0_72 = arith.constant 0 : index
    %166 = vector.load %arg10[%c0_71, %c0_72] : memref<32x32xbf16, #tpu.memory_space<vmem>>, vector<32x32xbf16>
    %c0_73 = arith.constant 0 : index
    %c0_74 = arith.constant 0 : index
    %167 = vector.load %arg11[%c0_73, %c0_74] : memref<1x32xf32, #tpu.memory_space<vmem>>, vector<1x32xf32>
    %168 = arith.truncf %165 : vector<8x32xf32> to vector<8x32xbf16>
    %cst_75 = arith.constant dense<0.000000e+00> : vector<8x32xf32>
    %169 = tpu.matmul %168, %166, %cst_75 {dimension_numbers = #tpu.dot_dimension_numbers<[1], [0], [0], [1], [0, 0, 1, 1], [], []>} : vector<8x32xbf16>, vector<32x32xbf16>, vector<8x32xf32> -> vector<8x32xf32>
    %170 = vector.broadcast %167 : vector<1x32xf32> to vector<8x32xf32>
    %171 = arith.addf %169, %170 : vector<8x32xf32>
    %172 = arith.addf %171, %6 : vector<8x32xf32>
    %c0_76 = arith.constant 0 : index
    %c0_77 = arith.constant 0 : index
    %173 = vector.load %arg12[%c0_76, %c0_77] : memref<1x32xf32, #tpu.memory_space<vmem>>, vector<1x32xf32>
    %c0_78 = arith.constant 0 : index
    %c0_79 = arith.constant 0 : index
    %174 = vector.load %arg13[%c0_78, %c0_79] : memref<1x32xf32, #tpu.memory_space<vmem>>, vector<1x32xf32>
    %cst_80 = arith.constant dense<0.000000e+00> : vector<8xf32>
    %175 = vector.multi_reduction <add>, %172, %cst_80 [1] : vector<8x32xf32> to vector<8xf32>
    %176 = vector.shape_cast %175 : vector<8xf32> to vector<8x1xf32>
    %cst_81 = arith.constant 3.200000e+01 : f32
    %177 = vector.broadcast %cst_81 : f32 to vector<8x1xf32>
    %178 = arith.divf %176, %177 : vector<8x1xf32>
    %179 = vector.broadcast %178 : vector<8x1xf32> to vector<8x32xf32>
    %180 = arith.subf %172, %179 : vector<8x32xf32>
    %181 = arith.mulf %180, %180 : vector<8x32xf32>
    %cst_82 = arith.constant dense<0.000000e+00> : vector<8xf32>
    %182 = vector.multi_reduction <add>, %181, %cst_82 [1] : vector<8x32xf32> to vector<8xf32>
    %183 = vector.shape_cast %182 : vector<8xf32> to vector<8x1xf32>
    %cst_83 = arith.constant 3.100000e+01 : f32
    %184 = vector.broadcast %cst_83 : f32 to vector<8x1xf32>
    %185 = arith.divf %183, %184 : vector<8x1xf32>
    %186 = vector.broadcast %173 : vector<1x32xf32> to vector<8x32xf32>
    %187 = arith.mulf %186, %180 : vector<8x32xf32>
    %188 = math.sqrt %185 : vector<8x1xf32>
    %cst_84 = arith.constant 9.99999997E-7 : f32
    %189 = vector.broadcast %cst_84 : f32 to vector<8x1xf32>
    %190 = arith.addf %188, %189 : vector<8x1xf32>
    %191 = vector.broadcast %190 : vector<8x1xf32> to vector<8x32xf32>
    %192 = arith.divf %187, %191 : vector<8x32xf32>
    %193 = vector.broadcast %174 : vector<1x32xf32> to vector<8x32xf32>
    %194 = arith.addf %192, %193 : vector<8x32xf32>
    %c0_85 = arith.constant 0 : index
    %c0_86 = arith.constant 0 : index
    %195 = vector.load %arg14[%c0_85, %c0_86] : memref<32x32xbf16, #tpu.memory_space<vmem>>, vector<32x32xbf16>
    %c0_87 = arith.constant 0 : index
    %c0_88 = arith.constant 0 : index
    %196 = vector.load %arg15[%c0_87, %c0_88] : memref<1x32xf32, #tpu.memory_space<vmem>>, vector<1x32xf32>
    %197 = arith.truncf %194 : vector<8x32xf32> to vector<8x32xbf16>
    %cst_89 = arith.constant dense<0.000000e+00> : vector<8x32xf32>
    %198 = tpu.matmul %197, %195, %cst_89 {dimension_numbers = #tpu.dot_dimension_numbers<[1], [0], [0], [1], [0, 0, 1, 1], [], []>} : vector<8x32xbf16>, vector<32x32xbf16>, vector<8x32xf32> -> vector<8x32xf32>
    %199 = vector.broadcast %196 : vector<1x32xf32> to vector<8x32xf32>
    %200 = arith.addf %198, %199 : vector<8x32xf32>
    %c0_90 = arith.constant 0 : index
    %c0_91 = arith.constant 0 : index
    %201 = vector.load %arg16[%c0_90, %c0_91] : memref<32x64xbf16, #tpu.memory_space<vmem>>, vector<32x64xbf16>
    %c0_92 = arith.constant 0 : index
    %c0_93 = arith.constant 0 : index
    %202 = vector.load %arg17[%c0_92, %c0_93] : memref<1x64xf32, #tpu.memory_space<vmem>>, vector<1x64xf32>
    %cst_94 = arith.constant dense<0.000000e+00> : vector<16x64xf32>
    %203 = tpu.matmul %8, %201, %cst_94 {dimension_numbers = #tpu.dot_dimension_numbers<[1], [0], [0], [1], [0, 0, 1, 1], [], []>} : vector<16x32xbf16>, vector<32x64xbf16>, vector<16x64xf32> -> vector<16x64xf32>
    %204 = vector.broadcast %202 : vector<1x64xf32> to vector<16x64xf32>
    %205 = arith.addf %203, %204 : vector<16x64xf32>
    %206 = arith.truncf %205 : vector<16x64xf32> to vector<16x64xbf16>
    %207 = arith.truncf %200 : vector<8x32xf32> to vector<8x32xbf16>
    %208 = vector.extract_strided_slice %206 {offsets = [0, 0], sizes = [16, 32], strides = [1, 1]} : vector<16x64xbf16> to vector<16x32xbf16>
    %209 = vector.extract_strided_slice %206 {offsets = [0, 32], sizes = [16, 32], strides = [1, 1]} : vector<16x64xbf16> to vector<16x32xbf16>
    %210 = vector.extract_strided_slice %207 {offsets = [0, 0], sizes = [8, 8], strides = [1, 1]} : vector<8x32xbf16> to vector<8x8xbf16>
    %211 = vector.extract_strided_slice %208 {offsets = [0, 0], sizes = [16, 8], strides = [1, 1]} : vector<16x32xbf16> to vector<16x8xbf16>
    %cst_95 = arith.constant dense<0.000000e+00> : vector<8x16xf32>
    %212 = tpu.matmul %210, %211, %cst_95 {dimension_numbers = #tpu.dot_dimension_numbers<[1], [1], [0], [0], [0, 0, 1, 0], [], []>} : vector<8x8xbf16>, vector<16x8xbf16>, vector<8x16xf32> -> vector<8x16xf32>
    %213 = vector.broadcast %29 : vector<1x16xf32> to vector<8x16xf32>
    %214 = arith.addf %212, %213 : vector<8x16xf32>
    %cst_96 = arith.constant dense<0xFF800000> : vector<8xf32>
    %215 = vector.multi_reduction <maximumf>, %214, %cst_96 [1] : vector<8x16xf32> to vector<8xf32>
    %216 = vector.shape_cast %215 : vector<8xf32> to vector<8x1xf32>
    %217 = vector.broadcast %216 : vector<8x1xf32> to vector<8x16xf32>
    %218 = arith.subf %214, %217 : vector<8x16xf32>
    %219 = math.exp %218 : vector<8x16xf32>
    %cst_97 = arith.constant dense<0.000000e+00> : vector<8xf32>
    %220 = vector.multi_reduction <add>, %219, %cst_97 [1] : vector<8x16xf32> to vector<8xf32>
    %221 = vector.shape_cast %220 : vector<8xf32> to vector<8x1xf32>
    %222 = tpu.reciprocal %221 {approx = true} : vector<8x1xf32> -> vector<8x1xf32>
    %223 = vector.broadcast %222 : vector<8x1xf32> to vector<8x16xf32>
    %224 = arith.mulf %219, %223 : vector<8x16xf32>
    %225 = arith.truncf %224 : vector<8x16xf32> to vector<8x16xbf16>
    %226 = vector.extract_strided_slice %209 {offsets = [0, 0], sizes = [16, 8], strides = [1, 1]} : vector<16x32xbf16> to vector<16x8xbf16>
    %cst_98 = arith.constant dense<0.000000e+00> : vector<8x8xf32>
    %227 = tpu.matmul %225, %226, %cst_98 {dimension_numbers = #tpu.dot_dimension_numbers<[1], [0], [0], [1], [0, 0, 1, 1], [], []>} : vector<8x16xbf16>, vector<16x8xbf16>, vector<8x8xf32> -> vector<8x8xf32>
    %c0_99 = arith.constant 0 : index
    %c0_100 = arith.constant 0 : index
    %228 = vector.load %arg30[%c0_99, %c0_100] : memref<8x32xf32, #tpu.memory_space<vmem>>, vector<8x8xf32>
    tpu.vector_store %arg30[%c0_99, %c0_100], %227 {strides = array<i32>} : memref<8x32xf32, #tpu.memory_space<vmem>>, vector<8x8xf32>,
    %229 = vector.extract_strided_slice %207 {offsets = [0, 8], sizes = [8, 8], strides = [1, 1]} : vector<8x32xbf16> to vector<8x8xbf16>
    %230 = vector.extract_strided_slice %208 {offsets = [0, 8], sizes = [16, 8], strides = [1, 1]} : vector<16x32xbf16> to vector<16x8xbf16>
    %cst_101 = arith.constant dense<0.000000e+00> : vector<8x16xf32>
    %231 = tpu.matmul %229, %230, %cst_101 {dimension_numbers = #tpu.dot_dimension_numbers<[1], [1], [0], [0], [0, 0, 1, 0], [], []>} : vector<8x8xbf16>, vector<16x8xbf16>, vector<8x16xf32> -> vector<8x16xf32>
    %232 = vector.broadcast %29 : vector<1x16xf32> to vector<8x16xf32>
    %233 = arith.addf %231, %232 : vector<8x16xf32>
    %cst_102 = arith.constant dense<0xFF800000> : vector<8xf32>
    %234 = vector.multi_reduction <maximumf>, %233, %cst_102 [1] : vector<8x16xf32> to vector<8xf32>
    %235 = vector.shape_cast %234 : vector<8xf32> to vector<8x1xf32>
    %236 = vector.broadcast %235 : vector<8x1xf32> to vector<8x16xf32>
    %237 = arith.subf %233, %236 : vector<8x16xf32>
    %238 = math.exp %237 : vector<8x16xf32>
    %cst_103 = arith.constant dense<0.000000e+00> : vector<8xf32>
    %239 = vector.multi_reduction <add>, %238, %cst_103 [1] : vector<8x16xf32> to vector<8xf32>
    %240 = vector.shape_cast %239 : vector<8xf32> to vector<8x1xf32>
    %241 = tpu.reciprocal %240 {approx = true} : vector<8x1xf32> -> vector<8x1xf32>
    %242 = vector.broadcast %241 : vector<8x1xf32> to vector<8x16xf32>
    %243 = arith.mulf %238, %242 : vector<8x16xf32>
    %244 = arith.truncf %243 : vector<8x16xf32> to vector<8x16xbf16>
    %245 = vector.extract_strided_slice %209 {offsets = [0, 8], sizes = [16, 8], strides = [1, 1]} : vector<16x32xbf16> to vector<16x8xbf16>
    %cst_104 = arith.constant dense<0.000000e+00> : vector<8x8xf32>
    %246 = tpu.matmul %244, %245, %cst_104 {dimension_numbers = #tpu.dot_dimension_numbers<[1], [0], [0], [1], [0, 0, 1, 1], [], []>} : vector<8x16xbf16>, vector<16x8xbf16>, vector<8x8xf32> -> vector<8x8xf32>
    %c0_105 = arith.constant 0 : index
    %c8_106 = arith.constant 8 : index
    %247 = vector.load %arg30[%c0_105, %c8_106] : memref<8x32xf32, #tpu.memory_space<vmem>>, vector<8x8xf32>
    tpu.vector_store %arg30[%c0_105, %c8_106], %246 {strides = array<i32>} : memref<8x32xf32, #tpu.memory_space<vmem>>, vector<8x8xf32>,
    %248 = vector.extract_strided_slice %207 {offsets = [0, 16], sizes = [8, 8], strides = [1, 1]} : vector<8x32xbf16> to vector<8x8xbf16>
    %249 = vector.extract_strided_slice %208 {offsets = [0, 16], sizes = [16, 8], strides = [1, 1]} : vector<16x32xbf16> to vector<16x8xbf16>
    %cst_107 = arith.constant dense<0.000000e+00> : vector<8x16xf32>
    %250 = tpu.matmul %248, %249, %cst_107 {dimension_numbers = #tpu.dot_dimension_numbers<[1], [1], [0], [0], [0, 0, 1, 0], [], []>} : vector<8x8xbf16>, vector<16x8xbf16>, vector<8x16xf32> -> vector<8x16xf32>
    %251 = vector.broadcast %29 : vector<1x16xf32> to vector<8x16xf32>
    %252 = arith.addf %250, %251 : vector<8x16xf32>
    %cst_108 = arith.constant dense<0xFF800000> : vector<8xf32>
    %253 = vector.multi_reduction <maximumf>, %252, %cst_108 [1] : vector<8x16xf32> to vector<8xf32>
    %254 = vector.shape_cast %253 : vector<8xf32> to vector<8x1xf32>
    %255 = vector.broadcast %254 : vector<8x1xf32> to vector<8x16xf32>
    %256 = arith.subf %252, %255 : vector<8x16xf32>
    %257 = math.exp %256 : vector<8x16xf32>
    %cst_109 = arith.constant dense<0.000000e+00> : vector<8xf32>
    %258 = vector.multi_reduction <add>, %257, %cst_109 [1] : vector<8x16xf32> to vector<8xf32>
    %259 = vector.shape_cast %258 : vector<8xf32> to vector<8x1xf32>
    %260 = tpu.reciprocal %259 {approx = true} : vector<8x1xf32> -> vector<8x1xf32>
    %261 = vector.broadcast %260 : vector<8x1xf32> to vector<8x16xf32>
    %262 = arith.mulf %257, %261 : vector<8x16xf32>
    %263 = arith.truncf %262 : vector<8x16xf32> to vector<8x16xbf16>
    %264 = vector.extract_strided_slice %209 {offsets = [0, 16], sizes = [16, 8], strides = [1, 1]} : vector<16x32xbf16> to vector<16x8xbf16>
    %cst_110 = arith.constant dense<0.000000e+00> : vector<8x8xf32>
    %265 = tpu.matmul %263, %264, %cst_110 {dimension_numbers = #tpu.dot_dimension_numbers<[1], [0], [0], [1], [0, 0, 1, 1], [], []>} : vector<8x16xbf16>, vector<16x8xbf16>, vector<8x8xf32> -> vector<8x8xf32>
    %c0_111 = arith.constant 0 : index
    %c16_112 = arith.constant 16 : index
    %266 = vector.load %arg30[%c0_111, %c16_112] : memref<8x32xf32, #tpu.memory_space<vmem>>, vector<8x8xf32>
    tpu.vector_store %arg30[%c0_111, %c16_112], %265 {strides = array<i32>} : memref<8x32xf32, #tpu.memory_space<vmem>>, vector<8x8xf32>,
    %267 = vector.extract_strided_slice %207 {offsets = [0, 24], sizes = [8, 8], strides = [1, 1]} : vector<8x32xbf16> to vector<8x8xbf16>
    %268 = vector.extract_strided_slice %208 {offsets = [0, 24], sizes = [16, 8], strides = [1, 1]} : vector<16x32xbf16> to vector<16x8xbf16>
    %cst_113 = arith.constant dense<0.000000e+00> : vector<8x16xf32>
    %269 = tpu.matmul %267, %268, %cst_113 {dimension_numbers = #tpu.dot_dimension_numbers<[1], [1], [0], [0], [0, 0, 1, 0], [], []>} : vector<8x8xbf16>, vector<16x8xbf16>, vector<8x16xf32> -> vector<8x16xf32>
    %270 = vector.broadcast %29 : vector<1x16xf32> to vector<8x16xf32>
    %271 = arith.addf %269, %270 : vector<8x16xf32>
    %cst_114 = arith.constant dense<0xFF800000> : vector<8xf32>
    %272 = vector.multi_reduction <maximumf>, %271, %cst_114 [1] : vector<8x16xf32> to vector<8xf32>
    %273 = vector.shape_cast %272 : vector<8xf32> to vector<8x1xf32>
    %274 = vector.broadcast %273 : vector<8x1xf32> to vector<8x16xf32>
    %275 = arith.subf %271, %274 : vector<8x16xf32>
    %276 = math.exp %275 : vector<8x16xf32>
    %cst_115 = arith.constant dense<0.000000e+00> : vector<8xf32>
    %277 = vector.multi_reduction <add>, %276, %cst_115 [1] : vector<8x16xf32> to vector<8xf32>
    %278 = vector.shape_cast %277 : vector<8xf32> to vector<8x1xf32>
    %279 = tpu.reciprocal %278 {approx = true} : vector<8x1xf32> -> vector<8x1xf32>
    %280 = vector.broadcast %279 : vector<8x1xf32> to vector<8x16xf32>
    %281 = arith.mulf %276, %280 : vector<8x16xf32>
    %282 = arith.truncf %281 : vector<8x16xf32> to vector<8x16xbf16>
    %283 = vector.extract_strided_slice %209 {offsets = [0, 24], sizes = [16, 8], strides = [1, 1]} : vector<16x32xbf16> to vector<16x8xbf16>
    %cst_116 = arith.constant dense<0.000000e+00> : vector<8x8xf32>
    %284 = tpu.matmul %282, %283, %cst_116 {dimension_numbers = #tpu.dot_dimension_numbers<[1], [0], [0], [1], [0, 0, 1, 1], [], []>} : vector<8x16xbf16>, vector<16x8xbf16>, vector<8x8xf32> -> vector<8x8xf32>
    %c0_117 = arith.constant 0 : index
    %c24_118 = arith.constant 24 : index
    %285 = vector.load %arg30[%c0_117, %c24_118] : memref<8x32xf32, #tpu.memory_space<vmem>>, vector<8x8xf32>
    tpu.vector_store %arg30[%c0_117, %c24_118], %284 {strides = array<i32>} : memref<8x32xf32, #tpu.memory_space<vmem>>, vector<8x8xf32>,
    %c0_119 = arith.constant 0 : index
    %c0_120 = arith.constant 0 : index
    %286 = vector.load %arg30[%c0_119, %c0_120] : memref<8x32xf32, #tpu.memory_space<vmem>>, vector<8x32xf32>
    %c0_121 = arith.constant 0 : index
    %c0_122 = arith.constant 0 : index
    %287 = vector.load %arg18[%c0_121, %c0_122] : memref<32x32xbf16, #tpu.memory_space<vmem>>, vector<32x32xbf16>
    %c0_123 = arith.constant 0 : index
    %c0_124 = arith.constant 0 : index
    %288 = vector.load %arg19[%c0_123, %c0_124] : memref<1x32xf32, #tpu.memory_space<vmem>>, vector<1x32xf32>
    %289 = arith.truncf %286 : vector<8x32xf32> to vector<8x32xbf16>
    %cst_125 = arith.constant dense<0.000000e+00> : vector<8x32xf32>
    %290 = tpu.matmul %289, %287, %cst_125 {dimension_numbers = #tpu.dot_dimension_numbers<[1], [0], [0], [1], [0, 0, 1, 1], [], []>} : vector<8x32xbf16>, vector<32x32xbf16>, vector<8x32xf32> -> vector<8x32xf32>
    %291 = vector.broadcast %288 : vector<1x32xf32> to vector<8x32xf32>
    %292 = arith.addf %290, %291 : vector<8x32xf32>
    %293 = arith.addf %292, %172 : vector<8x32xf32>
    %c0_126 = arith.constant 0 : index
    %c0_127 = arith.constant 0 : index
    %294 = vector.load %arg20[%c0_126, %c0_127] : memref<1x32xf32, #tpu.memory_space<vmem>>, vector<1x32xf32>
    %c0_128 = arith.constant 0 : index
    %c0_129 = arith.constant 0 : index
    %295 = vector.load %arg21[%c0_128, %c0_129] : memref<1x32xf32, #tpu.memory_space<vmem>>, vector<1x32xf32>
    %cst_130 = arith.constant dense<0.000000e+00> : vector<8xf32>
    %296 = vector.multi_reduction <add>, %293, %cst_130 [1] : vector<8x32xf32> to vector<8xf32>
    %297 = vector.shape_cast %296 : vector<8xf32> to vector<8x1xf32>
    %cst_131 = arith.constant 3.200000e+01 : f32
    %298 = vector.broadcast %cst_131 : f32 to vector<8x1xf32>
    %299 = arith.divf %297, %298 : vector<8x1xf32>
    %300 = vector.broadcast %299 : vector<8x1xf32> to vector<8x32xf32>
    %301 = arith.subf %293, %300 : vector<8x32xf32>
    %302 = arith.mulf %301, %301 : vector<8x32xf32>
    %cst_132 = arith.constant dense<0.000000e+00> : vector<8xf32>
    %303 = vector.multi_reduction <add>, %302, %cst_132 [1] : vector<8x32xf32> to vector<8xf32>
    %304 = vector.shape_cast %303 : vector<8xf32> to vector<8x1xf32>
    %cst_133 = arith.constant 3.100000e+01 : f32
    %305 = vector.broadcast %cst_133 : f32 to vector<8x1xf32>
    %306 = arith.divf %304, %305 : vector<8x1xf32>
    %307 = vector.broadcast %294 : vector<1x32xf32> to vector<8x32xf32>
    %308 = arith.mulf %307, %301 : vector<8x32xf32>
    %309 = math.sqrt %306 : vector<8x1xf32>
    %cst_134 = arith.constant 9.99999997E-7 : f32
    %310 = vector.broadcast %cst_134 : f32 to vector<8x1xf32>
    %311 = arith.addf %309, %310 : vector<8x1xf32>
    %312 = vector.broadcast %311 : vector<8x1xf32> to vector<8x32xf32>
    %313 = arith.divf %308, %312 : vector<8x32xf32>
    %314 = vector.broadcast %295 : vector<1x32xf32> to vector<8x32xf32>
    %315 = arith.addf %313, %314 : vector<8x32xf32>
    %c0_135 = arith.constant 0 : index
    %c0_136 = arith.constant 0 : index
    %316 = vector.load %arg22[%c0_135, %c0_136] : memref<32x64xbf16, #tpu.memory_space<vmem>>, vector<32x64xbf16>
    %c0_137 = arith.constant 0 : index
    %c0_138 = arith.constant 0 : index
    %317 = vector.load %arg23[%c0_137, %c0_138] : memref<1x64xf32, #tpu.memory_space<vmem>>, vector<1x64xf32>
    %318 = arith.truncf %315 : vector<8x32xf32> to vector<8x32xbf16>
    %cst_139 = arith.constant dense<0.000000e+00> : vector<8x64xf32>
    %319 = tpu.matmul %318, %316, %cst_139 {dimension_numbers = #tpu.dot_dimension_numbers<[1], [0], [0], [1], [0, 0, 1, 1], [], []>} : vector<8x32xbf16>, vector<32x64xbf16>, vector<8x64xf32> -> vector<8x64xf32>
    %320 = vector.broadcast %317 : vector<1x64xf32> to vector<8x64xf32>
    %321 = arith.addf %319, %320 : vector<8x64xf32>
    %cst_140 = arith.constant 0.000000e+00 : f32
    %322 = vector.broadcast %cst_140 : f32 to vector<8x64xf32>
    %323 = arith.maximumf %321, %322 : vector<8x64xf32>
    %c0_141 = arith.constant 0 : index
    %c0_142 = arith.constant 0 : index
    %324 = vector.load %arg24[%c0_141, %c0_142] : memref<64x32xbf16, #tpu.memory_space<vmem>>, vector<64x32xbf16>
    %c0_143 = arith.constant 0 : index
    %c0_144 = arith.constant 0 : index
    %325 = vector.load %arg25[%c0_143, %c0_144] : memref<1x32xf32, #tpu.memory_space<vmem>>, vector<1x32xf32>
    %326 = arith.truncf %323 : vector<8x64xf32> to vector<8x64xbf16>
    %cst_145 = arith.constant dense<0.000000e+00> : vector<8x32xf32>
    %327 = tpu.matmul %326, %324, %cst_145 {dimension_numbers = #tpu.dot_dimension_numbers<[1], [0], [0], [1], [0, 0, 1, 1], [], []>} : vector<8x64xbf16>, vector<64x32xbf16>, vector<8x32xf32> -> vector<8x32xf32>
    %328 = vector.broadcast %325 : vector<1x32xf32> to vector<8x32xf32>
    %329 = arith.addf %327, %328 : vector<8x32xf32>
    %330 = arith.addf %329, %293 : vector<8x32xf32>
    %c0_146 = arith.constant 0 : index
    %c0_147 = arith.constant 0 : index
    %c0_148 = arith.constant 0 : index
    %331 = vector.load %arg28[%c0_146, %c0_147, %c0_148] : memref<1x8x32xf32, #tpu.memory_space<vmem>>, vector<1x8x32xf32>
    %332 = vector.shape_cast %331 : vector<1x8x32xf32> to vector<8x32xf32>
    %333 = vector.shape_cast %330 : vector<8x32xf32> to vector<1x8x32xf32>
    tpu.vector_store %arg28[%c0_146, %c0_147, %c0_148], %333 {strides = array<i32>} : memref<1x8x32xf32, #tpu.memory_space<vmem>>, vector<1x8x32xf32>,
    return
  }
  func.func @transform_0(%arg0: i32, %arg1: i32) -> (i32, i32, i32) {
    %c0_i32 = arith.constant 0 : i32
    %c0_i32_0 = arith.constant 0 : i32
    %c0_i32_1 = arith.constant 0 : i32
    return %arg0, %c0_i32, %c0_i32_0 : i32, i32, i32
  }
  func.func @transform_1(%arg0: i32, %arg1: i32) -> (i32, i32, i32) {
    %c0_i32 = arith.constant 0 : i32
    %c0_i32_0 = arith.constant 0 : i32
    %c0_i32_1 = arith.constant 0 : i32
    return %arg0, %c0_i32, %c0_i32_0 : i32, i32, i32
  }
  func.func @transform_2(%arg0: i32, %arg1: i32) -> (i32, i32, i32) {
    %c0_i32 = arith.constant 0 : i32
    %c0_i32_0 = arith.constant 0 : i32
    %c0_i32_1 = arith.constant 0 : i32
    return %arg0, %c0_i32, %c0_i32_0 : i32, i32, i32
  }
  func.func @transform_3(%arg0: i32, %arg1: i32) -> (i32, i32, i32) {
    %c0_i32 = arith.constant 0 : i32
    %c0_i32_0 = arith.constant 0 : i32
    %c0_i32_1 = arith.constant 0 : i32
    return %arg0, %c0_i32, %c0_i32_0 : i32, i32, i32
  }
  func.func @transform_4(%arg0: i32, %arg1: i32) -> (i32, i32) {
    %c0_i32 = arith.constant 0 : i32
    %c0_i32_0 = arith.constant 0 : i32
    %c0_i32_1 = arith.constant 0 : i32
    return %c0_i32, %c0_i32_0 : i32, i32
  }
  func.func @transform_5(%arg0: i32, %arg1: i32) -> (i32, i32) {
    %c0_i32 = arith.constant 0 : i32
    %c0_i32_0 = arith.constant 0 : i32
    %c0_i32_1 = arith.constant 0 : i32
    return %c0_i32, %c0_i32_0 : i32, i32
  }
  func.func @transform_6(%arg0: i32, %arg1: i32) -> (i32, i32) {
    %c0_i32 = arith.constant 0 : i32
    %c0_i32_0 = arith.constant 0 : i32
    %c0_i32_1 = arith.constant 0 : i32
    return %c0_i32, %c0_i32_0 : i32, i32
  }
  func.func @transform_7(%arg0: i32, %arg1: i32) -> (i32, i32) {
    %c0_i32 = arith.constant 0 : i32
    %c0_i32_0 = arith.constant 0 : i32
    %c0_i32_1 = arith.constant 0 : i32
    return %c0_i32, %c0_i32_0 : i32, i32
  }
  func.func @transform_8(%arg0: i32, %arg1: i32) -> (i32, i32) {
    %c0_i32 = arith.constant 0 : i32
    %c0_i32_0 = arith.constant 0 : i32
    %c0_i32_1 = arith.constant 0 : i32
    return %c0_i32, %c0_i32_0 : i32, i32
  }
  func.func @transform_9(%arg0: i32, %arg1: i32) -> (i32, i32) {
    %c0_i32 = arith.constant 0 : i32
    %c0_i32_0 = arith.constant 0 : i32
    %c0_i32_1 = arith.constant 0 : i32
    return %c0_i32, %c0_i32_0 : i32, i32
  }
  func.func @transform_10(%arg0: i32, %arg1: i32) -> (i32, i32) {
    %c0_i32 = arith.constant 0 : i32
    %c0_i32_0 = arith.constant 0 : i32
    %c0_i32_1 = arith.constant 0 : i32
    return %c0_i32, %c0_i32_0 : i32, i32
  }
  func.func @transform_11(%arg0: i32, %arg1: i32) -> (i32, i32) {
    %c0_i32 = arith.constant 0 : i32
    %c0_i32_0 = arith.constant 0 : i32
    %c0_i32_1 = arith.constant 0 : i32
    return %c0_i32, %c0_i32_0 : i32, i32
  }
  func.func @transform_12(%arg0: i32, %arg1: i32) -> (i32, i32) {
    %c0_i32 = arith.constant 0 : i32
    %c0_i32_0 = arith.constant 0 : i32
    %c0_i32_1 = arith.constant 0 : i32
    return %c0_i32, %c0_i32_0 : i32, i32
  }
  func.func @transform_13(%arg0: i32, %arg1: i32) -> (i32, i32) {
    %c0_i32 = arith.constant 0 : i32
    %c0_i32_0 = arith.constant 0 : i32
    %c0_i32_1 = arith.constant 0 : i32
    return %c0_i32, %c0_i32_0 : i32, i32
  }
  func.func @transform_14(%arg0: i32, %arg1: i32) -> (i32, i32) {
    %c0_i32 = arith.constant 0 : i32
    %c0_i32_0 = arith.constant 0 : i32
    %c0_i32_1 = arith.constant 0 : i32
    return %c0_i32, %c0_i32_0 : i32, i32
  }
  func.func @transform_15(%arg0: i32, %arg1: i32) -> (i32, i32) {
    %c0_i32 = arith.constant 0 : i32
    %c0_i32_0 = arith.constant 0 : i32
    %c0_i32_1 = arith.constant 0 : i32
    return %c0_i32, %c0_i32_0 : i32, i32
  }
  func.func @transform_16(%arg0: i32, %arg1: i32) -> (i32, i32) {
    %c0_i32 = arith.constant 0 : i32
    %c0_i32_0 = arith.constant 0 : i32
    %c0_i32_1 = arith.constant 0 : i32
    return %c0_i32, %c0_i32_0 : i32, i32
  }
  func.func @transform_17(%arg0: i32, %arg1: i32) -> (i32, i32) {
    %c0_i32 = arith.constant 0 : i32
    %c0_i32_0 = arith.constant 0 : i32
    %c0_i32_1 = arith.constant 0 : i32
    return %c0_i32, %c0_i32_0 : i32, i32
  }
  func.func @transform_18(%arg0: i32, %arg1: i32) -> (i32, i32) {
    %c0_i32 = arith.constant 0 : i32
    %c0_i32_0 = arith.constant 0 : i32
    %c0_i32_1 = arith.constant 0 : i32
    return %c0_i32, %c0_i32_0 : i32, i32
  }
  func.func @transform_19(%arg0: i32, %arg1: i32) -> (i32, i32) {
    %c0_i32 = arith.constant 0 : i32
    %c0_i32_0 = arith.constant 0 : i32
    %c0_i32_1 = arith.constant 0 : i32
    return %c0_i32, %c0_i32_0 : i32, i32
  }
  func.func @transform_20(%arg0: i32, %arg1: i32) -> (i32, i32) {
    %c0_i32 = arith.constant 0 : i32
    %c0_i32_0 = arith.constant 0 : i32
    %c0_i32_1 = arith.constant 0 : i32
    return %c0_i32, %c0_i32_0 : i32, i32
  }
  func.func @transform_21(%arg0: i32, %arg1: i32) -> (i32, i32) {
    %c0_i32 = arith.constant 0 : i32
    %c0_i32_0 = arith.constant 0 : i32
    %c0_i32_1 = arith.constant 0 : i32
    return %c0_i32, %c0_i32_0 : i32, i32
  }
  func.func @transform_22(%arg0: i32, %arg1: i32) -> (i32, i32) {
    %c0_i32 = arith.constant 0 : i32
    %c0_i32_0 = arith.constant 0 : i32
    %c0_i32_1 = arith.constant 0 : i32
    return %c0_i32, %c0_i32_0 : i32, i32
  }
  func.func @transform_23(%arg0: i32, %arg1: i32) -> (i32, i32) {
    %c0_i32 = arith.constant 0 : i32
    %c0_i32_0 = arith.constant 0 : i32
    %c0_i32_1 = arith.constant 0 : i32
    return %c0_i32, %c0_i32_0 : i32, i32
  }
  func.func @transform_24(%arg0: i32, %arg1: i32) -> (i32, i32) {
    %c0_i32 = arith.constant 0 : i32
    %c0_i32_0 = arith.constant 0 : i32
    %c0_i32_1 = arith.constant 0 : i32
    return %c0_i32, %c0_i32_0 : i32, i32
  }
  func.func @transform_25(%arg0: i32, %arg1: i32) -> (i32, i32) {
    %c0_i32 = arith.constant 0 : i32
    %c0_i32_0 = arith.constant 0 : i32
    %c0_i32_1 = arith.constant 0 : i32
    return %c0_i32, %c0_i32_0 : i32, i32
  }
  func.func @transform_26(%arg0: i32, %arg1: i32) -> (i32, i32, i32) {
    %c0_i32 = arith.constant 0 : i32
    %c0_i32_0 = arith.constant 0 : i32
    return %arg0, %arg1, %c0_i32 : i32, i32, i32
  }
  func.func @transform_27(%arg0: i32, %arg1: i32) -> (i32, i32, i32) {
    %c0_i32 = arith.constant 0 : i32
    %c0_i32_0 = arith.constant 0 : i32
    return %arg0, %arg1, %c0_i32 : i32, i32, i32
  }
}

module attributes {stable_mosaic.version = 11 : i64} {
  func.func @_decoder_layer_kernel(%arg0: i32, %arg1: i32, %arg2: memref<1x16x32xf32, #tpu.memory_space<vmem>>, %arg3: memref<1x16x32xbf16, #tpu.memory_space<vmem>>, %arg4: memref<1x1x16xf32, #tpu.memory_space<vmem>>, %arg5: memref<1x1x16xf32, #tpu.memory_space<vmem>>, %arg6: memref<1x32xf32, #tpu.memory_space<vmem>>, %arg7: memref<1x32xf32, #tpu.memory_space<vmem>>, %arg8: memref<32x96xbf16, #tpu.memory_space<vmem>>, %arg9: memref<1x96xf32, #tpu.memory_space<vmem>>, %arg10: memref<32x32xbf16, #tpu.memory_space<vmem>>, %arg11: memref<1x32xf32, #tpu.memory_space<vmem>>, %arg12: memref<1x32xf32, #tpu.memory_space<vmem>>, %arg13: memref<1x32xf32, #tpu.memory_space<vmem>>, %arg14: memref<32x32xbf16, #tpu.memory_space<vmem>>, %arg15: memref<1x32xf32, #tpu.memory_space<vmem>>, %arg16: memref<32x64xbf16, #tpu.memory_space<vmem>>, %arg17: memref<1x64xf32, #tpu.memory_space<vmem>>, %arg18: memref<32x32xbf16, #tpu.memory_space<vmem>>, %arg19: memref<1x32xf32, #tpu.memory_space<vmem>>, %arg20: memref<1x32xf32, #tpu.memory_space<vmem>>, %arg21: memref<1x32xf32, #tpu.memory_space<vmem>>, %arg22: memref<32x64xbf16, #tpu.memory_space<vmem>>, %arg23: memref<1x64xf32, #tpu.memory_space<vmem>>, %arg24: memref<64x32xbf16, #tpu.memory_space<vmem>>, %arg25: memref<1x32xf32, #tpu.memory_space<vmem>>, %arg26: memref<1x32xf32, #tpu.memory_space<vmem>>, %arg27: memref<1x32xf32, #tpu.memory_space<vmem>>, %arg28: memref<1x8x32xf32, #tpu.memory_space<vmem>>, %arg29: memref<1x8x16xf32, #tpu.memory_space<vmem>>, %arg30: memref<1x8x32xf32, #tpu.memory_space<vmem>>, %arg31: memref<8x32xf32, #tpu.memory_space<vmem>>) attributes {dimension_semantics = [#tpu.dimension_semantics<parallel>, #tpu.dimension_semantics<parallel>], iteration_bounds = array<i64: 2, 2>, scalar_prefetch = 0 : i64, scratch_operands = 1 : i64, tpu.core_type = #tpu.core_type<tc>, window_params = [{transform_indices = @transform_0, window_bounds = array<i64: 1, 16, 32>}, {transform_indices = @transform_1, window_bounds = array<i64: 1, 16, 32>}, {transform_indices = @transform_2, window_bounds = array<i64: 1, 1, 16>}, {transform_indices = @transform_3, window_bounds = array<i64: 1, 1, 16>}, {pipeline_mode = #tpu.pipeline_mode<synchronous>, transform_indices = @transform_4, window_bounds = array<i64: 1, 32>}, {pipeline_mode = #tpu.pipeline_mode<synchronous>, transform_indices = @transform_5, window_bounds = array<i64: 1, 32>}, {pipeline_mode = #tpu.pipeline_mode<synchronous>, transform_indices = @transform_6, window_bounds = array<i64: 32, 96>}, {pipeline_mode = #tpu.pipeline_mode<synchronous>, transform_indices = @transform_7, window_bounds = array<i64: 1, 96>}, {pipeline_mode = #tpu.pipeline_mode<synchronous>, transform_indices = @transform_8, window_bounds = array<i64: 32, 32>}, {pipeline_mode = #tpu.pipeline_mode<synchronous>, transform_indices = @transform_9, window_bounds = array<i64: 1, 32>}, {pipeline_mode = #tpu.pipeline_mode<synchronous>, transform_indices = @transform_10, window_bounds = array<i64: 1, 32>}, {pipeline_mode = #tpu.pipeline_mode<synchronous>, transform_indices = @transform_11, window_bounds = array<i64: 1, 32>}, {pipeline_mode = #tpu.pipeline_mode<synchronous>, transform_indices = @transform_12, window_bounds = array<i64: 32, 32>}, {pipeline_mode = #tpu.pipeline_mode<synchronous>, transform_indices = @transform_13, window_bounds = array<i64: 1, 32>}, {pipeline_mode = #tpu.pipeline_mode<synchronous>, transform_indices = @transform_14, window_bounds = array<i64: 32, 64>}, {pipeline_mode = #tpu.pipeline_mode<synchronous>, transform_indices = @transform_15, window_bounds = array<i64: 1, 64>}, {pipeline_mode = #tpu.pipeline_mode<synchronous>, transform_indices = @transform_16, window_bounds = array<i64: 32, 32>}, {pipeline_mode = #tpu.pipeline_mode<synchronous>, transform_indices = @transform_17, window_bounds = array<i64: 1, 32>}, {pipeline_mode = #tpu.pipeline_mode<synchronous>, transform_indices = @transform_18, window_bounds = array<i64: 1, 32>}, {pipeline_mode = #tpu.pipeline_mode<synchronous>, transform_indices = @transform_19, window_bounds = array<i64: 1, 32>}, {pipeline_mode = #tpu.pipeline_mode<synchronous>, transform_indices = @transform_20, window_bounds = array<i64: 32, 64>}, {pipeline_mode = #tpu.pipeline_mode<synchronous>, transform_indices = @transform_21, window_bounds = array<i64: 1, 64>}, {pipeline_mode = #tpu.pipeline_mode<synchronous>, transform_indices = @transform_22, window_bounds = array<i64: 64, 32>}, {pipeline_mode = #tpu.pipeline_mode<synchronous>, transform_indices = @transform_23, window_bounds = array<i64: 1, 32>}, {pipeline_mode = #tpu.pipeline_mode<synchronous>, transform_indices = @transform_24, window_bounds = array<i64: 1, 32>}, {pipeline_mode = #tpu.pipeline_mode<synchronous>, transform_indices = @transform_25, window_bounds = array<i64: 1, 32>}, {transform_indices = @transform_26, window_bounds = array<i64: 1, 8, 32>}, {transform_indices = @transform_27, window_bounds = array<i64: 1, 8, 16>}, {transform_indices = @transform_28, window_bounds = array<i64: 1, 8, 32>}]} {
    %c8_i32 = arith.constant 8 : i32
    %0 = arith.muli %arg1, %c8_i32 : i32
    %1 = tpu.assume_multiple %0, 8 : i32
    %c0 = arith.constant 0 : index
    %c0_0 = arith.constant 0 : index
    %c0_1 = arith.constant 0 : index
    %2 = vector.load %arg2[%c0, %c0_0, %c0_1] : memref<1x16x32xf32, #tpu.memory_space<vmem>>, vector<1x16x32xf32>
    %3 = vector.shape_cast %2 : vector<1x16x32xf32> to vector<16x32xf32>
    %c0_2 = arith.constant 0 : index
    %4 = arith.index_cast %1 : i32 to index
    %c0_3 = arith.constant 0 : index
    %5 = vector.load %arg2[%c0_2, %4, %c0_3] : memref<1x16x32xf32, #tpu.memory_space<vmem>>, vector<1x8x32xf32>
    %6 = vector.shape_cast %5 : vector<1x8x32xf32> to vector<8x32xf32>
    %c0_4 = arith.constant 0 : index
    %c0_5 = arith.constant 0 : index
    %c0_6 = arith.constant 0 : index
    %7 = vector.load %arg3[%c0_4, %c0_5, %c0_6] : memref<1x16x32xbf16, #tpu.memory_space<vmem>>, vector<1x16x32xbf16>
    %8 = vector.shape_cast %7 : vector<1x16x32xbf16> to vector<16x32xbf16>
    %9 = tpu.iota {dimensions = array<i32: 0>} : vector<8x16xi32>
    %10 = vector.broadcast %1 : i32 to vector<8x16xi32>
    %11 = arith.addi %10, %9 : vector<8x16xi32>
    %12 = tpu.iota {dimensions = array<i32: 1>} : vector<8x16xi32>
    %13 = arith.cmpi sgt, %12, %11 : vector<8x16xi32>
    %c0_7 = arith.constant 0 : index
    %c0_8 = arith.constant 0 : index
    %c0_9 = arith.constant 0 : index
    %14 = vector.load %arg4[%c0_7, %c0_8, %c0_9] : memref<1x1x16xf32, #tpu.memory_space<vmem>>, vector<1x1x16xf32>
    %15 = vector.shape_cast %14 : vector<1x1x16xf32> to vector<1x16xf32>
    %cst = arith.constant 0.000000e+00 : f32
    %16 = vector.broadcast %cst : f32 to vector<1x16xf32>
    %17 = arith.cmpf ogt, %15, %16 : vector<1x16xf32>
    %18 = vector.broadcast %17 : vector<1x16xi1> to vector<8x16xi1>
    %19 = arith.ori %13, %18 : vector<8x16xi1>
    %cst_10 = arith.constant -9.99999984E+17 : f32
    %cst_11 = arith.constant 0.000000e+00 : f32
    %20 = vector.broadcast %cst_10 : f32 to vector<8x16xf32>
    %21 = vector.broadcast %cst_11 : f32 to vector<8x16xf32>
    %22 = arith.select %19, %20, %21 : vector<8x16xi1>, vector<8x16xf32>
    %c0_12 = arith.constant 0 : index
    %c0_13 = arith.constant 0 : index
    %c0_14 = arith.constant 0 : index
    %23 = vector.load %arg5[%c0_12, %c0_13, %c0_14] : memref<1x1x16xf32, #tpu.memory_space<vmem>>, vector<1x1x16xf32>
    %24 = vector.shape_cast %23 : vector<1x1x16xf32> to vector<1x16xf32>
    %cst_15 = arith.constant 0.000000e+00 : f32
    %25 = vector.broadcast %cst_15 : f32 to vector<1x16xf32>
    %26 = arith.cmpf ogt, %24, %25 : vector<1x16xf32>
    %cst_16 = arith.constant -9.99999984E+17 : f32
    %cst_17 = arith.constant 0.000000e+00 : f32
    %27 = vector.broadcast %cst_16 : f32 to vector<1x16xf32>
    %28 = vector.broadcast %cst_17 : f32 to vector<1x16xf32>
    %29 = arith.select %26, %27, %28 : vector<1x16xi1>, vector<1x16xf32>
    %c0_18 = arith.constant 0 : index
    %c0_19 = arith.constant 0 : index
    %30 = vector.load %arg6[%c0_18, %c0_19] : memref<1x32xf32, #tpu.memory_space<vmem>>, vector<1x32xf32>
    %c0_20 = arith.constant 0 : index
    %c0_21 = arith.constant 0 : index
    %31 = vector.load %arg7[%c0_20, %c0_21] : memref<1x32xf32, #tpu.memory_space<vmem>>, vector<1x32xf32>
    %cst_22 = arith.constant dense<0.000000e+00> : vector<8xf32>
    %32 = vector.multi_reduction <add>, %6, %cst_22 [1] : vector<8x32xf32> to vector<8xf32>
    %33 = vector.shape_cast %32 : vector<8xf32> to vector<8x1xf32>
    %cst_23 = arith.constant 3.200000e+01 : f32
    %34 = vector.broadcast %cst_23 : f32 to vector<8x1xf32>
    %35 = arith.divf %33, %34 : vector<8x1xf32>
    %36 = vector.broadcast %35 : vector<8x1xf32> to vector<8x32xf32>
    %37 = arith.subf %6, %36 : vector<8x32xf32>
    %38 = arith.mulf %37, %37 : vector<8x32xf32>
    %cst_24 = arith.constant dense<0.000000e+00> : vector<8xf32>
    %39 = vector.multi_reduction <add>, %38, %cst_24 [1] : vector<8x32xf32> to vector<8xf32>
    %40 = vector.shape_cast %39 : vector<8xf32> to vector<8x1xf32>
    %cst_25 = arith.constant 3.100000e+01 : f32
    %41 = vector.broadcast %cst_25 : f32 to vector<8x1xf32>
    %42 = arith.divf %40, %41 : vector<8x1xf32>
    %43 = vector.broadcast %30 : vector<1x32xf32> to vector<8x32xf32>
    %44 = arith.mulf %43, %37 : vector<8x32xf32>
    %45 = math.sqrt %42 : vector<8x1xf32>
    %cst_26 = arith.constant 9.99999997E-7 : f32
    %46 = vector.broadcast %cst_26 : f32 to vector<8x1xf32>
    %47 = arith.addf %45, %46 : vector<8x1xf32>
    %48 = vector.broadcast %47 : vector<8x1xf32> to vector<8x32xf32>
    %49 = arith.divf %44, %48 : vector<8x32xf32>
    %50 = vector.broadcast %31 : vector<1x32xf32> to vector<8x32xf32>
    %51 = arith.addf %49, %50 : vector<8x32xf32>
    %c0_27 = arith.constant 0 : index
    %c0_28 = arith.constant 0 : index
    %c0_29 = arith.constant 0 : index
    %52 = vector.load %arg30[%c0_27, %c0_28, %c0_29] : memref<1x8x32xf32, #tpu.memory_space<vmem>>, vector<1x8x32xf32>
    %53 = vector.shape_cast %52 : vector<1x8x32xf32> to vector<8x32xf32>
    %54 = vector.shape_cast %51 : vector<8x32xf32> to vector<1x8x32xf32>
    tpu.vector_store %arg30[%c0_27, %c0_28, %c0_29], %54 {strides = array<i32>} : memref<1x8x32xf32, #tpu.memory_space<vmem>>, vector<1x8x32xf32>,
    %c0_30 = arith.constant 0 : index
    %c0_31 = arith.constant 0 : index
    %55 = vector.load %arg6[%c0_30, %c0_31] : memref<1x32xf32, #tpu.memory_space<vmem>>, vector<1x32xf32>
    %c0_32 = arith.constant 0 : index
    %c0_33 = arith.constant 0 : index
    %56 = vector.load %arg7[%c0_32, %c0_33] : memref<1x32xf32, #tpu.memory_space<vmem>>, vector<1x32xf32>
    %cst_34 = arith.constant dense<0.000000e+00> : vector<16xf32>
    %57 = vector.multi_reduction <add>, %3, %cst_34 [1] : vector<16x32xf32> to vector<16xf32>
    %58 = vector.shape_cast %57 : vector<16xf32> to vector<16x1xf32>
    %cst_35 = arith.constant 3.200000e+01 : f32
    %59 = vector.broadcast %cst_35 : f32 to vector<16x1xf32>
    %60 = arith.divf %58, %59 : vector<16x1xf32>
    %61 = vector.broadcast %60 : vector<16x1xf32> to vector<16x32xf32>
    %62 = arith.subf %3, %61 : vector<16x32xf32>
    %63 = arith.mulf %62, %62 : vector<16x32xf32>
    %cst_36 = arith.constant dense<0.000000e+00> : vector<16xf32>
    %64 = vector.multi_reduction <add>, %63, %cst_36 [1] : vector<16x32xf32> to vector<16xf32>
    %65 = vector.shape_cast %64 : vector<16xf32> to vector<16x1xf32>
    %cst_37 = arith.constant 3.100000e+01 : f32
    %66 = vector.broadcast %cst_37 : f32 to vector<16x1xf32>
    %67 = arith.divf %65, %66 : vector<16x1xf32>
    %68 = vector.broadcast %55 : vector<1x32xf32> to vector<16x32xf32>
    %69 = arith.mulf %68, %62 : vector<16x32xf32>
    %70 = math.sqrt %67 : vector<16x1xf32>
    %cst_38 = arith.constant 9.99999997E-7 : f32
    %71 = vector.broadcast %cst_38 : f32 to vector<16x1xf32>
    %72 = arith.addf %70, %71 : vector<16x1xf32>
    %73 = vector.broadcast %72 : vector<16x1xf32> to vector<16x32xf32>
    %74 = arith.divf %69, %73 : vector<16x32xf32>
    %75 = vector.broadcast %56 : vector<1x32xf32> to vector<16x32xf32>
    %76 = arith.addf %74, %75 : vector<16x32xf32>
    %c0_39 = arith.constant 0 : index
    %c0_40 = arith.constant 0 : index
    %77 = vector.load %arg8[%c0_39, %c0_40] : memref<32x96xbf16, #tpu.memory_space<vmem>>, vector<32x32xbf16>
    %c0_41 = arith.constant 0 : index
    %c0_42 = arith.constant 0 : index
    %78 = vector.load %arg9[%c0_41, %c0_42] : memref<1x96xf32, #tpu.memory_space<vmem>>, vector<1x32xf32>
    %79 = arith.truncf %51 : vector<8x32xf32> to vector<8x32xbf16>
    %cst_43 = arith.constant dense<0.000000e+00> : vector<8x32xf32>
    %80 = tpu.matmul %79, %77, %cst_43 {dimension_numbers = #tpu.dot_dimension_numbers<[1], [0], [0], [1], [0, 0, 1, 1], [], []>} : vector<8x32xbf16>, vector<32x32xbf16>, vector<8x32xf32> -> vector<8x32xf32>
    %81 = vector.broadcast %78 : vector<1x32xf32> to vector<8x32xf32>
    %82 = arith.addf %80, %81 : vector<8x32xf32>
    %c0_44 = arith.constant 0 : index
    %c32 = arith.constant 32 : index
    %83 = vector.load %arg8[%c0_44, %c32] : memref<32x96xbf16, #tpu.memory_space<vmem>>, vector<32x64xbf16>
    %c0_45 = arith.constant 0 : index
    %c32_46 = arith.constant 32 : index
    %84 = vector.load %arg9[%c0_45, %c32_46] : memref<1x96xf32, #tpu.memory_space<vmem>>, vector<1x64xf32>
    %85 = arith.truncf %76 : vector<16x32xf32> to vector<16x32xbf16>
    %cst_47 = arith.constant dense<0.000000e+00> : vector<16x64xf32>
    %86 = tpu.matmul %85, %83, %cst_47 {dimension_numbers = #tpu.dot_dimension_numbers<[1], [0], [0], [1], [0, 0, 1, 1], [], []>} : vector<16x32xbf16>, vector<32x64xbf16>, vector<16x64xf32> -> vector<16x64xf32>
    %87 = vector.broadcast %84 : vector<1x64xf32> to vector<16x64xf32>
    %88 = arith.addf %86, %87 : vector<16x64xf32>
    %89 = arith.truncf %88 : vector<16x64xf32> to vector<16x64xbf16>
    %90 = arith.truncf %82 : vector<8x32xf32> to vector<8x32xbf16>
    %91 = vector.extract_strided_slice %89 {offsets = [0, 0], sizes = [16, 32], strides = [1, 1]} : vector<16x64xbf16> to vector<16x32xbf16>
    %92 = vector.extract_strided_slice %89 {offsets = [0, 32], sizes = [16, 32], strides = [1, 1]} : vector<16x64xbf16> to vector<16x32xbf16>
    %93 = vector.extract_strided_slice %90 {offsets = [0, 0], sizes = [8, 8], strides = [1, 1]} : vector<8x32xbf16> to vector<8x8xbf16>
    %94 = vector.extract_strided_slice %91 {offsets = [0, 0], sizes = [16, 8], strides = [1, 1]} : vector<16x32xbf16> to vector<16x8xbf16>
    %cst_48 = arith.constant dense<0.000000e+00> : vector<8x16xf32>
    %95 = tpu.matmul %93, %94, %cst_48 {dimension_numbers = #tpu.dot_dimension_numbers<[1], [1], [0], [0], [0, 0, 1, 0], [], []>} : vector<8x8xbf16>, vector<16x8xbf16>, vector<8x16xf32> -> vector<8x16xf32>
    %96 = arith.addf %95, %22 : vector<8x16xf32>
    %cst_49 = arith.constant dense<0xFF800000> : vector<8xf32>
    %97 = vector.multi_reduction <maximumf>, %96, %cst_49 [1] : vector<8x16xf32> to vector<8xf32>
    %98 = vector.shape_cast %97 : vector<8xf32> to vector<8x1xf32>
    %99 = vector.broadcast %98 : vector<8x1xf32> to vector<8x16xf32>
    %100 = arith.subf %96, %99 : vector<8x16xf32>
    %101 = math.exp %100 : vector<8x16xf32>
    %cst_50 = arith.constant dense<0.000000e+00> : vector<8xf32>
    %102 = vector.multi_reduction <add>, %101, %cst_50 [1] : vector<8x16xf32> to vector<8xf32>
    %103 = vector.shape_cast %102 : vector<8xf32> to vector<8x1xf32>
    %104 = tpu.reciprocal %103 {approx = true} : vector<8x1xf32> -> vector<8x1xf32>
    %105 = vector.broadcast %104 : vector<8x1xf32> to vector<8x16xf32>
    %106 = arith.mulf %101, %105 : vector<8x16xf32>
    %107 = arith.truncf %106 : vector<8x16xf32> to vector<8x16xbf16>
    %108 = vector.extract_strided_slice %92 {offsets = [0, 0], sizes = [16, 8], strides = [1, 1]} : vector<16x32xbf16> to vector<16x8xbf16>
    %cst_51 = arith.constant dense<0.000000e+00> : vector<8x8xf32>
    %109 = tpu.matmul %107, %108, %cst_51 {dimension_numbers = #tpu.dot_dimension_numbers<[1], [0], [0], [1], [0, 0, 1, 1], [], []>} : vector<8x16xbf16>, vector<16x8xbf16>, vector<8x8xf32> -> vector<8x8xf32>
    %c0_52 = arith.constant 0 : index
    %c0_53 = arith.constant 0 : index
    %110 = vector.load %arg31[%c0_52, %c0_53] : memref<8x32xf32, #tpu.memory_space<vmem>>, vector<8x8xf32>
    tpu.vector_store %arg31[%c0_52, %c0_53], %109 {strides = array<i32>} : memref<8x32xf32, #tpu.memory_space<vmem>>, vector<8x8xf32>,
    %111 = vector.extract_strided_slice %90 {offsets = [0, 8], sizes = [8, 8], strides = [1, 1]} : vector<8x32xbf16> to vector<8x8xbf16>
    %112 = vector.extract_strided_slice %91 {offsets = [0, 8], sizes = [16, 8], strides = [1, 1]} : vector<16x32xbf16> to vector<16x8xbf16>
    %cst_54 = arith.constant dense<0.000000e+00> : vector<8x16xf32>
    %113 = tpu.matmul %111, %112, %cst_54 {dimension_numbers = #tpu.dot_dimension_numbers<[1], [1], [0], [0], [0, 0, 1, 0], [], []>} : vector<8x8xbf16>, vector<16x8xbf16>, vector<8x16xf32> -> vector<8x16xf32>
    %114 = arith.addf %113, %22 : vector<8x16xf32>
    %cst_55 = arith.constant dense<0xFF800000> : vector<8xf32>
    %115 = vector.multi_reduction <maximumf>, %114, %cst_55 [1] : vector<8x16xf32> to vector<8xf32>
    %116 = vector.shape_cast %115 : vector<8xf32> to vector<8x1xf32>
    %117 = vector.broadcast %116 : vector<8x1xf32> to vector<8x16xf32>
    %118 = arith.subf %114, %117 : vector<8x16xf32>
    %119 = math.exp %118 : vector<8x16xf32>
    %cst_56 = arith.constant dense<0.000000e+00> : vector<8xf32>
    %120 = vector.multi_reduction <add>, %119, %cst_56 [1] : vector<8x16xf32> to vector<8xf32>
    %121 = vector.shape_cast %120 : vector<8xf32> to vector<8x1xf32>
    %122 = tpu.reciprocal %121 {approx = true} : vector<8x1xf32> -> vector<8x1xf32>
    %123 = vector.broadcast %122 : vector<8x1xf32> to vector<8x16xf32>
    %124 = arith.mulf %119, %123 : vector<8x16xf32>
    %125 = arith.truncf %124 : vector<8x16xf32> to vector<8x16xbf16>
    %126 = vector.extract_strided_slice %92 {offsets = [0, 8], sizes = [16, 8], strides = [1, 1]} : vector<16x32xbf16> to vector<16x8xbf16>
    %cst_57 = arith.constant dense<0.000000e+00> : vector<8x8xf32>
    %127 = tpu.matmul %125, %126, %cst_57 {dimension_numbers = #tpu.dot_dimension_numbers<[1], [0], [0], [1], [0, 0, 1, 1], [], []>} : vector<8x16xbf16>, vector<16x8xbf16>, vector<8x8xf32> -> vector<8x8xf32>
    %c0_58 = arith.constant 0 : index
    %c8 = arith.constant 8 : index
    %128 = vector.load %arg31[%c0_58, %c8] : memref<8x32xf32, #tpu.memory_space<vmem>>, vector<8x8xf32>
    tpu.vector_store %arg31[%c0_58, %c8], %127 {strides = array<i32>} : memref<8x32xf32, #tpu.memory_space<vmem>>, vector<8x8xf32>,
    %129 = vector.extract_strided_slice %90 {offsets = [0, 16], sizes = [8, 8], strides = [1, 1]} : vector<8x32xbf16> to vector<8x8xbf16>
    %130 = vector.extract_strided_slice %91 {offsets = [0, 16], sizes = [16, 8], strides = [1, 1]} : vector<16x32xbf16> to vector<16x8xbf16>
    %cst_59 = arith.constant dense<0.000000e+00> : vector<8x16xf32>
    %131 = tpu.matmul %129, %130, %cst_59 {dimension_numbers = #tpu.dot_dimension_numbers<[1], [1], [0], [0], [0, 0, 1, 0], [], []>} : vector<8x8xbf16>, vector<16x8xbf16>, vector<8x16xf32> -> vector<8x16xf32>
    %132 = arith.addf %131, %22 : vector<8x16xf32>
    %cst_60 = arith.constant dense<0xFF800000> : vector<8xf32>
    %133 = vector.multi_reduction <maximumf>, %132, %cst_60 [1] : vector<8x16xf32> to vector<8xf32>
    %134 = vector.shape_cast %133 : vector<8xf32> to vector<8x1xf32>
    %135 = vector.broadcast %134 : vector<8x1xf32> to vector<8x16xf32>
    %136 = arith.subf %132, %135 : vector<8x16xf32>
    %137 = math.exp %136 : vector<8x16xf32>
    %cst_61 = arith.constant dense<0.000000e+00> : vector<8xf32>
    %138 = vector.multi_reduction <add>, %137, %cst_61 [1] : vector<8x16xf32> to vector<8xf32>
    %139 = vector.shape_cast %138 : vector<8xf32> to vector<8x1xf32>
    %140 = tpu.reciprocal %139 {approx = true} : vector<8x1xf32> -> vector<8x1xf32>
    %141 = vector.broadcast %140 : vector<8x1xf32> to vector<8x16xf32>
    %142 = arith.mulf %137, %141 : vector<8x16xf32>
    %143 = arith.truncf %142 : vector<8x16xf32> to vector<8x16xbf16>
    %144 = vector.extract_strided_slice %92 {offsets = [0, 16], sizes = [16, 8], strides = [1, 1]} : vector<16x32xbf16> to vector<16x8xbf16>
    %cst_62 = arith.constant dense<0.000000e+00> : vector<8x8xf32>
    %145 = tpu.matmul %143, %144, %cst_62 {dimension_numbers = #tpu.dot_dimension_numbers<[1], [0], [0], [1], [0, 0, 1, 1], [], []>} : vector<8x16xbf16>, vector<16x8xbf16>, vector<8x8xf32> -> vector<8x8xf32>
    %c0_63 = arith.constant 0 : index
    %c16 = arith.constant 16 : index
    %146 = vector.load %arg31[%c0_63, %c16] : memref<8x32xf32, #tpu.memory_space<vmem>>, vector<8x8xf32>
    tpu.vector_store %arg31[%c0_63, %c16], %145 {strides = array<i32>} : memref<8x32xf32, #tpu.memory_space<vmem>>, vector<8x8xf32>,
    %147 = vector.extract_strided_slice %90 {offsets = [0, 24], sizes = [8, 8], strides = [1, 1]} : vector<8x32xbf16> to vector<8x8xbf16>
    %148 = vector.extract_strided_slice %91 {offsets = [0, 24], sizes = [16, 8], strides = [1, 1]} : vector<16x32xbf16> to vector<16x8xbf16>
    %cst_64 = arith.constant dense<0.000000e+00> : vector<8x16xf32>
    %149 = tpu.matmul %147, %148, %cst_64 {dimension_numbers = #tpu.dot_dimension_numbers<[1], [1], [0], [0], [0, 0, 1, 0], [], []>} : vector<8x8xbf16>, vector<16x8xbf16>, vector<8x16xf32> -> vector<8x16xf32>
    %150 = arith.addf %149, %22 : vector<8x16xf32>
    %cst_65 = arith.constant dense<0xFF800000> : vector<8xf32>
    %151 = vector.multi_reduction <maximumf>, %150, %cst_65 [1] : vector<8x16xf32> to vector<8xf32>
    %152 = vector.shape_cast %151 : vector<8xf32> to vector<8x1xf32>
    %153 = vector.broadcast %152 : vector<8x1xf32> to vector<8x16xf32>
    %154 = arith.subf %150, %153 : vector<8x16xf32>
    %155 = math.exp %154 : vector<8x16xf32>
    %cst_66 = arith.constant dense<0.000000e+00> : vector<8xf32>
    %156 = vector.multi_reduction <add>, %155, %cst_66 [1] : vector<8x16xf32> to vector<8xf32>
    %157 = vector.shape_cast %156 : vector<8xf32> to vector<8x1xf32>
    %158 = tpu.reciprocal %157 {approx = true} : vector<8x1xf32> -> vector<8x1xf32>
    %159 = vector.broadcast %158 : vector<8x1xf32> to vector<8x16xf32>
    %160 = arith.mulf %155, %159 : vector<8x16xf32>
    %161 = arith.truncf %160 : vector<8x16xf32> to vector<8x16xbf16>
    %162 = vector.extract_strided_slice %92 {offsets = [0, 24], sizes = [16, 8], strides = [1, 1]} : vector<16x32xbf16> to vector<16x8xbf16>
    %cst_67 = arith.constant dense<0.000000e+00> : vector<8x8xf32>
    %163 = tpu.matmul %161, %162, %cst_67 {dimension_numbers = #tpu.dot_dimension_numbers<[1], [0], [0], [1], [0, 0, 1, 1], [], []>} : vector<8x16xbf16>, vector<16x8xbf16>, vector<8x8xf32> -> vector<8x8xf32>
    %c0_68 = arith.constant 0 : index
    %c24 = arith.constant 24 : index
    %164 = vector.load %arg31[%c0_68, %c24] : memref<8x32xf32, #tpu.memory_space<vmem>>, vector<8x8xf32>
    tpu.vector_store %arg31[%c0_68, %c24], %163 {strides = array<i32>} : memref<8x32xf32, #tpu.memory_space<vmem>>, vector<8x8xf32>,
    %c0_69 = arith.constant 0 : index
    %c0_70 = arith.constant 0 : index
    %165 = vector.load %arg31[%c0_69, %c0_70] : memref<8x32xf32, #tpu.memory_space<vmem>>, vector<8x32xf32>
    %c0_71 = arith.constant 0 : index
    %c0_72 = arith.constant 0 : index
    %166 = vector.load %arg10[%c0_71, %c0_72] : memref<32x32xbf16, #tpu.memory_space<vmem>>, vector<32x32xbf16>
    %c0_73 = arith.constant 0 : index
    %c0_74 = arith.constant 0 : index
    %167 = vector.load %arg11[%c0_73, %c0_74] : memref<1x32xf32, #tpu.memory_space<vmem>>, vector<1x32xf32>
    %168 = arith.truncf %165 : vector<8x32xf32> to vector<8x32xbf16>
    %cst_75 = arith.constant dense<0.000000e+00> : vector<8x32xf32>
    %169 = tpu.matmul %168, %166, %cst_75 {dimension_numbers = #tpu.dot_dimension_numbers<[1], [0], [0], [1], [0, 0, 1, 1], [], []>} : vector<8x32xbf16>, vector<32x32xbf16>, vector<8x32xf32> -> vector<8x32xf32>
    %170 = vector.broadcast %167 : vector<1x32xf32> to vector<8x32xf32>
    %171 = arith.addf %169, %170 : vector<8x32xf32>
    %172 = arith.addf %171, %6 : vector<8x32xf32>
    %c0_76 = arith.constant 0 : index
    %c0_77 = arith.constant 0 : index
    %173 = vector.load %arg12[%c0_76, %c0_77] : memref<1x32xf32, #tpu.memory_space<vmem>>, vector<1x32xf32>
    %c0_78 = arith.constant 0 : index
    %c0_79 = arith.constant 0 : index
    %174 = vector.load %arg13[%c0_78, %c0_79] : memref<1x32xf32, #tpu.memory_space<vmem>>, vector<1x32xf32>
    %cst_80 = arith.constant dense<0.000000e+00> : vector<8xf32>
    %175 = vector.multi_reduction <add>, %172, %cst_80 [1] : vector<8x32xf32> to vector<8xf32>
    %176 = vector.shape_cast %175 : vector<8xf32> to vector<8x1xf32>
    %cst_81 = arith.constant 3.200000e+01 : f32
    %177 = vector.broadcast %cst_81 : f32 to vector<8x1xf32>
    %178 = arith.divf %176, %177 : vector<8x1xf32>
    %179 = vector.broadcast %178 : vector<8x1xf32> to vector<8x32xf32>
    %180 = arith.subf %172, %179 : vector<8x32xf32>
    %181 = arith.mulf %180, %180 : vector<8x32xf32>
    %cst_82 = arith.constant dense<0.000000e+00> : vector<8xf32>
    %182 = vector.multi_reduction <add>, %181, %cst_82 [1] : vector<8x32xf32> to vector<8xf32>
    %183 = vector.shape_cast %182 : vector<8xf32> to vector<8x1xf32>
    %cst_83 = arith.constant 3.100000e+01 : f32
    %184 = vector.broadcast %cst_83 : f32 to vector<8x1xf32>
    %185 = arith.divf %183, %184 : vector<8x1xf32>
    %186 = vector.broadcast %173 : vector<1x32xf32> to vector<8x32xf32>
    %187 = arith.mulf %186, %180 : vector<8x32xf32>
    %188 = math.sqrt %185 : vector<8x1xf32>
    %cst_84 = arith.constant 9.99999997E-7 : f32
    %189 = vector.broadcast %cst_84 : f32 to vector<8x1xf32>
    %190 = arith.addf %188, %189 : vector<8x1xf32>
    %191 = vector.broadcast %190 : vector<8x1xf32> to vector<8x32xf32>
    %192 = arith.divf %187, %191 : vector<8x32xf32>
    %193 = vector.broadcast %174 : vector<1x32xf32> to vector<8x32xf32>
    %194 = arith.addf %192, %193 : vector<8x32xf32>
    %c0_85 = arith.constant 0 : index
    %c0_86 = arith.constant 0 : index
    %195 = vector.load %arg14[%c0_85, %c0_86] : memref<32x32xbf16, #tpu.memory_space<vmem>>, vector<32x32xbf16>
    %c0_87 = arith.constant 0 : index
    %c0_88 = arith.constant 0 : index
    %196 = vector.load %arg15[%c0_87, %c0_88] : memref<1x32xf32, #tpu.memory_space<vmem>>, vector<1x32xf32>
    %197 = arith.truncf %194 : vector<8x32xf32> to vector<8x32xbf16>
    %cst_89 = arith.constant dense<0.000000e+00> : vector<8x32xf32>
    %198 = tpu.matmul %197, %195, %cst_89 {dimension_numbers = #tpu.dot_dimension_numbers<[1], [0], [0], [1], [0, 0, 1, 1], [], []>} : vector<8x32xbf16>, vector<32x32xbf16>, vector<8x32xf32> -> vector<8x32xf32>
    %199 = vector.broadcast %196 : vector<1x32xf32> to vector<8x32xf32>
    %200 = arith.addf %198, %199 : vector<8x32xf32>
    %c0_90 = arith.constant 0 : index
    %c0_91 = arith.constant 0 : index
    %201 = vector.load %arg16[%c0_90, %c0_91] : memref<32x64xbf16, #tpu.memory_space<vmem>>, vector<32x64xbf16>
    %c0_92 = arith.constant 0 : index
    %c0_93 = arith.constant 0 : index
    %202 = vector.load %arg17[%c0_92, %c0_93] : memref<1x64xf32, #tpu.memory_space<vmem>>, vector<1x64xf32>
    %cst_94 = arith.constant dense<0.000000e+00> : vector<16x64xf32>
    %203 = tpu.matmul %8, %201, %cst_94 {dimension_numbers = #tpu.dot_dimension_numbers<[1], [0], [0], [1], [0, 0, 1, 1], [], []>} : vector<16x32xbf16>, vector<32x64xbf16>, vector<16x64xf32> -> vector<16x64xf32>
    %204 = vector.broadcast %202 : vector<1x64xf32> to vector<16x64xf32>
    %205 = arith.addf %203, %204 : vector<16x64xf32>
    %206 = arith.truncf %205 : vector<16x64xf32> to vector<16x64xbf16>
    %207 = arith.truncf %200 : vector<8x32xf32> to vector<8x32xbf16>
    %208 = vector.extract_strided_slice %206 {offsets = [0, 0], sizes = [16, 32], strides = [1, 1]} : vector<16x64xbf16> to vector<16x32xbf16>
    %209 = vector.extract_strided_slice %206 {offsets = [0, 32], sizes = [16, 32], strides = [1, 1]} : vector<16x64xbf16> to vector<16x32xbf16>
    %210 = vector.extract_strided_slice %207 {offsets = [0, 0], sizes = [8, 8], strides = [1, 1]} : vector<8x32xbf16> to vector<8x8xbf16>
    %211 = vector.extract_strided_slice %208 {offsets = [0, 0], sizes = [16, 8], strides = [1, 1]} : vector<16x32xbf16> to vector<16x8xbf16>
    %cst_95 = arith.constant dense<0.000000e+00> : vector<8x16xf32>
    %212 = tpu.matmul %210, %211, %cst_95 {dimension_numbers = #tpu.dot_dimension_numbers<[1], [1], [0], [0], [0, 0, 1, 0], [], []>} : vector<8x8xbf16>, vector<16x8xbf16>, vector<8x16xf32> -> vector<8x16xf32>
    %213 = vector.broadcast %29 : vector<1x16xf32> to vector<8x16xf32>
    %214 = arith.addf %212, %213 : vector<8x16xf32>
    %cst_96 = arith.constant dense<0xFF800000> : vector<8xf32>
    %215 = vector.multi_reduction <maximumf>, %214, %cst_96 [1] : vector<8x16xf32> to vector<8xf32>
    %216 = vector.shape_cast %215 : vector<8xf32> to vector<8x1xf32>
    %217 = vector.broadcast %216 : vector<8x1xf32> to vector<8x16xf32>
    %218 = arith.subf %214, %217 : vector<8x16xf32>
    %219 = math.exp %218 : vector<8x16xf32>
    %cst_97 = arith.constant dense<0.000000e+00> : vector<8xf32>
    %220 = vector.multi_reduction <add>, %219, %cst_97 [1] : vector<8x16xf32> to vector<8xf32>
    %221 = vector.shape_cast %220 : vector<8xf32> to vector<8x1xf32>
    %222 = tpu.reciprocal %221 {approx = true} : vector<8x1xf32> -> vector<8x1xf32>
    %223 = vector.broadcast %222 : vector<8x1xf32> to vector<8x16xf32>
    %224 = arith.mulf %219, %223 : vector<8x16xf32>
    %225 = arith.truncf %224 : vector<8x16xf32> to vector<8x16xbf16>
    %226 = vector.extract_strided_slice %209 {offsets = [0, 0], sizes = [16, 8], strides = [1, 1]} : vector<16x32xbf16> to vector<16x8xbf16>
    %cst_98 = arith.constant dense<0.000000e+00> : vector<8x8xf32>
    %227 = tpu.matmul %225, %226, %cst_98 {dimension_numbers = #tpu.dot_dimension_numbers<[1], [0], [0], [1], [0, 0, 1, 1], [], []>} : vector<8x16xbf16>, vector<16x8xbf16>, vector<8x8xf32> -> vector<8x8xf32>
    %c0_99 = arith.constant 0 : index
    %c0_100 = arith.constant 0 : index
    %228 = vector.load %arg31[%c0_99, %c0_100] : memref<8x32xf32, #tpu.memory_space<vmem>>, vector<8x8xf32>
    tpu.vector_store %arg31[%c0_99, %c0_100], %227 {strides = array<i32>} : memref<8x32xf32, #tpu.memory_space<vmem>>, vector<8x8xf32>,
    %229 = vector.extract_strided_slice %207 {offsets = [0, 8], sizes = [8, 8], strides = [1, 1]} : vector<8x32xbf16> to vector<8x8xbf16>
    %230 = vector.extract_strided_slice %208 {offsets = [0, 8], sizes = [16, 8], strides = [1, 1]} : vector<16x32xbf16> to vector<16x8xbf16>
    %cst_101 = arith.constant dense<0.000000e+00> : vector<8x16xf32>
    %231 = tpu.matmul %229, %230, %cst_101 {dimension_numbers = #tpu.dot_dimension_numbers<[1], [1], [0], [0], [0, 0, 1, 0], [], []>} : vector<8x8xbf16>, vector<16x8xbf16>, vector<8x16xf32> -> vector<8x16xf32>
    %232 = vector.broadcast %29 : vector<1x16xf32> to vector<8x16xf32>
    %233 = arith.addf %231, %232 : vector<8x16xf32>
    %cst_102 = arith.constant dense<0xFF800000> : vector<8xf32>
    %234 = vector.multi_reduction <maximumf>, %233, %cst_102 [1] : vector<8x16xf32> to vector<8xf32>
    %235 = vector.shape_cast %234 : vector<8xf32> to vector<8x1xf32>
    %236 = vector.broadcast %235 : vector<8x1xf32> to vector<8x16xf32>
    %237 = arith.subf %233, %236 : vector<8x16xf32>
    %238 = math.exp %237 : vector<8x16xf32>
    %cst_103 = arith.constant dense<0.000000e+00> : vector<8xf32>
    %239 = vector.multi_reduction <add>, %238, %cst_103 [1] : vector<8x16xf32> to vector<8xf32>
    %240 = vector.shape_cast %239 : vector<8xf32> to vector<8x1xf32>
    %241 = tpu.reciprocal %240 {approx = true} : vector<8x1xf32> -> vector<8x1xf32>
    %242 = vector.broadcast %241 : vector<8x1xf32> to vector<8x16xf32>
    %243 = arith.mulf %238, %242 : vector<8x16xf32>
    %244 = arith.truncf %243 : vector<8x16xf32> to vector<8x16xbf16>
    %245 = vector.extract_strided_slice %209 {offsets = [0, 8], sizes = [16, 8], strides = [1, 1]} : vector<16x32xbf16> to vector<16x8xbf16>
    %cst_104 = arith.constant dense<0.000000e+00> : vector<8x8xf32>
    %246 = tpu.matmul %244, %245, %cst_104 {dimension_numbers = #tpu.dot_dimension_numbers<[1], [0], [0], [1], [0, 0, 1, 1], [], []>} : vector<8x16xbf16>, vector<16x8xbf16>, vector<8x8xf32> -> vector<8x8xf32>
    %c0_105 = arith.constant 0 : index
    %c8_106 = arith.constant 8 : index
    %247 = vector.load %arg31[%c0_105, %c8_106] : memref<8x32xf32, #tpu.memory_space<vmem>>, vector<8x8xf32>
    tpu.vector_store %arg31[%c0_105, %c8_106], %246 {strides = array<i32>} : memref<8x32xf32, #tpu.memory_space<vmem>>, vector<8x8xf32>,
    %248 = vector.extract_strided_slice %207 {offsets = [0, 16], sizes = [8, 8], strides = [1, 1]} : vector<8x32xbf16> to vector<8x8xbf16>
    %249 = vector.extract_strided_slice %208 {offsets = [0, 16], sizes = [16, 8], strides = [1, 1]} : vector<16x32xbf16> to vector<16x8xbf16>
    %cst_107 = arith.constant dense<0.000000e+00> : vector<8x16xf32>
    %250 = tpu.matmul %248, %249, %cst_107 {dimension_numbers = #tpu.dot_dimension_numbers<[1], [1], [0], [0], [0, 0, 1, 0], [], []>} : vector<8x8xbf16>, vector<16x8xbf16>, vector<8x16xf32> -> vector<8x16xf32>
    %251 = vector.broadcast %29 : vector<1x16xf32> to vector<8x16xf32>
    %252 = arith.addf %250, %251 : vector<8x16xf32>
    %cst_108 = arith.constant dense<0xFF800000> : vector<8xf32>
    %253 = vector.multi_reduction <maximumf>, %252, %cst_108 [1] : vector<8x16xf32> to vector<8xf32>
    %254 = vector.shape_cast %253 : vector<8xf32> to vector<8x1xf32>
    %255 = vector.broadcast %254 : vector<8x1xf32> to vector<8x16xf32>
    %256 = arith.subf %252, %255 : vector<8x16xf32>
    %257 = math.exp %256 : vector<8x16xf32>
    %cst_109 = arith.constant dense<0.000000e+00> : vector<8xf32>
    %258 = vector.multi_reduction <add>, %257, %cst_109 [1] : vector<8x16xf32> to vector<8xf32>
    %259 = vector.shape_cast %258 : vector<8xf32> to vector<8x1xf32>
    %260 = tpu.reciprocal %259 {approx = true} : vector<8x1xf32> -> vector<8x1xf32>
    %261 = vector.broadcast %260 : vector<8x1xf32> to vector<8x16xf32>
    %262 = arith.mulf %257, %261 : vector<8x16xf32>
    %263 = arith.truncf %262 : vector<8x16xf32> to vector<8x16xbf16>
    %264 = vector.extract_strided_slice %209 {offsets = [0, 16], sizes = [16, 8], strides = [1, 1]} : vector<16x32xbf16> to vector<16x8xbf16>
    %cst_110 = arith.constant dense<0.000000e+00> : vector<8x8xf32>
    %265 = tpu.matmul %263, %264, %cst_110 {dimension_numbers = #tpu.dot_dimension_numbers<[1], [0], [0], [1], [0, 0, 1, 1], [], []>} : vector<8x16xbf16>, vector<16x8xbf16>, vector<8x8xf32> -> vector<8x8xf32>
    %c0_111 = arith.constant 0 : index
    %c16_112 = arith.constant 16 : index
    %266 = vector.load %arg31[%c0_111, %c16_112] : memref<8x32xf32, #tpu.memory_space<vmem>>, vector<8x8xf32>
    tpu.vector_store %arg31[%c0_111, %c16_112], %265 {strides = array<i32>} : memref<8x32xf32, #tpu.memory_space<vmem>>, vector<8x8xf32>,
    %267 = vector.extract_strided_slice %207 {offsets = [0, 24], sizes = [8, 8], strides = [1, 1]} : vector<8x32xbf16> to vector<8x8xbf16>
    %268 = vector.extract_strided_slice %208 {offsets = [0, 24], sizes = [16, 8], strides = [1, 1]} : vector<16x32xbf16> to vector<16x8xbf16>
    %cst_113 = arith.constant dense<0.000000e+00> : vector<8x16xf32>
    %269 = tpu.matmul %267, %268, %cst_113 {dimension_numbers = #tpu.dot_dimension_numbers<[1], [1], [0], [0], [0, 0, 1, 0], [], []>} : vector<8x8xbf16>, vector<16x8xbf16>, vector<8x16xf32> -> vector<8x16xf32>
    %270 = vector.broadcast %29 : vector<1x16xf32> to vector<8x16xf32>
    %271 = arith.addf %269, %270 : vector<8x16xf32>
    %cst_114 = arith.constant dense<0xFF800000> : vector<8xf32>
    %272 = vector.multi_reduction <maximumf>, %271, %cst_114 [1] : vector<8x16xf32> to vector<8xf32>
    %273 = vector.shape_cast %272 : vector<8xf32> to vector<8x1xf32>
    %274 = vector.broadcast %273 : vector<8x1xf32> to vector<8x16xf32>
    %275 = arith.subf %271, %274 : vector<8x16xf32>
    %276 = math.exp %275 : vector<8x16xf32>
    %cst_115 = arith.constant dense<0.000000e+00> : vector<8xf32>
    %277 = vector.multi_reduction <add>, %276, %cst_115 [1] : vector<8x16xf32> to vector<8xf32>
    %278 = vector.shape_cast %277 : vector<8xf32> to vector<8x1xf32>
    %279 = tpu.reciprocal %278 {approx = true} : vector<8x1xf32> -> vector<8x1xf32>
    %280 = vector.broadcast %279 : vector<8x1xf32> to vector<8x16xf32>
    %281 = arith.mulf %276, %280 : vector<8x16xf32>
    %282 = arith.truncf %281 : vector<8x16xf32> to vector<8x16xbf16>
    %283 = vector.extract_strided_slice %209 {offsets = [0, 24], sizes = [16, 8], strides = [1, 1]} : vector<16x32xbf16> to vector<16x8xbf16>
    %cst_116 = arith.constant dense<0.000000e+00> : vector<8x8xf32>
    %284 = tpu.matmul %282, %283, %cst_116 {dimension_numbers = #tpu.dot_dimension_numbers<[1], [0], [0], [1], [0, 0, 1, 1], [], []>} : vector<8x16xbf16>, vector<16x8xbf16>, vector<8x8xf32> -> vector<8x8xf32>
    %c0_117 = arith.constant 0 : index
    %c24_118 = arith.constant 24 : index
    %285 = vector.load %arg31[%c0_117, %c24_118] : memref<8x32xf32, #tpu.memory_space<vmem>>, vector<8x8xf32>
    tpu.vector_store %arg31[%c0_117, %c24_118], %284 {strides = array<i32>} : memref<8x32xf32, #tpu.memory_space<vmem>>, vector<8x8xf32>,
    %c0_119 = arith.constant 0 : index
    %c0_120 = arith.constant 0 : index
    %286 = vector.load %arg31[%c0_119, %c0_120] : memref<8x32xf32, #tpu.memory_space<vmem>>, vector<8x32xf32>
    %c0_121 = arith.constant 0 : index
    %c0_122 = arith.constant 0 : index
    %287 = vector.load %arg18[%c0_121, %c0_122] : memref<32x32xbf16, #tpu.memory_space<vmem>>, vector<32x32xbf16>
    %c0_123 = arith.constant 0 : index
    %c0_124 = arith.constant 0 : index
    %288 = vector.load %arg19[%c0_123, %c0_124] : memref<1x32xf32, #tpu.memory_space<vmem>>, vector<1x32xf32>
    %289 = arith.truncf %286 : vector<8x32xf32> to vector<8x32xbf16>
    %cst_125 = arith.constant dense<0.000000e+00> : vector<8x32xf32>
    %290 = tpu.matmul %289, %287, %cst_125 {dimension_numbers = #tpu.dot_dimension_numbers<[1], [0], [0], [1], [0, 0, 1, 1], [], []>} : vector<8x32xbf16>, vector<32x32xbf16>, vector<8x32xf32> -> vector<8x32xf32>
    %291 = vector.broadcast %288 : vector<1x32xf32> to vector<8x32xf32>
    %292 = arith.addf %290, %291 : vector<8x32xf32>
    %293 = arith.addf %292, %172 : vector<8x32xf32>
    %c0_126 = arith.constant 0 : index
    %c0_127 = arith.constant 0 : index
    %c0_128 = arith.constant 0 : index
    %294 = vector.load %arg29[%c0_126, %c0_127, %c0_128] : memref<1x8x16xf32, #tpu.memory_space<vmem>>, vector<1x8x16xf32>
    %295 = vector.shape_cast %294 : vector<1x8x16xf32> to vector<8x16xf32>
    %296 = vector.shape_cast %224 : vector<8x16xf32> to vector<1x8x16xf32>
    tpu.vector_store %arg29[%c0_126, %c0_127, %c0_128], %296 {strides = array<i32>} : memref<1x8x16xf32, #tpu.memory_space<vmem>>, vector<1x8x16xf32>,
    %c0_129 = arith.constant 0 : index
    %c0_130 = arith.constant 0 : index
    %297 = vector.load %arg20[%c0_129, %c0_130] : memref<1x32xf32, #tpu.memory_space<vmem>>, vector<1x32xf32>
    %c0_131 = arith.constant 0 : index
    %c0_132 = arith.constant 0 : index
    %298 = vector.load %arg21[%c0_131, %c0_132] : memref<1x32xf32, #tpu.memory_space<vmem>>, vector<1x32xf32>
    %cst_133 = arith.constant dense<0.000000e+00> : vector<8xf32>
    %299 = vector.multi_reduction <add>, %293, %cst_133 [1] : vector<8x32xf32> to vector<8xf32>
    %300 = vector.shape_cast %299 : vector<8xf32> to vector<8x1xf32>
    %cst_134 = arith.constant 3.200000e+01 : f32
    %301 = vector.broadcast %cst_134 : f32 to vector<8x1xf32>
    %302 = arith.divf %300, %301 : vector<8x1xf32>
    %303 = vector.broadcast %302 : vector<8x1xf32> to vector<8x32xf32>
    %304 = arith.subf %293, %303 : vector<8x32xf32>
    %305 = arith.mulf %304, %304 : vector<8x32xf32>
    %cst_135 = arith.constant dense<0.000000e+00> : vector<8xf32>
    %306 = vector.multi_reduction <add>, %305, %cst_135 [1] : vector<8x32xf32> to vector<8xf32>
    %307 = vector.shape_cast %306 : vector<8xf32> to vector<8x1xf32>
    %cst_136 = arith.constant 3.100000e+01 : f32
    %308 = vector.broadcast %cst_136 : f32 to vector<8x1xf32>
    %309 = arith.divf %307, %308 : vector<8x1xf32>
    %310 = vector.broadcast %297 : vector<1x32xf32> to vector<8x32xf32>
    %311 = arith.mulf %310, %304 : vector<8x32xf32>
    %312 = math.sqrt %309 : vector<8x1xf32>
    %cst_137 = arith.constant 9.99999997E-7 : f32
    %313 = vector.broadcast %cst_137 : f32 to vector<8x1xf32>
    %314 = arith.addf %312, %313 : vector<8x1xf32>
    %315 = vector.broadcast %314 : vector<8x1xf32> to vector<8x32xf32>
    %316 = arith.divf %311, %315 : vector<8x32xf32>
    %317 = vector.broadcast %298 : vector<1x32xf32> to vector<8x32xf32>
    %318 = arith.addf %316, %317 : vector<8x32xf32>
    %c0_138 = arith.constant 0 : index
    %c0_139 = arith.constant 0 : index
    %319 = vector.load %arg22[%c0_138, %c0_139] : memref<32x64xbf16, #tpu.memory_space<vmem>>, vector<32x64xbf16>
    %c0_140 = arith.constant 0 : index
    %c0_141 = arith.constant 0 : index
    %320 = vector.load %arg23[%c0_140, %c0_141] : memref<1x64xf32, #tpu.memory_space<vmem>>, vector<1x64xf32>
    %321 = arith.truncf %318 : vector<8x32xf32> to vector<8x32xbf16>
    %cst_142 = arith.constant dense<0.000000e+00> : vector<8x64xf32>
    %322 = tpu.matmul %321, %319, %cst_142 {dimension_numbers = #tpu.dot_dimension_numbers<[1], [0], [0], [1], [0, 0, 1, 1], [], []>} : vector<8x32xbf16>, vector<32x64xbf16>, vector<8x64xf32> -> vector<8x64xf32>
    %323 = vector.broadcast %320 : vector<1x64xf32> to vector<8x64xf32>
    %324 = arith.addf %322, %323 : vector<8x64xf32>
    %cst_143 = arith.constant 0.000000e+00 : f32
    %325 = vector.broadcast %cst_143 : f32 to vector<8x64xf32>
    %326 = arith.maximumf %324, %325 : vector<8x64xf32>
    %c0_144 = arith.constant 0 : index
    %c0_145 = arith.constant 0 : index
    %327 = vector.load %arg24[%c0_144, %c0_145] : memref<64x32xbf16, #tpu.memory_space<vmem>>, vector<64x32xbf16>
    %c0_146 = arith.constant 0 : index
    %c0_147 = arith.constant 0 : index
    %328 = vector.load %arg25[%c0_146, %c0_147] : memref<1x32xf32, #tpu.memory_space<vmem>>, vector<1x32xf32>
    %329 = arith.truncf %326 : vector<8x64xf32> to vector<8x64xbf16>
    %cst_148 = arith.constant dense<0.000000e+00> : vector<8x32xf32>
    %330 = tpu.matmul %329, %327, %cst_148 {dimension_numbers = #tpu.dot_dimension_numbers<[1], [0], [0], [1], [0, 0, 1, 1], [], []>} : vector<8x64xbf16>, vector<64x32xbf16>, vector<8x32xf32> -> vector<8x32xf32>
    %331 = vector.broadcast %328 : vector<1x32xf32> to vector<8x32xf32>
    %332 = arith.addf %330, %331 : vector<8x32xf32>
    %333 = arith.addf %332, %293 : vector<8x32xf32>
    %c0_149 = arith.constant 0 : index
    %c0_150 = arith.constant 0 : index
    %334 = vector.load %arg26[%c0_149, %c0_150] : memref<1x32xf32, #tpu.memory_space<vmem>>, vector<1x32xf32>
    %c0_151 = arith.constant 0 : index
    %c0_152 = arith.constant 0 : index
    %335 = vector.load %arg27[%c0_151, %c0_152] : memref<1x32xf32, #tpu.memory_space<vmem>>, vector<1x32xf32>
    %cst_153 = arith.constant dense<0.000000e+00> : vector<8xf32>
    %336 = vector.multi_reduction <add>, %333, %cst_153 [1] : vector<8x32xf32> to vector<8xf32>
    %337 = vector.shape_cast %336 : vector<8xf32> to vector<8x1xf32>
    %cst_154 = arith.constant 3.200000e+01 : f32
    %338 = vector.broadcast %cst_154 : f32 to vector<8x1xf32>
    %339 = arith.divf %337, %338 : vector<8x1xf32>
    %340 = vector.broadcast %339 : vector<8x1xf32> to vector<8x32xf32>
    %341 = arith.subf %333, %340 : vector<8x32xf32>
    %342 = arith.mulf %341, %341 : vector<8x32xf32>
    %cst_155 = arith.constant dense<0.000000e+00> : vector<8xf32>
    %343 = vector.multi_reduction <add>, %342, %cst_155 [1] : vector<8x32xf32> to vector<8xf32>
    %344 = vector.shape_cast %343 : vector<8xf32> to vector<8x1xf32>
    %cst_156 = arith.constant 3.100000e+01 : f32
    %345 = vector.broadcast %cst_156 : f32 to vector<8x1xf32>
    %346 = arith.divf %344, %345 : vector<8x1xf32>
    %347 = vector.broadcast %334 : vector<1x32xf32> to vector<8x32xf32>
    %348 = arith.mulf %347, %341 : vector<8x32xf32>
    %349 = math.sqrt %346 : vector<8x1xf32>
    %cst_157 = arith.constant 9.99999997E-7 : f32
    %350 = vector.broadcast %cst_157 : f32 to vector<8x1xf32>
    %351 = arith.addf %349, %350 : vector<8x1xf32>
    %352 = vector.broadcast %351 : vector<8x1xf32> to vector<8x32xf32>
    %353 = arith.divf %348, %352 : vector<8x32xf32>
    %354 = vector.broadcast %335 : vector<1x32xf32> to vector<8x32xf32>
    %355 = arith.addf %353, %354 : vector<8x32xf32>
    %c0_158 = arith.constant 0 : index
    %c0_159 = arith.constant 0 : index
    %c0_160 = arith.constant 0 : index
    %356 = vector.load %arg28[%c0_158, %c0_159, %c0_160] : memref<1x8x32xf32, #tpu.memory_space<vmem>>, vector<1x8x32xf32>
    %357 = vector.shape_cast %356 : vector<1x8x32xf32> to vector<8x32xf32>
    %358 = vector.shape_cast %355 : vector<8x32xf32> to vector<1x8x32xf32>
    tpu.vector_store %arg28[%c0_158, %c0_159, %c0_160], %358 {strides = array<i32>} : memref<1x8x32xf32, #tpu.memory_space<vmem>>, vector<1x8x32xf32>,
    return
  }
  func.func @transform_0(%arg0: i32, %arg1: i32) -> (i32, i32, i32) {
    %c0_i32 = arith.constant 0 : i32
    %c0_i32_0 = arith.constant 0 : i32
    %c0_i32_1 = arith.constant 0 : i32
    return %arg0, %c0_i32, %c0_i32_0 : i32, i32, i32
  }
  func.func @transform_1(%arg0: i32, %arg1: i32) -> (i32, i32, i32) {
    %c0_i32 = arith.constant 0 : i32
    %c0_i32_0 = arith.constant 0 : i32
    %c0_i32_1 = arith.constant 0 : i32
    return %arg0, %c0_i32, %c0_i32_0 : i32, i32, i32
  }
  func.func @transform_2(%arg0: i32, %arg1: i32) -> (i32, i32, i32) {
    %c0_i32 = arith.constant 0 : i32
    %c0_i32_0 = arith.constant 0 : i32
    %c0_i32_1 = arith.constant 0 : i32
    return %arg0, %c0_i32, %c0_i32_0 : i32, i32, i32
  }
  func.func @transform_3(%arg0: i32, %arg1: i32) -> (i32, i32, i32) {
    %c0_i32 = arith.constant 0 : i32
    %c0_i32_0 = arith.constant 0 : i32
    %c0_i32_1 = arith.constant 0 : i32
    return %arg0, %c0_i32, %c0_i32_0 : i32, i32, i32
  }
  func.func @transform_4(%arg0: i32, %arg1: i32) -> (i32, i32) {
    %c0_i32 = arith.constant 0 : i32
    %c0_i32_0 = arith.constant 0 : i32
    %c0_i32_1 = arith.constant 0 : i32
    return %c0_i32, %c0_i32_0 : i32, i32
  }
  func.func @transform_5(%arg0: i32, %arg1: i32) -> (i32, i32) {
    %c0_i32 = arith.constant 0 : i32
    %c0_i32_0 = arith.constant 0 : i32
    %c0_i32_1 = arith.constant 0 : i32
    return %c0_i32, %c0_i32_0 : i32, i32
  }
  func.func @transform_6(%arg0: i32, %arg1: i32) -> (i32, i32) {
    %c0_i32 = arith.constant 0 : i32
    %c0_i32_0 = arith.constant 0 : i32
    %c0_i32_1 = arith.constant 0 : i32
    return %c0_i32, %c0_i32_0 : i32, i32
  }
  func.func @transform_7(%arg0: i32, %arg1: i32) -> (i32, i32) {
    %c0_i32 = arith.constant 0 : i32
    %c0_i32_0 = arith.constant 0 : i32
    %c0_i32_1 = arith.constant 0 : i32
    return %c0_i32, %c0_i32_0 : i32, i32
  }
  func.func @transform_8(%arg0: i32, %arg1: i32) -> (i32, i32) {
    %c0_i32 = arith.constant 0 : i32
    %c0_i32_0 = arith.constant 0 : i32
    %c0_i32_1 = arith.constant 0 : i32
    return %c0_i32, %c0_i32_0 : i32, i32
  }
  func.func @transform_9(%arg0: i32, %arg1: i32) -> (i32, i32) {
    %c0_i32 = arith.constant 0 : i32
    %c0_i32_0 = arith.constant 0 : i32
    %c0_i32_1 = arith.constant 0 : i32
    return %c0_i32, %c0_i32_0 : i32, i32
  }
  func.func @transform_10(%arg0: i32, %arg1: i32) -> (i32, i32) {
    %c0_i32 = arith.constant 0 : i32
    %c0_i32_0 = arith.constant 0 : i32
    %c0_i32_1 = arith.constant 0 : i32
    return %c0_i32, %c0_i32_0 : i32, i32
  }
  func.func @transform_11(%arg0: i32, %arg1: i32) -> (i32, i32) {
    %c0_i32 = arith.constant 0 : i32
    %c0_i32_0 = arith.constant 0 : i32
    %c0_i32_1 = arith.constant 0 : i32
    return %c0_i32, %c0_i32_0 : i32, i32
  }
  func.func @transform_12(%arg0: i32, %arg1: i32) -> (i32, i32) {
    %c0_i32 = arith.constant 0 : i32
    %c0_i32_0 = arith.constant 0 : i32
    %c0_i32_1 = arith.constant 0 : i32
    return %c0_i32, %c0_i32_0 : i32, i32
  }
  func.func @transform_13(%arg0: i32, %arg1: i32) -> (i32, i32) {
    %c0_i32 = arith.constant 0 : i32
    %c0_i32_0 = arith.constant 0 : i32
    %c0_i32_1 = arith.constant 0 : i32
    return %c0_i32, %c0_i32_0 : i32, i32
  }
  func.func @transform_14(%arg0: i32, %arg1: i32) -> (i32, i32) {
    %c0_i32 = arith.constant 0 : i32
    %c0_i32_0 = arith.constant 0 : i32
    %c0_i32_1 = arith.constant 0 : i32
    return %c0_i32, %c0_i32_0 : i32, i32
  }
  func.func @transform_15(%arg0: i32, %arg1: i32) -> (i32, i32) {
    %c0_i32 = arith.constant 0 : i32
    %c0_i32_0 = arith.constant 0 : i32
    %c0_i32_1 = arith.constant 0 : i32
    return %c0_i32, %c0_i32_0 : i32, i32
  }
  func.func @transform_16(%arg0: i32, %arg1: i32) -> (i32, i32) {
    %c0_i32 = arith.constant 0 : i32
    %c0_i32_0 = arith.constant 0 : i32
    %c0_i32_1 = arith.constant 0 : i32
    return %c0_i32, %c0_i32_0 : i32, i32
  }
  func.func @transform_17(%arg0: i32, %arg1: i32) -> (i32, i32) {
    %c0_i32 = arith.constant 0 : i32
    %c0_i32_0 = arith.constant 0 : i32
    %c0_i32_1 = arith.constant 0 : i32
    return %c0_i32, %c0_i32_0 : i32, i32
  }
  func.func @transform_18(%arg0: i32, %arg1: i32) -> (i32, i32) {
    %c0_i32 = arith.constant 0 : i32
    %c0_i32_0 = arith.constant 0 : i32
    %c0_i32_1 = arith.constant 0 : i32
    return %c0_i32, %c0_i32_0 : i32, i32
  }
  func.func @transform_19(%arg0: i32, %arg1: i32) -> (i32, i32) {
    %c0_i32 = arith.constant 0 : i32
    %c0_i32_0 = arith.constant 0 : i32
    %c0_i32_1 = arith.constant 0 : i32
    return %c0_i32, %c0_i32_0 : i32, i32
  }
  func.func @transform_20(%arg0: i32, %arg1: i32) -> (i32, i32) {
    %c0_i32 = arith.constant 0 : i32
    %c0_i32_0 = arith.constant 0 : i32
    %c0_i32_1 = arith.constant 0 : i32
    return %c0_i32, %c0_i32_0 : i32, i32
  }
  func.func @transform_21(%arg0: i32, %arg1: i32) -> (i32, i32) {
    %c0_i32 = arith.constant 0 : i32
    %c0_i32_0 = arith.constant 0 : i32
    %c0_i32_1 = arith.constant 0 : i32
    return %c0_i32, %c0_i32_0 : i32, i32
  }
  func.func @transform_22(%arg0: i32, %arg1: i32) -> (i32, i32) {
    %c0_i32 = arith.constant 0 : i32
    %c0_i32_0 = arith.constant 0 : i32
    %c0_i32_1 = arith.constant 0 : i32
    return %c0_i32, %c0_i32_0 : i32, i32
  }
  func.func @transform_23(%arg0: i32, %arg1: i32) -> (i32, i32) {
    %c0_i32 = arith.constant 0 : i32
    %c0_i32_0 = arith.constant 0 : i32
    %c0_i32_1 = arith.constant 0 : i32
    return %c0_i32, %c0_i32_0 : i32, i32
  }
  func.func @transform_24(%arg0: i32, %arg1: i32) -> (i32, i32) {
    %c0_i32 = arith.constant 0 : i32
    %c0_i32_0 = arith.constant 0 : i32
    %c0_i32_1 = arith.constant 0 : i32
    return %c0_i32, %c0_i32_0 : i32, i32
  }
  func.func @transform_25(%arg0: i32, %arg1: i32) -> (i32, i32) {
    %c0_i32 = arith.constant 0 : i32
    %c0_i32_0 = arith.constant 0 : i32
    %c0_i32_1 = arith.constant 0 : i32
    return %c0_i32, %c0_i32_0 : i32, i32
  }
  func.func @transform_26(%arg0: i32, %arg1: i32) -> (i32, i32, i32) {
    %c0_i32 = arith.constant 0 : i32
    %c0_i32_0 = arith.constant 0 : i32
    return %arg0, %arg1, %c0_i32 : i32, i32, i32
  }
  func.func @transform_27(%arg0: i32, %arg1: i32) -> (i32, i32, i32) {
    %c0_i32 = arith.constant 0 : i32
    %c0_i32_0 = arith.constant 0 : i32
    return %arg0, %arg1, %c0_i32 : i32, i32, i32
  }
  func.func @transform_28(%arg0: i32, %arg1: i32) -> (i32, i32, i32) {
    %c0_i32 = arith.constant 0 : i32
    %c0_i32_0 = arith.constant 0 : i32
    return %arg0, %arg1, %c0_i32 : i32, i32, i32
  }
}

</mosaic_0001>

<bundles_post_ra>
// kernel: transformer_decoder_forward.2
= control target key start
LH: loop header
LB: loop body
LE: loop exit
PB: predicated region body
PF: predicated region fallthrough
CT: control target
= control target key end

     0   :  { %s2593_s30 = smov 0   ;;  %s2934_s0 = inlined_call_operand.vmem [shape: f32[2,16,32], index: 0, kind: input, shape index: {}]   ;;  %s2935_s1 = inlined_call_operand.vmem [shape: bf16[2,16,32], index: 1, kind: input, shape index: {}]   ;;  %s2936_s2 = inlined_call_operand.vmem [shape: f32[2,1,16], index: 2, kind: input, shape index: {}]   ;;  %s2937_s3 = inlined_call_operand.vmem [shape: f32[2,1,16], index: 3, kind: input, shape index: {}]   ;;  %s2938_s4 = inlined_call_operand.vmem [shape: f32[1,32], index: 4, kind: input, shape index: {}]   ;;  %s2939_s5 = inlined_call_operand.vmem [shape: f32[1,32], index: 5, kind: input, shape index: {}]   ;;  %s2940_s6 = inlined_call_operand.vmem [shape: bf16[32,96], index: 6, kind: input, shape index: {}]   ;;  %s2941_s7 = inlined_call_operand.vmem [shape: f32[1,96], index: 7, kind: input, shape index: {}]   ;;  %s2942_s8 = inlined_call_operand.vmem [shape: bf16[32,32], index: 8, kind: input, shape index: {}]   ;;  %s2943_s9 = inlined_call_operand.vmem [shape: f32[1,32], index: 9, kind: input, shape index: {}]   ;;  %s2944_s10 = inlined_call_operand.vmem [shape: f32[1,32], index: 10, kind: input, shape index: {}]   ;;  %s2945_s11 = inlined_call_operand.vmem [shape: f32[1,32], index: 11, kind: input, shape index: {}]   ;;  %s2946_s12 = inlined_call_operand.vmem [shape: bf16[32,32], index: 12, kind: input, shape index: {}]   ;;  %s2947_s13 = inlined_call_operand.vmem [shape: f32[1,32], index: 13, kind: input, shape index: {}]   ;;  %s2948_s14 = inlined_call_operand.vmem [shape: bf16[32,64], index: 14, kind: input, shape index: {}]   ;;  %s2949_s15 = inlined_call_operand.vmem [shape: f32[1,64], index: 15, kind: input, shape index: {}]   ;;  %s2950_s16 = inlined_call_operand.vmem [shape: bf16[32,32], index: 16, kind: input, shape index: {}]   ;;  %s2951_s17 = inlined_call_operand.vmem [shape: f32[1,32], index: 17, kind: input, shape index: {}]   ;;  %s2952_s18 = inlined_call_operand.vmem [shape: f32[1,32], index: 18, kind: input, shape index: {}]   ;;  %s2953_s19 = inlined_call_operand.vmem [shape: f32[1,32], index: 19, kind: input, shape index: {}]   ;;  %s2954_s20 = inlined_call_operand.vmem [shape: bf16[32,64], index: 20, kind: input, shape index: {}]   ;;  %s2955_s21 = inlined_call_operand.vmem [shape: f32[1,64], index: 21, kind: input, shape index: {}]   ;;  %s2956_s22 = inlined_call_operand.vmem [shape: bf16[64,32], index: 22, kind: input, shape index: {}]   ;;  %s2957_s23 = inlined_call_operand.vmem [shape: f32[1,32], index: 23, kind: input, shape index: {}]   ;;  %s2958_s24 = inlined_call_operand.vmem [shape: f32[1,32], index: 24, kind: input, shape index: {}]   ;;  %s2959_s25 = inlined_call_operand.vmem [shape: f32[1,32], index: 25, kind: input, shape index: {}]   ;;  %s2960_s26 = inlined_call_operand.vmem [shape: f32[2,16,32], index: 26, kind: output, shape index: {0}]   ;;  %s2961_s27 = inlined_call_operand.vmem [shape: f32[2,16,32], index: 27, kind: output, shape index: {1}]  }
   0x1   :  { %2986 = sst [smem:[#allocation4_spill]] %s2934_s0 }
   0x2   :  { %2987 = sst [smem:[#allocation5_spill]] %s2935_s1 }
   0x3   :  { %2988 = sst [smem:[#allocation6_spill]] %s2936_s2 }
   0x4   :  { %2989 = sst [smem:[#allocation7_spill]] %s2937_s3 }
   0x5   :  { %2990 = sst [smem:[#allocation8_spill]] %s2938_s4  ;;  %s2589_s4 = smov 0  }
   0x6   :  { %2991 = sst [smem:[#allocation9_spill]] %s2939_s5 }
   0x7   :  { %2992 = sst [smem:[#allocation10_spill]] %s2940_s6 }
   0x8   :  { %2993 = sst [smem:[#allocation11_spill]] %s2941_s7  ;;  %s2587_s7 = smov 0  }
   0x9   :  { %2994 = sst [smem:[#allocation12_spill]] %s2942_s8  ;;  %s2591_s8 = smov 0  }
   0xa   :  { %2995 = sst [smem:[#allocation13_spill]] %s2943_s9  ;;  %s2595_s9 = smov 0  }
   0xb   :  { %2996 = sst [smem:[#allocation14_spill]] %s2944_s10 }
   0xc   :  { %2997 = sst [smem:[#allocation15_spill]] %s2945_s11 }
   0xd   :  { %2998 = sst [smem:[#allocation16_spill]] %s2961_s27 }
   0xe LB: > { %s47_s24 = sadd.s32 1, %s2423_s8  ;;  %s50_s25 = sadd.s32 1, %s2427_s30  ;;  %s2431_s9 = sphi %s2595_s9, %s38_s9   ;;  %s2427_s30 = sphi %s2593_s30, %s3029_s30   ;;  %s2423_s8 = sphi %s2591_s8, %s3028_s8   ;;  %s2419_s4 = sphi %s2589_s4, %s3027_s4   ;;  %s2415_s7 = sphi %s2587_s7, %s3026_s7  }
   0xf   : > { %p48_p0 = scmp.ge.s32.totalorder %s47_s24, 2  ;;  %p2145_p1 = scmp.ge.s32.totalorder %s2431_s9, 1 }
  0x10   : > { %p782_p2 = scmp.lt.s32.totalorder %s2431_s9, 5 }
  0x11   : > { %s3031_s24 = smov (%p48_p0, %s47_s24), 0  ;;  %s3033_s25 = smov (!%p48_p0, %s50_s25), %s2427_s30 }
  0x12   : > { %p783_p3 = pnand %p2145_p1, %p782_p2  ;;  %p52_p4 = scmp.ge.s32.totalorder %s3033_s25, 2 }
  0x13   : > { %p876_p5 = scmp.lt.s32.totalorder (!%p783_p3), %s2419_s4, 1  ;;  %s2966_s5 = sshll.u32 (!%p783_p3), %s2415_s7, 3 }
  0x14   : > { %s3035_s25 = smov (%p52_p4, %s3033_s25), 0  ;;  %786 = sbr.rel (%p783_p3) target bundleno = 3584 (0xe00), region = 124 }
  0x15   : > { %2999 = sst [smem:[#allocation3_spill]] %s3035_s25  ;;  %p894_p6 = scmp.lt.s32.totalorder (!%p783_p3), %s2415_s7, 1 }
  0x16   : > { %s3000_s29 = sld [smem:[#allocation4_spill]] (!%p783_p3)  ;;  %s2972_s10 = smov (!%p783_p3), 120  }
  0x17   : > { %s3001_s3 = sld [smem:[#allocation10_spill]] (!%p783_p3)  ;;  %s3016_s25 = smov (!%p783_p3), 104  }
  0x18   : > { %s3003_s0 = sld [smem:[#allocation8_spill]] (!%p783_p3) }
  0x19   : > { %s3037_s4 = smov (!%p876_p5, %s2419_s4), 1  ;;  %vm935_vm0 = vcmask 261120   ;;  %v2433_v6 = vmov 32.0   ;;  %v2435_v30 = vmov 31.0   ;;  %s3005_s27 = sld [smem:[#allocation16_spill]] }
  0x1a   : > { %s2249_s28 = sshll.u32 %s3037_s4, 4  ;;  %2337 = vrcp.f32 %v2433_v6  ;;  %s2150_s11 = sshll.u32 %s3037_s4, 1 }
  0x1b   : > { %2339 = vrcp.f32 %v2435_v30 }
  0x1c   : > { %s880_s1 = scalar_lea.vmem %s3000_s29, %s2249_s28  ;;  %s2967_s28 = smov 96  }
  0x1d   : > { %v910_v0 = vld [vmem:[%s880_s1] sm:$0xff]  ;;  %s912_s6 = scalar_lea.vmem %s880_s1, %s2966_s5  ;;  %v911_v4 = vld [vmem:[%s880_s1 + $0x8] sm:$0xff]  ;;  %s3004_s1 = sld [smem:[#allocation9_spill]] }
  0x1e   : > { %v999_v1 = vsel %vm935_vm0, %v910_v0, 0.0  ;;  %v2629_v2 = vld [vmem:[%s912_s6] sm:$0xff]  ;;  %v1002_v5 = vsel %vm935_vm0, %v911_v4, 0.0  ;;  %v2253_v11 = vld [vmem:[%s3001_s3 + $0x8] sm:$0xff]  ;;  %s3002_s6 = sld [smem:[#allocation11_spill]]  ;;  %s3006_s5 = smov 96  }
  0x1f   : > { %1000 = vadd.xlane.f32.xlu0 %v999_v1  ;;  %v936_v3 = vsel %vm935_vm0, %v2629_v2, 0.0  ;;  %1115 = vmatpush.bf16.msra.mxu0 %v2253_v11  ;;  %v2252_v13 = vld [vmem:[%s3001_s3] sm:$0xff] }
  0x20   : > { %937 = vadd.xlane.f32.xlu1 %v936_v3  ;;  %v2338_v7 = vpop.eup %2337 }
  0x21   : > { %v940_v8 = vmul.f32 32.0, %v2338_v7  ;;  %vm944_vm1 = vweird.f32 %v2338_v7  ;;  %v2340_v31 = vpop.eup %2339 }
  0x22   : > { %v953_v32 = vmul.f32 31.0, %v2340_v31  ;;  %vm957_vm2 = vweird.f32 %v2340_v31 }
  0x23   : > { %v941_v9 = vsub.f32 1.0, %v940_v8  ;;  %1116 = vmatpush.bf16.msra.mxu0 %v2252_v13 }
  0x24   : > { %v954_v33 = vsub.f32 1.0, %v953_v32 }
  0x25   : > { %v942_v10 = vmul.f32 %v2338_v7, %v941_v9 }
  0x26   : > { %v955_v34 = vmul.f32 %v2340_v31, %v954_v33 }
  0x27   : > { %1003 = vadd.xlane.f32.xlu0 %v1002_v5  ;;  %v943_v12 = vadd.f32 %v2338_v7, %v942_v10 }
  0x28   : > { %v956_v35 = vadd.f32 %v2340_v31, %v955_v34 }
  0x29   : > { %v2641_v14 = vsel %vm944_vm1, %v2338_v7, %v943_v12 }
  0x2a   : > { %v2663_v36 = vsel %vm957_vm2, %v2340_v31, %v956_v35 }
  0x3b   : > { %1125 = vrot.lane.b32.xlu0 %v2253_v11, %s2967_s28  ;;  %v2671_v11 = vld [vmem:[%s3002_s6] ss:$0 sm:$0xff]  ;;  %s895_s6 = scalar_select %p894_p6, %s2415_s7, 1 }
  0x92   : > { %v1001_v15 = vpop.xlane.xlu0 %1000 }
  0x93   : > { %v1005_v16 = vmul.f32 %v1001_v15, %v2641_v14  ;;  %v938_v19 = vpop.xlane.xlu1 %937 }
  0x94   : > { %v946_v23 = vmul.f32 %v2641_v14, %v938_v19 }
  0x95   : > { %v2644_v17 = vsub.f32 %v910_v0, %v1005_v16 }
  0x96   : > { %v2654_v25 = vsub.f32 %v2629_v2, %v946_v23 }
  0x97   : > { %v1009_v18 = vmul.f32 %v2644_v17, %v2644_v17 }
  0x98   : > { %v948_v28 = vmul.f32 %v2654_v25, %v2654_v25 }
  0x99   : > { %v1011_v20 = vsel %vm935_vm0, %v1009_v18, 0.0 }
  0x9a   : > { %1012 = vadd.xlane.f32.xlu1 %v1011_v20  ;;  %v1004_v21 = vpop.xlane.xlu0 %1003  ;;  %v949_v29 = vsel %vm935_vm0, %v948_v28, 0.0 }
  0x9b   : > { %v1006_v22 = vmul.f32 %v1004_v21, %v2641_v14 }
  0x9d   : > { %v2651_v24 = vsub.f32 %v911_v4, %v1006_v22 }
  0x9f   : > { %v1010_v26 = vmul.f32 %v2651_v24, %v2651_v24 }
  0xa1   : > { %v1014_v27 = vsel %vm935_vm0, %v1010_v26, 0.0 }
  0xa2   : > { %1015 = vadd.xlane.f32.xlu2 %v1014_v27 }
  0xaa   : > { %950 = vadd.xlane.f32.xlu2 %v949_v29  ;;  %v2322_v29 = vld [vmem:[%s3003_s0] ss:$0 sm:$0xff] }
  0xad   : > { %v1126_v39 = vpop.permute.xlu0 %1125 }
  0xae   : > { %1141 = vmatpush.bf16.msra.mxu1 %v1126_v39 }
  0xb3   : > { %1123 = vrot.lane.b32.xlu1 %v2252_v13, %s2967_s28 }
  0xc2   : > { %1129 = vrot.lane.b32.xlu2 %v2671_v11, %s2967_s28  ;;  %s2691_s28 = sadd.s32 %s2150_s11, %s895_s6  ;;  %s2982_s6 = smov 112  }
  0xc3   : > { %s2969_s29 = sshll.u32 %s2691_s28, 3  ;;  %s2980_s11 = smov 104  }
  0xc4   : > { %s907_s2 = scalar_lea.vmem %s3005_s27, %s2969_s29  ;;  %s2974_s29 = smov 8  }
 0x10d   : > { %v1013_v37 = vpop.xlane.xlu1 %1012 }
 0x10e   : > { %v1017_v38 = vmul.f32 %v1013_v37, %v2663_v36 }
 0x110   : > { %2341 = vrsqrt.f32 %v1017_v38  ;;  %vm1031_vm3 = vcmp.eq.f32.partialorder %v1017_v38, inf  ;;  %v1034_v54 = vand.u32 2147483648, %v1017_v38  ;;  %vm1033_vm4 = vcmp.eq.f32.partialorder %v1017_v38, 0.0 }
 0x115   : > { %v1016_v40 = vpop.xlane.xlu2 %1015 }
 0x116   : > { %v2342_v41 = vpop.eup %2341  ;;  %v1018_v42 = vmul.f32 %v1016_v40, %v2663_v36 }
 0x117   : > { %v1025_v43 = vmul.f32 %v2342_v41, %v1017_v38 }
 0x118   : > { %2343 = vrsqrt.f32 %v1018_v42  ;;  %vm1043_vm5 = vcmp.eq.f32.partialorder %v1018_v42, inf  ;;  %v1046_v3 = vand.u32 2147483648, %v1018_v42  ;;  %vm1045_vm6 = vcmp.eq.f32.partialorder %v1018_v42, 0.0 }
 0x119   : > { %v1026_v44 = vmul.f32 %v2342_v41, %v1025_v43 }
 0x11b   : > { %v1027_v45 = vmul.f32 0.5, %v1026_v44 }
 0x11d   : > { %v1028_v46 = vsub.f32 1.5, %v1027_v45  ;;  %v951_v47 = vpop.xlane.xlu2 %950  ;;  %v2324_v45 = vld [vmem:[%s3004_s1] ss:$0 sm:$0xff] }
 0x11e   : > { %v2344_v48 = vpop.eup %2343  ;;  %v959_v49 = vmul.f32 %v2663_v36, %v951_v47 }
 0x11f   : > { %v1029_v50 = vmul.f32 %v2342_v41, %v1028_v46  ;;  %v1037_v51 = vmul.f32 %v2344_v48, %v1018_v42  ;;  %v1023_v41 = vmul.f32 %v2322_v29, %v2651_v24  ;;  %v2323_v24 = vld [vmem:[%s3003_s0] ss:$0 sm:$0xff]  ;;  %s3007_s0 = sld [smem:[#allocation6_spill]] }
 0x120   : > { %2345 = vrsqrt.f32 %v959_v49  ;;  %vm971_vm7 = vcmp.eq.f32.partialorder %v959_v49, inf  ;;  %v974_v16 = vand.u32 2147483648, %v959_v49  ;;  %vm973_vm8 = vcmp.eq.f32.partialorder %v959_v49, 0.0 }
 0x121   : > { %v1030_v52 = vmul.f32 %v1029_v50, %v1017_v38  ;;  %v1038_v53 = vmul.f32 %v2344_v48, %v1037_v51 }
 0x123   : > { %v1032_v55 = vsel %vm1031_vm3, %v1017_v38, %v1030_v52  ;;  %v1039_v56 = vmul.f32 0.5, %v1038_v53  ;;  %v1022_v38 = vmul.f32 %v2322_v29, %v2644_v17 }
 0x124   : > { %v1035_v57 = vsel %vm1033_vm4, %v1034_v54, %v1032_v55 }
 0x125   : > { %v1040_v58 = vsub.f32 1.5, %v1039_v56  ;;  %v1124_v59 = vpop.permute.xlu1 %1123  ;;  %v1048_v60 = vadd.f32 1e-06, %v1035_v57  ;;  %v963_v57 = vmul.f32 %v2323_v24, %v2654_v25 }
 0x126   : > { %v2346_v61 = vpop.eup %2345  ;;  %1142 = vmatpush.bf16.msra.mxu1 %v1124_v59  ;;  %v2325_v59 = vld [vmem:[%s3004_s1] ss:$0 sm:$0xff]  ;;  %s888_s1 = scalar_lea.vmem %s3007_s0, %s3037_s4  ;;  %s2975_s0 = smov 72  }
 0x127   : > { %v1041_v62 = vmul.f32 %v2344_v48, %v1040_v58  ;;  %v965_v63 = vmul.f32 %v2346_v61, %v959_v49  ;;  %2347 = vrcp.f32 %v1048_v60  ;;  %v1061_v23 = vand.u32 2147483648, %v1048_v60 }
 0x128   : > { %vm1055_vm10 = vweird.f32 %v1048_v60  ;;  %v1059_v27 = vand.u32 2147483647, %v1048_v60 }
 0x129   : > { %v1042_v0 = vmul.f32 %v1041_v62, %v1018_v42  ;;  %v966_v1 = vmul.f32 %v2346_v61, %v965_v63  ;;  %v1062_v32 = vor.u32 1.1754944e-38, %v1061_v23 }
 0x12a   : > { %vm1060_vm12 = vcmp.eq.f32.partialorder %v1059_v27, 8.507059e+37 }
 0x12b   : > { %v1044_v4 = vsel %vm1043_vm5, %v1018_v42, %v1042_v0  ;;  %v967_v5 = vmul.f32 0.5, %v966_v1  ;;  %v1130_v0 = vpop.permute.xlu2 %1129 }
 0x12c   : > { %v1047_v6 = vsel %vm1045_vm6, %v1046_v3, %v1044_v4  ;;  %vm1157_vm6 = vcmask 64512  }
 0x12d   : > { %v2348_v7 = vpop.eup %2347  ;;  %v968_v8 = vsub.f32 1.5, %v967_v5  ;;  %v1049_v9 = vadd.f32 1e-06, %v1047_v6 }
 0x12e   : > { %v1051_v10 = vmul.f32 %v2348_v7, %v1048_v60  ;;  %vm1056_vm9 = vweird.f32 %v2348_v7 }
 0x12f   : > { %v969_v12 = vmul.f32 %v2346_v61, %v968_v8  ;;  %2349 = vrcp.f32 %v1049_v9  ;;  %vm1057_vm11 = vmor %vm1055_vm10, %vm1056_vm9  ;;  %v1076_v33 = vand.u32 2147483648, %v1049_v9  ;;  %v1074_v35 = vand.u32 2147483647, %v1049_v9 }
 0x130   : > { %v1052_v13 = vsub.f32 1.0, %v1051_v10  ;;  %vm1070_vm14 = vweird.f32 %v1049_v9 }
 0x131   : > { %v970_v15 = vmul.f32 %v969_v12, %v959_v49  ;;  %v1077_v42 = vor.u32 1.1754944e-38, %v1076_v33  ;;  %vm1075_vm1 = vcmp.eq.f32.partialorder %v1074_v35, 8.507059e+37 }
 0x132   : > { %v1053_v18 = vmul.f32 %v2348_v7, %v1052_v13 }
 0x133   : > { %v972_v19 = vsel %vm971_vm7, %v959_v49, %v970_v15 }
 0x134   : > { %v1054_v20 = vadd.f32 %v2348_v7, %v1053_v18  ;;  %v975_v21 = vsel %vm973_vm8, %v974_v16, %v972_v19 }
 0x135   : > { %v2350_v22 = vpop.eup %2349  ;;  %v976_v26 = vadd.f32 1e-06, %v975_v21  ;;  %v916_v21 = vlaneseq }
 0x136   : > { %v1066_v28 = vmul.f32 %v2350_v22, %v1049_v9  ;;  %v1058_v30 = vsel %vm1057_vm11, %v2348_v7, %v1054_v20  ;;  %vm1071_vm13 = vweird.f32 %v2350_v22  ;;  %v923_v20 = vld [vmem:[%s888_s1] sm:$0x1]  ;;  %vm1177_vm11 = vcmask 130048   ;;  %s2976_s1 = smov 80  }
 0x137   : > { %2351 = vrcp.f32 %v976_v26  ;;  %v1063_v37 = vsel %vm1060_vm12, %v1062_v32, %v1058_v30  ;;  %vm1072_vm15 = vmor %vm1070_vm14, %vm1071_vm13  ;;  %v986_v49 = vand.u32 2147483647, %v976_v26  ;;  %v988_v50 = vand.u32 2147483648, %v976_v26 }
 0x138   : > { %v1067_v31 = vsub.f32 1.0, %v1066_v28  ;;  %v1064_v43 = vmul.f32 %v1063_v37, %v1022_v38  ;;  %vm982_vm3 = vweird.f32 %v976_v26  ;;  %vm924_vm7 = vcmp.gt.f32.partialorder %v923_v20, 0.0 }
 0x139   : > { %v989_v56 = vor.u32 1.1754944e-38, %v988_v50  ;;  %vm987_vm5 = vcmp.eq.f32.partialorder %v986_v49, 8.507059e+37  ;;  %v917_v23 = vshrl.u32 %v916_v21, 7  ;;  %v2439_v28 = vmov 0  }
 0x13a   : > { %v1068_v34 = vmul.f32 %v2350_v22, %v1067_v31  ;;  %v1083_v51 = vadd.f32 %v2324_v45, %v1064_v43  ;;  %v925_v29 = vsel %vm924_vm7, 1, %v2439_v28  ;;  %v921_v31 = vand.u32 127, %v916_v21 }
 0x13b   : > { %v926_v32 = vperm.slane %v925_v29, 0  ;;  %vm1271_vm12 = vcmask 130112   ;;  %vm1331_vm13 = vcmask 195712   ;;  %vm1391_vm14 = vcmask 261312  }
 0x13c   : > { %v1069_v39 = vadd.f32 %v2350_v22, %v1068_v34  ;;  %v2440_v34 = vmov 0.0  }
 0x13d   : > { %v2352_v40 = vpop.eup %2351  ;;  %vm927_vm9 = vcmp.eq.s32.totalorder %v926_v32, 1 }
 0x13e   : > { %v1073_v44 = vsel %vm1072_vm15, %v2350_v22, %v1069_v39  ;;  %v978_v46 = vmul.f32 %v2352_v40, %v976_v26  ;;  %vm983_vm2 = vweird.f32 %v2352_v40 }
 0x13f   : > { %v1078_v47 = vsel %vm1075_vm1, %v1077_v42, %v1073_v44  ;;  %vm984_vm4 = vmor %vm982_vm3, %vm983_vm2 }
 0x140   : > { %v1079_v17 = vmul.f32 %v1078_v47, %v1023_v41  ;;  %v979_v48 = vsub.f32 1.0, %v978_v46 }
 0x142   : > { %v1084_v52 = vadd.f32 %v2324_v45, %v1079_v17  ;;  %v980_v53 = vmul.f32 %v2352_v40, %v979_v48 }
 0x144   : > { %v1122_v54 = vpack.c.bf16 %v1084_v52, %v1083_v51  ;;  %v981_v55 = vadd.f32 %v2352_v40, %v980_v53 }
 0x146   : > { %2164 = vmatmul.msk.bf16.vlgmr.msra.gmra.mxu1 %vm935_vm0, %v1122_v54  ;;  %v985_v58 = vsel %vm984_vm4, %v2352_v40, %v981_v55 }
 0x147   : > { %v990_v60 = vsel %vm987_vm5, %v989_v56, %v985_v58 }
 0x148   : > { %v991_v61 = vmul.f32 %v990_v60, %v963_v57 }
 0x14a   : > { %v995_v62 = vadd.f32 %v2325_v59, %v991_v61 }
 0x14c   : > { %v1090_v63 = vpack.c.bf16 %v995_v62, %v995_v62  ;;  %996 = vst.msk [vmem:[%s907_s2] sm:$0xff] %vm935_vm0, %v995_v62  ;;  %s2979_s2 = smov 24  }
 0x14e   : > { %2163 = vmatmul.msk.bf16.vlgmr.msra.gmra.mxu0 %vm935_vm0, %v1090_v63 }
 0x1c3   : > { %v1144_v25 = vpop.f32.mrf.mxu1 }
 0x1c4   : > { %v1145_v1 = vadd.f32 %v1144_v25, %v1130_v0 }
 0x1c6   : > { %v1149_v5 = vpack.c.bf16 %v1145_v1, %v1145_v1 }
 0x1c8   : > { %v1154_v8 = vunpack.c.l.b16 %v1149_v5 }
 0x1cb   : > { %v1118_v3 = vpop.f32.mrf.mxu0  ;;  %v1146_v4 = vpop.f32.mrf.mxu1 }
 0x1cc   : > { %v1147_v6 = vadd.f32 %v1146_v4, %v1130_v0  ;;  %v1119_v15 = vadd.f32 %v2671_v11, %v1118_v3 }
 0x1ce   : > { %v1150_v7 = vpack.c.bf16 %v1147_v6, %v1147_v6  ;;  %v1151_v16 = vpack.c.bf16 %v1119_v15, %v1119_v15 }
 0x1d0   : > { %v1155_v9 = vunpack.c.l.b16 %v1150_v7  ;;  %v1211_v18 = vunpack.c.l.b16 %v1151_v16 }
 0x1d2   : > { %v2706_v10 = vpack.c.b16 %v1155_v9, %v1154_v8  ;;  %v1212_v19 = vpack.c.b16 %v1211_v18, %v1211_v18 }
 0x1d3   : > { %v1120_v12 = vpop.f32.mrf.mxu0 }
 0x1d4   : > { %1190 = vrot.lane.b32.xlu1 %v2706_v10, %s3006_s5  ;;  %v1162_v13 = vsel %vm1157_vm6, %v2706_v10, 0 }
 0x1d5   : > { %1171 = vmatpush.bf16.xpose.msra.mxu2 %v1162_v13 }
 0x1dc   : > { %1215 = vrot.lane.b32.xlu1 %v2706_v10, %s2972_s10  ;;  %2165 = vmatmul.msk.bf16.vlgmr.msra.gmra.mxu2 %vm1157_vm6, %v1151_v16 }
 0x1e4   : > { %1213 = vrot.lane.b32.xlu1 %v1212_v19, %s2972_s10  ;;  %s3008_s10 = sshll.u32 %s2415_s7, 3  ;;  %s2978_s7 = smov 88  }
 0x1e5   : > { %v918_v27 = vstv %s3008_s10  ;;  %s2977_s10 = smov 16  }
 0x1e6   : > { %v919_v30 = vadd.s32 %v918_v27, %v917_v23 }
 0x1e8   : > { %vm922_vm8 = vcmp.gt.s32.totalorder %v921_v31, %v919_v30 }
 0x1e9   : > { %vm928_vm10 = vmor %vm922_vm8, %vm927_vm9 }
 0x1ea   : > { %v929_v35 = vsel %vm928_vm10, -1e+18, %v2440_v34 }
 0x1ec   : > { %1275 = vrot.lane.b32.xlu1 %v2706_v10, %s2982_s6 }
 0x1f4   : > { %1335 = vrot.lane.b32.xlu1 %v2706_v10, %s2980_s11 }
 0x1fc   : > { %1333 = vrot.lane.b32.xlu1 %v1212_v19, %s2980_s11  ;;  %s3024_s11 = sshll.u32 %s2691_s28, 3 }
 0x246   : > { %v1191_v11 = vpop.permute.xlu1 %1190 }
 0x247   : > { %1203 = vmatpush.bf16.msra.mxu3 %v1191_v11 }
 0x24e   : > { %v1216_v22 = vpop.permute.xlu1 %1215 }
 0x24f   : > { %v1221_v26 = vsel %vm1157_vm6, %v1216_v22, 0 }
 0x250   : > { %1230 = vmatpush.bf16.xpose.msrb.mxu3 %v1221_v26 }
 0x256   : > { %v1214_v33 = vpop.permute.xlu1 %1213 }
 0x25e   : > { %v1276_v37 = vpop.permute.xlu1 %1275 }
 0x25f   : > { %v1173_v38 = vpop.f32.mrf.mxu2  ;;  %v1281_v39 = vsel %vm1157_vm6, %v1276_v37, 0 }
 0x260   : > { %v1174_v40 = vadd.f32 %v1173_v38, %v929_v35  ;;  %1290 = vmatpush.bf16.xpose.msrb.mxu1 %v1281_v39 }
 0x262   : > { %v1178_v41 = vsel %vm1177_vm11, %v1174_v40, -inf }
 0x263   : > { %1179 = vmax.xlane.f32.xlu0 %v1178_v41 }
 0x266   : > { %v1336_v51 = vpop.permute.xlu1 %1335 }
 0x267   : > { %v1175_v42 = vpop.f32.mrf.mxu2  ;;  %v1341_v53 = vsel %vm1157_vm6, %v1336_v51, 0 }
 0x26e   : > { %v1334_v58 = vpop.permute.xlu1 %1333 }
 0x277   : > { %1273 = vrot.lane.b32.xlu0 %v1212_v19, %s2982_s6  ;;  %s3010_s6 = sld [smem:[#allocation13_spill]] }
 0x27d   : > { %v2327_v51 = vld [vmem:[%s3010_s6] ss:$0 sm:$0xff]  ;;  %s3015_s6 = smov 112  }
 0x27f   : > { %1248 = vrot.lane.b32.xlu0 %v2706_v10, %s2978_s7  ;;  %s2250_s7 = sshll.u32 %s3037_s4, 3 }
 0x2d6   : > { %v1180_v43 = vpop.xlane.xlu0 %1179 }
 0x2d7   : > { %v1181_v44 = vsub.f32 %v1174_v40, %v1180_v43 }
 0x2d9   : > { %v1182_v45 = vmul.f32 1.442695, %v1181_v44 }
 0x2db   : > { %2353 = vpow2.f32 %v1182_v45 }
 0x2e1   : > { %v2354_v46 = vpop.eup %2353 }
 0x2e2   : > { %v1184_v47 = vsel %vm1177_vm11, %v2354_v46, 0.0 }
 0x2e3   : > { %1185 = vadd.xlane.f32.xlu2 %v1184_v47 }
 0x2e9   : > { %v1274_v17 = vpop.permute.xlu0 %1273 }
 0x2ea   : > { %2169 = vmatmul.msk.bf16.vlgmr.msrb.gmra.mxu1 %vm1157_vm6, %v1274_v17 }
 0x2f1   : > { %v1249_v48 = vpop.permute.xlu0 %1248 }
 0x2f2   : > { %1261 = vmatpush.bf16.msrb.mxu0 %v1249_v48 }
 0x356   : > { %v1186_v49 = vpop.xlane.xlu2 %1185 }
 0x357   : > { %2355 = vrcp.f32 %v1186_v49 }
 0x35d   : > { %v2356_v50 = vpop.eup %2355 }
 0x35e   : > { %v1188_v24 = vmul.f32 %v2356_v50, %v2354_v46 }
 0x360   : > { %v1189_v52 = vpack.c.bf16 %v1188_v24, %v1188_v24 }
 0x362   : > { %2166 = vmatmul.msk.bf16.vlgmr.msra.gmra.mxu3 %vm1177_vm11, %v1189_v52 }
 0x363   : > { %1350 = vmatpush.bf16.xpose.msra.mxu3 %v1341_v53 }
 0x367   : > { %v1292_v54 = vpop.f32.mrf.mxu1 }
 0x368   : > { %v1293_v55 = vadd.f32 %v1292_v54, %v929_v35 }
 0x36a   : > { %v1296_v56 = vsel %vm1177_vm11, %v1293_v55, -inf }
 0x36b   : > { %1297 = vmax.xlane.f32.xlu1 %v1296_v56 }
 0x36f   : > { %v1294_v57 = vpop.f32.mrf.mxu1 }
 0x372   : > { %2167 = vmatmul.msk.bf16.vlgmr.msrb.gmra.mxu3 %vm1157_vm6, %v1214_v33 }
 0x382   : > { %2171 = vmatmul.msk.bf16.vlgmr.msra.gmra.mxu3 %vm1157_vm6, %v1334_v58 }
 0x384   : > { %1368 = vrot.lane.b32.xlu1 %v2706_v10, %s2975_s0  ;;  %s3013_s0 = sld [smem:[#allocation15_spill]] }
 0x3de   : > { %v1298_v61 = vpop.xlane.xlu1 %1297 }
 0x3df   : > { %v1299_v3 = vsub.f32 %v1293_v55, %v1298_v61 }
 0x3e1   : > { %v1300_v4 = vmul.f32 1.442695, %v1299_v3 }
 0x3e3   : > { %2357 = vpow2.f32 %v1300_v4 }
 0x3e5   : > { %v1205_v59 = vpop.f32.mrf.mxu3 }
 0x3e6   : > { %1209 = vst.msk [vmem:[#allocation2] sm:$0xff] %vm1157_vm6, %v1205_v59 }
 0x3e9   : > { %v2358_v8 = vpop.eup %2357 }
 0x3ea   : > { %v1302_v12 = vsel %vm1177_vm11, %v2358_v8, 0.0 }
 0x3ed   : > { %v1207_v60 = vpop.f32.mrf.mxu3 }
 0x3f5   : > { %v1232_v62 = vpop.f32.mrf.mxu3 }
 0x3f6   : > { %v1233_v63 = vadd.f32 %v1232_v62, %v929_v35  ;;  %v1369_v25 = vpop.permute.xlu1 %1368  ;;  %v2259_v62 = vld [vmem:[%s2948_s14 + $0x8] sm:$0xff] }
 0x3f7   : > { %1381 = vmatpush.bf16.msra.mxu0 %v1369_v25  ;;  %1551 = vmatpush.bf16.msrb.mxu3 %v2259_v62  ;;  %v2257_v25 = vld [vmem:[%s2946_s12 + $0x8] sm:$0xff] }
 0x3f8   : > { %v1236_v0 = vsel %vm1177_vm11, %v1233_v63, -inf }
 0x3f9   : > { %1237 = vmax.xlane.f32.xlu2 %v1236_v0  ;;  %v2256_v0 = vld [vmem:[%s2946_s12] sm:$0xff] }
 0x3fd   : > { %v1234_v1 = vpop.f32.mrf.mxu3 }
 0x405   : > { %v1352_v5 = vpop.f32.mrf.mxu3 }
 0x406   : > { %v1353_v6 = vadd.f32 %v1352_v5, %v929_v35 }
 0x408   : > { %v1356_v7 = vsel %vm1177_vm11, %v1353_v6, -inf }
 0x409   : > { %1357 = vmax.xlane.f32.xlu2 %v1356_v7 }
 0x40d   : > { %v1354_v9 = vpop.f32.mrf.mxu3 }
 0x411   : > { %1303 = vadd.xlane.f32.xlu2 %v1302_v12 }
 0x46c   : > { %v1238_v13 = vpop.xlane.xlu2 %1237 }
 0x46d   : > { %v1239_v15 = vsub.f32 %v1233_v63, %v1238_v13 }
 0x46f   : > { %v1240_v16 = vmul.f32 1.442695, %v1239_v15 }
 0x471   : > { %2359 = vpow2.f32 %v1240_v16 }
 0x477   : > { %v2360_v18 = vpop.eup %2359 }
 0x478   : > { %v1242_v19 = vsel %vm1177_vm11, %v2360_v18, 0.0 }
 0x479   : > { %1243 = vadd.xlane.f32.xlu2 %v1242_v19 }
 0x47c   : > { %v1358_v11 = vpop.xlane.xlu2 %1357 }
 0x47d   : > { %v1359_v20 = vsub.f32 %v1353_v6, %v1358_v11 }
 0x47f   : > { %v1360_v21 = vmul.f32 1.442695, %v1359_v20 }
 0x481   : > { %2361 = vpow2.f32 %v1360_v21 }
 0x484   : > { %v1304_v26 = vpop.xlane.xlu2 %1303 }
 0x485   : > { %2363 = vrcp.f32 %v1304_v26 }
 0x487   : > { %v2362_v22 = vpop.eup %2361 }
 0x488   : > { %v1362_v23 = vsel %vm1177_vm11, %v2362_v22, 0.0 }
 0x489   : > { %1363 = vadd.xlane.f32.xlu0 %v1362_v23 }
 0x48b   : > { %v2364_v28 = vpop.eup %2363 }
 0x48c   : > { %v1306_v29 = vmul.f32 %v2364_v28, %v2358_v8 }
 0x48e   : > { %v1307_v35 = vpack.c.bf16 %v1306_v29, %v1306_v29 }
 0x491   : > { %1308 = vrot.lane.b32.xlu2 %v2706_v10, %s2976_s1  ;;  %s3009_s1 = sld [smem:[#allocation12_spill]] }
 0x497   : > { %v2255_v17 = vld [vmem:[%s3009_s1 + $0x8] sm:$0xff]  ;;  %v2254_v48 = vld [vmem:[%s3009_s1] sm:$0xff]  ;;  %s3011_s1 = sld [smem:[#allocation5_spill]] }
 0x498   : > { %1424 = vmatpush.bf16.msra.mxu1 %v2255_v17  ;;  %v2331_v17 = vld [vmem:[%s2947_s13] ss:$0 sm:$0xff] }
 0x49c   : > { %1425 = vmatpush.bf16.msra.mxu1 %v2254_v48 }
 0x49d   : > { %s885_s3 = scalar_lea.vmem %s3011_s1, %s2250_s7  ;;  %s3017_s7 = sld [smem:[#allocation7_spill]] }
 0x49e   : > { %v2251_v63 = vld [vmem:[%s885_s3] sm:$0xff]  ;;  %s3012_s3 = sld [smem:[#allocation14_spill]] }
 0x4ec   : > { %v1244_v27 = vpop.xlane.xlu2 %1243 }
 0x4ed   : > { %2365 = vrcp.f32 %v1244_v27 }
 0x4f3   : > { %v2366_v30 = vpop.eup %2365 }
 0x4f4   : > { %v1246_v31 = vmul.f32 %v2366_v30, %v2360_v18  ;;  %v1309_v32 = vpop.permute.xlu2 %1308 }
 0x4f5   : > { %1321 = vmatpush.bf16.msrb.mxu2 %v1309_v32 }
 0x4f6   : > { %v1247_v33 = vpack.c.bf16 %v1246_v31, %v1246_v31  ;;  %v2329_v31 = vld [vmem:[%s3013_s0] ss:$0 sm:$0xff]  ;;  %s891_s0 = scalar_lea.vmem %s3017_s7, %s3037_s4  ;;  %s3018_s4 = smov 88  }
 0x4f8   : > { %2168 = vmatmul.msk.bf16.vlgmr.msrb.gmra.mxu0 %vm1177_vm11, %v1247_v33  ;;  %2170 = vmatmul.msk.bf16.vlgmr.msrb.gmra.mxu2 %vm1177_vm11, %v1307_v35 }
 0x4f9   : > { %1510 = vmatpush.bf16.msra.mxu2 %v2257_v25 }
 0x4fc   : > { %v1364_v37 = vpop.xlane.xlu0 %1363 }
 0x4fd   : > { %2367 = vrcp.f32 %v1364_v37  ;;  %1511 = vmatpush.bf16.msra.mxu2 %v2256_v0 }
 0x503   : > { %v2368_v38 = vpop.eup %2367 }
 0x504   : > { %v1366_v10 = vmul.f32 %v2368_v38, %v2362_v22  ;;  %v2328_v22 = vld [vmem:[%s3012_s3] ss:$0 sm:$0xff]  ;;  %s899_s3 = scalar_lea.vmem %s2960_s26, %s3024_s11 }
 0x505   : > { %v2330_v38 = vld [vmem:[%s2949_s15] ss:$0 sm:$0xff] }
 0x506   : > { %v1367_v39 = vpack.c.bf16 %v1366_v10, %v1366_v10 }
 0x508   : > { %2172 = vmatmul.msk.bf16.vlgmr.msra.gmra.mxu0 %vm1177_vm11, %v1367_v39 }
 0x575   : > { %v1263_v40 = vpop.f32.mrf.mxu0 }
 0x576   : > { %1268 = vrot.lane.b32.xlu2 %v1263_v40, %s2974_s29  ;;  %s3019_s29 = smov 80  }
 0x57b   : > { %v1323_v41 = vpop.f32.mrf.mxu2 }
 0x57d   : > { %v1265_v42 = vpop.f32.mrf.mxu0 }
 0x57e   : > { %1328 = vrot.lane.b32.xlu2 %v1323_v41, %s2977_s10  ;;  %s3021_s10 = smov 16  }
 0x583   : > { %v1325_v43 = vpop.f32.mrf.mxu2 }
 0x585   : > { %v1383_v44 = vpop.f32.mrf.mxu0 }
 0x586   : > { %1388 = vrot.lane.b32.xlu0 %v1383_v44, %s2979_s2  ;;  %s3014_s2 = smov 120  }
 0x58d   : > { %v1385_v45 = vpop.f32.mrf.mxu0 }
 0x5d0   : > { %v1269_v46 = vpop.permute.xlu2 %1268 }
 0x5d1   : > { %1272 = vst.msk [vmem:[#allocation2] sm:$0xff] %vm1271_vm12, %v1269_v46 }
 0x5d8   : > { %v1329_v47 = vpop.permute.xlu2 %1328 }
 0x5d9   : > { %1332 = vst.msk [vmem:[#allocation2] sm:$0xff] %vm1331_vm13, %v1329_v47 }
 0x5f8   : > { %v1389_v49 = vpop.permute.xlu0 %1388 }
 0x5f9   : > { %1392 = vst.msk [vmem:[#allocation2] sm:$0xff] %vm1391_vm14, %v1389_v49 }
 0x600   : > { %v1393_v50 = vld [vmem:[#allocation2] sm:$0xff] }
 0x601   : > { %v1399_v24 = vpack.c.bf16 %v1393_v50, %v1393_v50 }
 0x603   : > { %2181 = vmatmul.msk.bf16.vlgmr.msra.gmra.mxu1 %vm935_vm0, %v1399_v24 }
 0x680   : > { %v1427_v52 = vpop.f32.mrf.mxu1 }
 0x681   : > { %v1428_v53 = vadd.f32 %v2327_v51, %v1427_v52 }
 0x683   : > { %v2772_v54 = vadd.f32 %v1428_v53, %v2629_v2  ;;  %v2258_v2 = vld [vmem:[%s2948_s14] sm:$0xff] }
 0x684   : > { %1552 = vmatpush.bf16.msrb.mxu3 %v2258_v2 }
 0x685   : > { %v1434_v55 = vsel %vm935_vm0, %v2772_v54, 0.0 }
 0x686   : > { %1435 = vadd.xlane.f32.xlu2 %v1434_v55 }
 0x687   : > { %2203 = vmatmul.msk.bf16.vlgmr.msrb.gmra.mxu3 %vm935_vm0, %v2251_v63 }
 0x688   : > { %v1429_v56 = vpop.f32.mrf.mxu1 }
 0x6f9   : > { %v1436_v57 = vpop.xlane.xlu2 %1435 }
 0x6fa   : > { %v1437_v58 = vmul.f32 %v1436_v57, %v2641_v14 }
 0x6fc   : > { %v1438_v59 = vsub.f32 %v2772_v54, %v1437_v58  ;;  %v930_v58 = vld [vmem:[%s891_s0] sm:$0x1] }
 0x6fd   : > { %vm931_vm7 = vcmp.gt.f32.partialorder %v930_v58, 0.0 }
 0x6fe   : > { %v1439_v60 = vmul.f32 %v1438_v59, %v1438_v59  ;;  %v1447_v29 = vmul.f32 %v2328_v22, %v1438_v59 }
 0x700   : > { %v1440_v61 = vsel %vm935_vm0, %v1439_v60, 0.0 }
 0x701   : > { %1441 = vadd.xlane.f32.xlu1 %v1440_v61  ;;  %v932_v61 = vsel %vm931_vm7, -1e+18, %v2440_v34 }
 0x702   : > { %v1563_v62 = vperm.slane %v932_v61, 0 }
 0x70a   : > { %v1554_v10 = vpop.f32.mrf.mxu3 }
 0x70b   : > { %v1555_v39 = vadd.f32 %v2330_v38, %v1554_v10 }
 0x70d   : > { %v1559_v40 = vpack.c.bf16 %v1555_v39, %v1555_v39 }
 0x70f   : > { %v1567_v43 = vunpack.c.l.b16 %v1559_v40 }
 0x712   : > { %v1556_v41 = vpop.f32.mrf.mxu3 }
 0x713   : > { %v1557_v42 = vadd.f32 %v2330_v38, %v1556_v41 }
 0x715   : > { %v1560_v44 = vpack.c.bf16 %v1557_v42, %v1557_v42 }
 0x717   : > { %v1568_v45 = vunpack.c.l.b16 %v1560_v44 }
 0x719   : > { %v2807_v46 = vpack.c.b16 %v1568_v45, %v1567_v43 }
 0x71b   : > { %1626 = vrot.lane.b32.xlu0 %v2807_v46, %s3014_s2  ;;  %1685 = vrot.lane.b32.xlu2 %v2807_v46, %s3015_s6  ;;  %v1574_v47 = vsel %vm1157_vm6, %v2807_v46, 0 }
 0x71c   : > { %1583 = vmatpush.bf16.xpose.msrb.mxu0 %v1574_v47 }
 0x774   : > { %v1442_v1 = vpop.xlane.xlu1 %1441 }
 0x775   : > { %v1443_v3 = vmul.f32 %v1442_v1, %v2663_v36  ;;  %v1686_v53 = vpop.permute.xlu2 %1685 }
 0x776   : > { %v1691_v55 = vsel %vm1157_vm6, %v1686_v53, 0 }
 0x777   : > { %2369 = vrsqrt.f32 %v1443_v3  ;;  %vm1455_vm15 = vcmp.eq.f32.partialorder %v1443_v3, inf  ;;  %v1458_v13 = vand.u32 2147483648, %v1443_v3  ;;  %vm1457_vm1 = vcmp.eq.f32.partialorder %v1443_v3, 0.0  ;;  %1700 = vmatpush.bf16.xpose.msra.mxu0 %v1691_v55 }
 0x77d   : > { %v2370_v4 = vpop.eup %2369 }
 0x77e   : > { %v1449_v5 = vmul.f32 %v2370_v4, %v1443_v3 }
 0x780   : > { %v1450_v6 = vmul.f32 %v2370_v4, %v1449_v5 }
 0x782   : > { %v1451_v7 = vmul.f32 0.5, %v1450_v6 }
 0x784   : > { %v1452_v8 = vsub.f32 1.5, %v1451_v7 }
 0x786   : > { %v1453_v9 = vmul.f32 %v2370_v4, %v1452_v8 }
 0x788   : > { %v1454_v12 = vmul.f32 %v1453_v9, %v1443_v3 }
 0x78a   : > { %v1456_v15 = vsel %vm1455_vm15, %v1443_v3, %v1454_v12 }
 0x78b   : > { %v1459_v16 = vsel %vm1457_vm1, %v1458_v13, %v1456_v15 }
 0x78c   : > { %v1460_v18 = vadd.f32 1e-06, %v1459_v16 }
 0x78d   : > { %v1627_v56 = vpop.permute.xlu0 %1626 }
 0x78e   : > { %2371 = vrcp.f32 %v1460_v18  ;;  %v1472_v21 = vand.u32 2147483648, %v1460_v18  ;;  %v1470_v26 = vand.u32 2147483647, %v1460_v18  ;;  %vm1466_vm3 = vweird.f32 %v1460_v18 }
 0x78f   : > { %v1632_v57 = vsel %vm1157_vm6, %v1627_v56, 0 }
 0x790   : > { %v1473_v28 = vor.u32 1.1754944e-38, %v1472_v21  ;;  %vm1471_vm5 = vcmp.eq.f32.partialorder %v1470_v26, 8.507059e+37  ;;  %1641 = vmatpush.bf16.xpose.msrb.mxu2 %v1632_v57 }
 0x794   : > { %v2372_v19 = vpop.eup %2371 }
 0x795   : > { %v1462_v11 = vmul.f32 %v2372_v19, %v1460_v18  ;;  %vm1467_vm2 = vweird.f32 %v2372_v19 }
 0x796   : > { %vm1468_vm4 = vmor %vm1466_vm3, %vm1467_vm2 }
 0x797   : > { %v1463_v20 = vsub.f32 1.0, %v1462_v11 }
 0x799   : > { %v1464_v23 = vmul.f32 %v2372_v19, %v1463_v20 }
 0x79b   : > { %v1465_v27 = vadd.f32 %v2372_v19, %v1464_v23 }
 0x79d   : > { %v1469_v30 = vsel %vm1468_vm4, %v2372_v19, %v1465_v27 }
 0x79e   : > { %v1474_v32 = vsel %vm1471_vm5, %v1473_v28, %v1469_v30 }
 0x79f   : > { %v1475_v33 = vmul.f32 %v1474_v32, %v1447_v29 }
 0x7a1   : > { %v1479_v35 = vadd.f32 %v2329_v31, %v1475_v33 }
 0x7a3   : > { %v1485_v37 = vpack.c.bf16 %v1479_v35, %v1479_v35 }
 0x7a5   : > { %2190 = vmatmul.msk.bf16.vlgmr.msra.gmra.mxu2 %vm935_vm0, %v1485_v37 }
 0x828   : > { %v1513_v48 = vpop.f32.mrf.mxu2 }
 0x829   : > { %v1514_v49 = vadd.f32 %v2331_v17, %v1513_v48 }
 0x82b   : > { %v1561_v50 = vpack.c.bf16 %v1514_v49, %v1514_v49 }
 0x82d   : > { %v1622_v24 = vunpack.c.l.b16 %v1561_v50  ;;  %2204 = vmatmul.msk.bf16.vlgmr.msrb.gmra.mxu0 %vm1157_vm6, %v1561_v50 }
 0x82f   : > { %v1623_v51 = vpack.c.b16 %v1622_v24, %v1622_v24 }
 0x830   : > { %v1515_v52 = vpop.f32.mrf.mxu2 }
 0x831   : > { %1683 = vrot.lane.b32.xlu1 %v1623_v51, %s3015_s6  ;;  %1624 = vrot.lane.b32.xlu0 %v1623_v51, %s3014_s2  ;;  %s3022_s2 = smov 8   ;;  %s3023_s6 = smov 24  }
 0x839   : > { %1744 = vrot.lane.b32.xlu0 %v2807_v46, %s3016_s25 }
 0x841   : > { %1742 = vrot.lane.b32.xlu0 %v1623_v51, %s3016_s25 }
 0x8a3   : > { %v1684_v59 = vpop.permute.xlu1 %1683  ;;  %v1625_v60 = vpop.permute.xlu0 %1624 }
 0x8a4   : > { %2206 = vmatmul.msk.bf16.vlgmr.msrb.gmra.mxu2 %vm1157_vm6, %v1625_v60  ;;  %2208 = vmatmul.msk.bf16.vlgmr.msra.gmra.mxu0 %vm1157_vm6, %v1684_v59 }
 0x8aa   : > { %v1585_v2 = vpop.f32.mrf.mxu0 }
 0x8ab   : > { %v1586_v63 = vadd.f32 %v1585_v2, %v1563_v62  ;;  %v1745_v25 = vpop.permute.xlu0 %1744 }
 0x8ac   : > { %v1750_v0 = vsel %vm1157_vm6, %v1745_v25, 0 }
 0x8ad   : > { %1759 = vmatpush.bf16.xpose.msra.mxu2 %v1750_v0  ;;  %v1589_v1 = vsel %vm1177_vm11, %v1586_v63, -inf }
 0x8ae   : > { %1590 = vmax.xlane.f32.xlu2 %v1589_v1 }
 0x8b2   : > { %v1587_v3 = vpop.f32.mrf.mxu0 }
 0x8b3   : > { %v1743_v4 = vpop.permute.xlu0 %1742 }
 0x8b4   : > { %2210 = vmatmul.msk.bf16.vlgmr.msra.gmra.mxu2 %vm1157_vm6, %v1743_v4  ;;  %v2261_v4 = vld [vmem:[%s2950_s16 + $0x8] sm:$0xff] }
 0x8b5   : > { %1832 = vmatpush.bf16.msrb.mxu0 %v2261_v4 }
 0x8c6   : > { %1659 = vrot.lane.b32.xlu2 %v2807_v46, %s3018_s4 }
 0x8ce   : > { %1718 = vrot.lane.b32.xlu2 %v2807_v46, %s3019_s29 }
 0x921   : > { %v1702_v34 = vpop.f32.mrf.mxu0  ;;  %v1591_v5 = vpop.xlane.xlu2 %1590 }
 0x922   : > { %v1592_v8 = vsub.f32 %v1586_v63, %v1591_v5  ;;  %v1703_v16 = vadd.f32 %v1702_v34, %v1563_v62  ;;  %v2260_v34 = vld [vmem:[%s2950_s16] sm:$0xff] }
 0x923   : > { %1833 = vmatpush.bf16.msrb.mxu0 %v2260_v34 }
 0x924   : > { %v1593_v15 = vmul.f32 1.442695, %v1592_v8  ;;  %v1706_v19 = vsel %vm1177_vm11, %v1703_v16, -inf }
 0x926   : > { %2373 = vpow2.f32 %v1593_v15 }
 0x927   : > { %v1643_v6 = vpop.f32.mrf.mxu2 }
 0x928   : > { %v1644_v7 = vadd.f32 %v1643_v6, %v1563_v62 }
 0x929   : > { %v1704_v9 = vpop.f32.mrf.mxu0  ;;  %v1660_v12 = vpop.permute.xlu2 %1659 }
 0x92a   : > { %1672 = vmatpush.bf16.msra.mxu3 %v1660_v12  ;;  %v1647_v13 = vsel %vm1177_vm11, %v1644_v7, -inf  ;;  %v2332_v12 = vld [vmem:[%s2951_s17] ss:$0 sm:$0xff] }
 0x92b   : > { %1648 = vmax.xlane.f32.xlu0 %v1647_v13 }
 0x92c   : > { %v2374_v11 = vpop.eup %2373 }
 0x92d   : > { %v1595_v23 = vsel %vm1177_vm11, %v2374_v11, 0.0 }
 0x92f   : > { %v1645_v18 = vpop.f32.mrf.mxu2 }
 0x931   : > { %v1719_v17 = vpop.permute.xlu2 %1718 }
 0x933   : > { %1707 = vmax.xlane.f32.xlu0 %v1706_v19 }
 0x937   : > { %v1761_v20 = vpop.f32.mrf.mxu2 }
 0x938   : > { %v1762_v21 = vadd.f32 %v1761_v20, %v1563_v62 }
 0x93a   : > { %v1765_v22 = vsel %vm1177_vm11, %v1762_v21, -inf }
 0x93b   : > { %1766 = vmax.xlane.f32.xlu1 %v1765_v22  ;;  %1596 = vadd.xlane.f32.xlu0 %v1595_v23 }
 0x93f   : > { %v1763_v26 = vpop.f32.mrf.mxu2 }
 0x940   : > { %v2263_v26 = vld [vmem:[%s2954_s20 + $0x8] sm:$0xff] }
 0x954   : > { %1601 = vrot.lane.b32.xlu1 %v2807_v46, %s3006_s5  ;;  %s3020_s5 = smov 72  }
 0x99e   : > { %v1649_v27 = vpop.xlane.xlu0 %1648 }
 0x99f   : > { %v1650_v30 = vsub.f32 %v1644_v7, %v1649_v27 }
 0x9a1   : > { %v1651_v32 = vmul.f32 1.442695, %v1650_v30 }
 0x9a6   : > { %v1708_v28 = vpop.xlane.xlu0 %1707 }
 0x9a7   : > { %v1709_v29 = vsub.f32 %v1703_v16, %v1708_v28 }
 0x9a9   : > { %v1710_v31 = vmul.f32 1.442695, %v1709_v29 }
 0x9ab   : > { %2375 = vpow2.f32 %v1710_v31 }
 0x9ac   : > { %2377 = vpow2.f32 %v1651_v32 }
 0x9ae   : > { %v1767_v33 = vpop.xlane.xlu1 %1766  ;;  %v1597_v40 = vpop.xlane.xlu0 %1596 }
 0x9af   : > { %v1768_v37 = vsub.f32 %v1762_v21, %v1767_v33  ;;  %v2267_v33 = vld [vmem:[%s2956_s22 + $0x18] sm:$0xff] }
 0x9b0   : > { %1971 = vmatpush.bf16.msrb.mxu2 %v2267_v33 }
 0x9b1   : > { %v2376_v35 = vpop.eup %2375  ;;  %v1769_v10 = vmul.f32 1.442695, %v1768_v37  ;;  %v2266_v37 = vld [vmem:[%s2956_s22 + $0x10] sm:$0xff] }
 0x9b2   : > { %v1712_v38 = vsel %vm1177_vm11, %v2376_v35, 0.0  ;;  %v2378_v39 = vpop.eup %2377 }
 0x9b3   : > { %1713 = vadd.xlane.f32.xlu0 %v1712_v38  ;;  %2379 = vpow2.f32 %v1769_v10  ;;  %v1653_v41 = vsel %vm1177_vm11, %v2378_v39, 0.0 }
 0x9b4   : > { %2381 = vrcp.f32 %v1597_v40  ;;  %1972 = vmatpush.bf16.msrb.mxu2 %v2266_v37 }
 0x9b9   : > { %v2380_v42 = vpop.eup %2379 }
 0x9ba   : > { %v2382_v43 = vpop.eup %2381  ;;  %v1771_v44 = vsel %vm1177_vm11, %v2380_v42, 0.0 }
 0x9bb   : > { %1654 = vadd.xlane.f32.xlu0 %v1653_v41  ;;  %v1599_v45 = vmul.f32 %v2382_v43, %v2374_v11 }
 0x9bd   : > { %v1600_v48 = vpack.c.bf16 %v1599_v45, %v1599_v45  ;;  %v2333_v45 = vld [vmem:[%s2952_s18] ss:$0 sm:$0xff] }
 0x9c3   : > { %1772 = vadd.xlane.f32.xlu0 %v1771_v44 }
 0x9c6   : > { %v1602_v47 = vpop.permute.xlu1 %1601 }
 0x9c7   : > { %1614 = vmatpush.bf16.msrb.mxu1 %v1602_v47 }
 0x9ca   : > { %2205 = vmatmul.msk.bf16.vlgmr.msrb.gmra.mxu1 %vm1177_vm11, %v1600_v48 }
 0x9cb   : > { %1731 = vmatpush.bf16.msra.mxu1 %v1719_v17 }
 0x9cf   : > { %1918 = vmatpush.bf16.msrb.mxu1 %v2263_v26 }
 0x9d7   : > { %1777 = vrot.lane.b32.xlu0 %v2807_v46, %s3020_s5 }
 0xa26   : > { %v1714_v49 = vpop.xlane.xlu0 %1713 }
 0xa27   : > { %2383 = vrcp.f32 %v1714_v49 }
 0xa2d   : > { %v2384_v50 = vpop.eup %2383 }
 0xa2e   : > { %v1716_v24 = vmul.f32 %v2384_v50, %v2376_v35  ;;  %v1655_v51 = vpop.xlane.xlu0 %1654 }
 0xa2f   : > { %2385 = vrcp.f32 %v1655_v51  ;;  %v2334_v51 = vld [vmem:[%s2953_s19] ss:$0 sm:$0xff] }
 0xa30   : > { %v1717_v52 = vpack.c.bf16 %v1716_v24, %v1716_v24 }
 0xa32   : > { %2209 = vmatmul.msk.bf16.vlgmr.msra.gmra.mxu1 %vm1177_vm11, %v1717_v52 }
 0xa35   : > { %v2386_v53 = vpop.eup %2385 }
 0xa36   : > { %v1657_v55 = vmul.f32 %v2386_v53, %v2378_v39  ;;  %v1773_v57 = vpop.xlane.xlu0 %1772 }
 0xa37   : > { %2387 = vrcp.f32 %v1773_v57  ;;  %v2265_v57 = vld [vmem:[%s2956_s22 + $0x8] sm:$0xff] }
 0xa38   : > { %v1658_v56 = vpack.c.bf16 %v1657_v55, %v1657_v55  ;;  %1973 = vmatpush.bf16.msrb.mxu2 %v2265_v57 }
 0xa3a   : > { %2207 = vmatmul.msk.bf16.vlgmr.msra.gmra.mxu3 %vm1177_vm11, %v1658_v56 }
 0xa3d   : > { %v2388_v58 = vpop.eup %2387 }
 0xa3e   : > { %v1775_v59 = vmul.f32 %v2388_v58, %v2380_v42  ;;  %v2264_v58 = vld [vmem:[%s2956_s22] sm:$0xff] }
 0xa3f   : > { %1974 = vmatpush.bf16.msrb.mxu2 %v2264_v58 }
 0xa40   : > { %v1776_v61 = vpack.c.bf16 %v1775_v59, %v1775_v59  ;;  %v2335_v59 = vld [vmem:[%s2955_s21] ss:$0 sm:$0xff] }
 0xa47   : > { %v1616_v60 = vpop.f32.mrf.mxu1 }
 0xa48   : > { %1620 = vst.msk [vmem:[#allocation2] sm:$0xff] %vm1157_vm6, %v1616_v60 }
 0xa49   : > { %v1778_v46 = vpop.permute.xlu0 %1777 }
 0xa4a   : > { %1790 = vmatpush.bf16.msrb.mxu3 %v1778_v46 }
 0xa4d   : > { %2211 = vmatmul.msk.bf16.vlgmr.msrb.gmra.mxu3 %vm1177_vm11, %v1776_v61 }
 0xa4f   : > { %v1618_v62 = vpop.f32.mrf.mxu1 }
 0xaaf   : > { %v1733_v2 = vpop.f32.mrf.mxu1 }
 0xab0   : > { %1738 = vrot.lane.b32.xlu2 %v1733_v2, %s3021_s10 }
 0xab7   : > { %v1735_v63 = vpop.f32.mrf.mxu1 }
 0xab8   : > { %v2336_v63 = vld [vmem:[%s2957_s23] ss:$0 sm:$0xff] }
 0xabd   : > { %v1674_v25 = vpop.f32.mrf.mxu3 }
 0xabe   : > { %1679 = vrot.lane.b32.xlu1 %v1674_v25, %s3022_s2 }
 0xac5   : > { %v1676_v0 = vpop.f32.mrf.mxu3 }
 0xad0   : > { %v1792_v1 = vpop.f32.mrf.mxu3 }
 0xad1   : > { %1797 = vrot.lane.b32.xlu1 %v1792_v1, %s3023_s6 }
 0xad8   : > { %v1794_v3 = vpop.f32.mrf.mxu3 }
 0xb0a   : > { %v1739_v6 = vpop.permute.xlu2 %1738 }
 0xb30   : > { %v1680_v5 = vpop.permute.xlu1 %1679 }
 0xb31   : > { %1682 = vst.msk [vmem:[#allocation2] sm:$0xff] %vm1271_vm12, %v1680_v5 }
 0xb32   : > { %1741 = vst.msk [vmem:[#allocation2] sm:$0xff] %vm1331_vm13, %v1739_v6  ;;  %vm1963_vm13 = vcmask 523264  }
 0xb43   : > { %v1798_v7 = vpop.permute.xlu1 %1797 }
 0xb44   : > { %1800 = vst.msk [vmem:[#allocation2] sm:$0xff] %vm1391_vm14, %v1798_v7 }
 0xb4b   : > { %v1801_v8 = vld [vmem:[#allocation2] sm:$0xff] }
 0xb4c   : > { %v1807_v9 = vpack.c.bf16 %v1801_v8, %v1801_v8 }
 0xb4e   : > { %2220 = vmatmul.msk.bf16.vlgmr.msrb.gmra.mxu0 %vm935_vm0, %v1807_v9 }
 0xbcb   : > { %v1835_v13 = vpop.f32.mrf.mxu0 }
 0xbcc   : > { %v1836_v15 = vadd.f32 %v2332_v12, %v1835_v13 }
 0xbce   : > { %v2873_v16 = vadd.f32 %v1836_v15, %v2772_v54  ;;  %v2262_v54 = vld [vmem:[%s2954_s20] sm:$0xff] }
 0xbcf   : > { %1919 = vmatpush.bf16.msrb.mxu1 %v2262_v54 }
 0xbd0   : > { %v1842_v18 = vsel %vm935_vm0, %v2873_v16, 0.0 }
 0xbd1   : > { %1843 = vadd.xlane.f32.xlu2 %v1842_v18 }
 0xbd3   : > { %v1837_v19 = vpop.f32.mrf.mxu0 }
 0xc44   : > { %v1844_v11 = vpop.xlane.xlu2 %1843 }
 0xc45   : > { %v1845_v20 = vmul.f32 %v1844_v11, %v2641_v14 }
 0xc47   : > { %v1846_v21 = vsub.f32 %v2873_v16, %v1845_v20 }
 0xc49   : > { %v1847_v22 = vmul.f32 %v1846_v21, %v1846_v21  ;;  %v1855_v50 = vmul.f32 %v2333_v45, %v1846_v21 }
 0xc4b   : > { %v1848_v23 = vsel %vm935_vm0, %v1847_v22, 0.0 }
 0xc4c   : > { %1849 = vadd.xlane.f32.xlu0 %v1848_v23 }
 0xcbf   : > { %v1850_v27 = vpop.xlane.xlu0 %1849 }
 0xcc0   : > { %v1851_v28 = vmul.f32 %v1850_v27, %v2663_v36 }
 0xcc2   : > { %2389 = vrsqrt.f32 %v1851_v28  ;;  %vm1863_vm6 = vcmp.eq.f32.partialorder %v1851_v28, inf  ;;  %v1866_v10 = vand.u32 2147483648, %v1851_v28  ;;  %vm1865_vm8 = vcmp.eq.f32.partialorder %v1851_v28, 0.0 }
 0xcc8   : > { %v2390_v14 = vpop.eup %2389 }
 0xcc9   : > { %v1857_v29 = vmul.f32 %v2390_v14, %v1851_v28 }
 0xccb   : > { %v1858_v30 = vmul.f32 %v2390_v14, %v1857_v29 }
 0xccd   : > { %v1859_v31 = vmul.f32 0.5, %v1858_v30 }
 0xccf   : > { %v1860_v32 = vsub.f32 1.5, %v1859_v31 }
 0xcd1   : > { %v1861_v35 = vmul.f32 %v2390_v14, %v1860_v32 }
 0xcd3   : > { %v1862_v38 = vmul.f32 %v1861_v35, %v1851_v28 }
 0xcd5   : > { %v1864_v36 = vsel %vm1863_vm6, %v1851_v28, %v1862_v38 }
 0xcd6   : > { %v1867_v39 = vsel %vm1865_vm8, %v1866_v10, %v1864_v36 }
 0xcd7   : > { %v1868_v40 = vadd.f32 1e-06, %v1867_v39 }
 0xcd9   : > { %2391 = vrcp.f32 %v1868_v40  ;;  %v1880_v44 = vand.u32 2147483648, %v1868_v40  ;;  %v1878_v17 = vand.u32 2147483647, %v1868_v40  ;;  %vm1874_vm10 = vweird.f32 %v1868_v40 }
 0xcdb   : > { %v1881_v49 = vor.u32 1.1754944e-38, %v1880_v44  ;;  %vm1879_vm12 = vcmp.eq.f32.partialorder %v1878_v17, 8.507059e+37 }
 0xcdf   : > { %v2392_v41 = vpop.eup %2391 }
 0xce0   : > { %v1870_v42 = vmul.f32 %v2392_v41, %v1868_v40  ;;  %vm1875_vm9 = vweird.f32 %v2392_v41 }
 0xce1   : > { %vm1876_vm11 = vmor %vm1874_vm10, %vm1875_vm9 }
 0xce2   : > { %v1871_v43 = vsub.f32 1.0, %v1870_v42 }
 0xce4   : > { %v1872_v47 = vmul.f32 %v2392_v41, %v1871_v43 }
 0xce6   : > { %v1873_v48 = vadd.f32 %v2392_v41, %v1872_v47 }
 0xce8   : > { %v1877_v24 = vsel %vm1876_vm11, %v2392_v41, %v1873_v48 }
 0xce9   : > { %v1882_v52 = vsel %vm1879_vm12, %v1881_v49, %v1877_v24 }
 0xcea   : > { %v1883_v53 = vmul.f32 %v1882_v52, %v1855_v50 }
 0xcec   : > { %v1887_v55 = vadd.f32 %v2334_v51, %v1883_v53 }
 0xcee   : > { %v1893_v56 = vpack.c.bf16 %v1887_v55, %v1887_v55 }
 0xcf0   : > { %2229 = vmatmul.msk.bf16.vlgmr.msrb.gmra.mxu1 %vm935_vm0, %v1893_v56 }
 0xd6d   : > { %v1921_v60 = vpop.f32.mrf.mxu1 }
 0xd6e   : > { %v1922_v46 = vadd.f32 %v2335_v59, %v1921_v60 }
 0xd70   : > { %v1925_v61 = vmax.f32 %v1922_v46, 0.0 }
 0xd72   : > { %v1935_v62 = vpack.c.bf16 %v1925_v61, %v1925_v61 }
 0xd74   : > { %2246 = vmatmul.msk.bf16.vlgmr.msrb.gmra.mxu2 %vm1963_vm13, %v1935_v62 }
 0xd75   : > { %v1923_v2 = vpop.f32.mrf.mxu1 }
 0xdf7   : > { %v1976_v25 = vpop.f32.mrf.mxu2 }
 0xdf8   : > { %v1977_v0 = vadd.f32 %v2336_v63, %v1976_v25 }
 0xdfa   : > { %v1980_v1 = vadd.f32 %v1977_v0, %v2873_v16 }
 0xdfc   : > { %1981 = vst.msk [vmem:[%s899_s3] sm:$0xff] %vm935_vm0, %v1980_v1 }
 0xdff   : > { %v1978_v3 = vpop.f32.mrf.mxu2 }
 0xe00 PF: > { %s38_s9 = sadd.s32 1, %s2431_s9   ;;  %s3025_s1 = sld [smem:[#allocation3_spill]] }
 0xe01   : > { %p35_p7 = scmp.ge.s32.totalorder %s38_s9, 6   ;;  %s3026_s7 = smov %s2423_s8 }
 0xe02   : > { %s3027_s4 = smov %s2427_s30  ;;  %s3028_s8 = smov %s3031_s24 }
 0xe03   :  { %37 = sbr.rel (!%p35_p7) target bundleno = 14 (0xe), region = 176 }
 0xe06   : > { %s3029_s30 = smov %s3025_s1 }

// kernel: transformer_decoder_forward.3
= control target key start
LH: loop header
LB: loop body
LE: loop exit
PB: predicated region body
PF: predicated region fallthrough
CT: control target
= control target key end

     0   :  { %s3179_s0 = inlined_call_operand.vmem [shape: f32[2,16,32], index: 0, kind: input, shape index: {}]   ;;  %s3180_s1 = inlined_call_operand.vmem [shape: bf16[2,16,32], index: 1, kind: input, shape index: {}]   ;;  %s3181_s2 = inlined_call_operand.vmem [shape: f32[2,1,16], index: 2, kind: input, shape index: {}]   ;;  %s3182_s3 = inlined_call_operand.vmem [shape: f32[2,1,16], index: 3, kind: input, shape index: {}]   ;;  %s3183_s4 = inlined_call_operand.vmem [shape: f32[1,32], index: 4, kind: input, shape index: {}]   ;;  %s3184_s5 = inlined_call_operand.vmem [shape: f32[1,32], index: 5, kind: input, shape index: {}]   ;;  %s3185_s6 = inlined_call_operand.vmem [shape: bf16[32,96], index: 6, kind: input, shape index: {}]   ;;  %s3186_s7 = inlined_call_operand.vmem [shape: f32[1,96], index: 7, kind: input, shape index: {}]   ;;  %s3187_s8 = inlined_call_operand.vmem [shape: bf16[32,32], index: 8, kind: input, shape index: {}]   ;;  %s3188_s9 = inlined_call_operand.vmem [shape: f32[1,32], index: 9, kind: input, shape index: {}]   ;;  %s3189_s10 = inlined_call_operand.vmem [shape: f32[1,32], index: 10, kind: input, shape index: {}]   ;;  %s3190_s11 = inlined_call_operand.vmem [shape: f32[1,32], index: 11, kind: input, shape index: {}]   ;;  %s3191_s12 = inlined_call_operand.vmem [shape: bf16[32,32], index: 12, kind: input, shape index: {}]   ;;  %s3192_s13 = inlined_call_operand.vmem [shape: f32[1,32], index: 13, kind: input, shape index: {}]   ;;  %s3193_s14 = inlined_call_operand.vmem [shape: bf16[32,64], index: 14, kind: input, shape index: {}]   ;;  %s3194_s15 = inlined_call_operand.vmem [shape: f32[1,64], index: 15, kind: input, shape index: {}]   ;;  %s3195_s16 = inlined_call_operand.vmem [shape: bf16[32,32], index: 16, kind: input, shape index: {}]   ;;  %s3196_s17 = inlined_call_operand.vmem [shape: f32[1,32], index: 17, kind: input, shape index: {}]   ;;  %s3197_s18 = inlined_call_operand.vmem [shape: f32[1,32], index: 18, kind: input, shape index: {}]   ;;  %s3198_s19 = inlined_call_operand.vmem [shape: f32[1,32], index: 19, kind: input, shape index: {}]   ;;  %s3199_s20 = inlined_call_operand.vmem [shape: bf16[32,64], index: 20, kind: input, shape index: {}]   ;;  %s3200_s21 = inlined_call_operand.vmem [shape: f32[1,64], index: 21, kind: input, shape index: {}]   ;;  %s3201_s22 = inlined_call_operand.vmem [shape: bf16[64,32], index: 22, kind: input, shape index: {}]   ;;  %s3202_s23 = inlined_call_operand.hbm [shape: f32[1,32], index: 23, kind: input, shape index: {}]   ;;  %s3203_s24 = inlined_call_operand.vmem [shape: f32[1,32], index: 24, kind: input, shape index: {}]   ;;  %s3204_s25 = inlined_call_operand.vmem [shape: f32[1,32], index: 25, kind: input, shape index: {}]   ;;  %s3205_s26 = inlined_call_operand.vmem [shape: f32[2,16,32], index: 26, kind: output, shape index: {0}]   ;;  %s3206_s27 = inlined_call_operand.vmem [shape: f32[2,16,16], index: 27, kind: output, shape index: {1}]   ;;  %s3207_s28 = inlined_call_operand.vmem [shape: f32[2,16,32], index: 28, kind: output, shape index: {2}]  }
   0x1   :  { %3233 = sst [smem:[#allocation9_spill]] %s3179_s0 }
   0x2   :  { %3234 = sst [smem:[#allocation10_spill]] %s3180_s1 }
   0x3   :  { %3235 = sst [smem:[#allocation11_spill]] %s3181_s2 }
   0x4   :  { %3236 = sst [smem:[#allocation12_spill]] %s3182_s3 }
   0x5   :  { %3237 = sst [smem:[#allocation13_spill]] %s3183_s4 }
   0x6   :  { %3238 = sst [smem:[#allocation14_spill]] %s3184_s5 }
   0x7   :  { %3239 = sst [smem:[#allocation15_spill]] %s3185_s6 }
   0x8   :  { %3240 = sst [smem:[#allocation16_spill]] %s3186_s7 }
   0x9   :  { %3241 = sst [smem:[#allocation17_spill]] %s3187_s8 }
   0xa   :  { %3242 = sst [smem:[#allocation18_spill]] %s3188_s9 }
   0xb   :  { %3243 = sst [smem:[#allocation19_spill]] %s3189_s10 }
   0xc   :  { %3244 = sst [smem:[#allocation20_spill]] %s3190_s11 }
   0xd   :  { %3245 = sst [smem:[#allocation21_spill]] %s3191_s12 }
   0xe   :  { %3246 = sst [smem:[#allocation22_spill]] %s3202_s23 }
   0xf   :  { %3247 = sst [smem:[#allocation23_spill]] %s3205_s26 }
  0x10   :  { %3248 = sst [smem:[#allocation24_spill]] %s3207_s28 }
  0x11   :  { %34 = vsyncpa [#allocation4], 0  ;;  %s2819_s8 = smov 0   ;;  %s2821_s5 = smov 0  }
  0x12   :  { %s2823_s9 = smov 0   ;;  %s2825_s30 = smov 0  }
  0x13   :  { %s2827_s3 = smov 0  }
  0x14 LB: > { %3249 = sst [smem:[#allocation6_spill]] %s2653_s30  ;;  %s2312_s6 = sadd.s32 4294967295, %s2657_s3   ;;  %s2657_s3 = sphi %s2827_s3, %s40_s3   ;;  %s2653_s30 = sphi %s2825_s30, %s3282_s30   ;;  %s2649_s9 = sphi %s2823_s9, %s3284_s9   ;;  %s2645_s5 = sphi %s2821_s5, %s3280_s5   ;;  %s2641_s8 = sphi %s2819_s8, %s3283_s8  }
  0x15   : > { %s49_s10 = sadd.s32 1, %s2649_s9  ;;  %s52_s0 = sadd.s32 1, %s2653_s30 }
  0x16   : > { %p50_p0 = scmp.ge.s32.totalorder %s49_s10, 2  ;;  %p2314_p1 = scmp.ge.s32.totalorder %s2657_s3, 1 }
  0x17   : > { %p707_p2 = scmp.lt.s32.totalorder %s2657_s3, 5  ;;  %p2451_p5 = scmp.eq.s32.totalorder %s2312_s6, 0 }
  0x18   : > { %s3286_s10 = smov (%p50_p0, %s49_s10), 0  ;;  %s3288_s0 = smov (!%p50_p0, %s52_s0), %s2653_s30 }
  0x19   : > { %3250 = sst [smem:[#allocation7_spill]] %s3286_s10  ;;  %p708_p3 = pnand %p2314_p1, %p707_p2 }
  0x1a   : > { %p54_p4 = scmp.ge.s32.totalorder %s3288_s0, 2  ;;  %s3251_s23 = sld [smem:[#allocation22_spill]] }
  0x1b   : > { %p2447_p6 = pneg %p708_p3  ;;  %s2659_s7 = smov [#allocation3]  }
  0x1c   : > { %s3290_s0 = smov (%p54_p4, %s3288_s0), 0  ;;  %s778_s12 = sshll.u32 %s2659_s7, 4  ;;  %s779_s12 = int_to_ptr.vmem [resolvable:$true] %s778_s12 }
  0x1d   : > { %3252 = sst [smem:[#allocation8_spill]] %s3290_s0  ;;  %p2448_p7 = pnand %p2451_p5, %p2447_p6 }
  0x1e   : > { %825 = sbr.rel (%p708_p3) target bundleno = 3882 (0xf2a), region = 124 }
  0x20   : > { %s776_s2 = sshll.u32 %s3251_s23, 4  ;;  %s777_s2 = int_to_ptr.hbm [resolvable:$true] %s776_s2 }
  0x21   : > { %2450 = dma.hbm_to_vmem [thread:$0]  (!%p2448_p7), %s777_s2, 16, %s779_s12, [#allocation4]  }
  0x23   : > { %2636 = dma.done.wait (%p2451_p5), [#allocation4], 16  }
  0x24   : > { %2638 = vsyncadd (%p2451_p5), [#allocation4], 4294967280  ;;  %p930_p8 = scmp.lt.s32.totalorder %s2645_s5, 1  ;;  %s3213_s1 = sshll.u32 %s2641_s8, 3  ;;  %vm997_vm0 = vcmask 261120   ;;  %v2660_v6 = vmov 32.0  }
  0x25   : > { %s3253_s29 = sld [smem:[#allocation9_spill]]  ;;  %2525 = vrcp.f32 %v2660_v6  ;;  %v2662_v30 = vmov 31.0   ;;  %p948_p9 = scmp.lt.s32.totalorder %s2641_s8, 1 }
  0x26   : > { %s3292_s5 = smov (!%p930_p8, %s2645_s5), 1  ;;  %s3254_s12 = sld [smem:[#allocation15_spill]]  ;;  %2527 = vrcp.f32 %v2662_v30 }
  0x27   : > { %s2424_s4 = sshll.u32 %s3292_s5, 4  ;;  %s3255_s2 = sld [smem:[#allocation16_spill]] }
  0x28   : > { %s3256_s11 = sld [smem:[#allocation13_spill]]  ;;  %s2323_s6 = sshll.u32 %s3292_s5, 1 }
  0x29   : > { %s3258_s28 = sld [smem:[#allocation24_spill]] }
  0x2a   : > { %s3265_s30 = sld [smem:[#allocation21_spill]] }
  0x2b   : > { %s934_s23 = scalar_lea.vmem %s3253_s29, %s2424_s4  ;;  %v2526_v7 = vpop.eup %2525  ;;  %s3214_s4 = smov 96  }
  0x2c   : > { %s974_s7 = scalar_lea.vmem %s934_s23, %s3213_s1  ;;  %v972_v0 = vld [vmem:[%s934_s23] sm:$0xff]  ;;  %v973_v1 = vld [vmem:[%s934_s23 + $0x8] sm:$0xff]  ;;  %v1002_v8 = vmul.f32 32.0, %v2526_v7  ;;  %vm1006_vm1 = vweird.f32 %v2526_v7  ;;  %v2528_v31 = vpop.eup %2527  ;;  %s3219_s1 = smov 120  }
  0x2d   : > { %v2864_v2 = vld [vmem:[%s974_s7] sm:$0xff]  ;;  %v1061_v3 = vsel %vm997_vm0, %v972_v0, 0.0  ;;  %v1064_v5 = vsel %vm997_vm0, %v973_v1, 0.0  ;;  %v2428_v11 = vld [vmem:[%s3254_s12 + $0x8] sm:$0xff]  ;;  %v1015_v32 = vmul.f32 31.0, %v2528_v31  ;;  %vm1019_vm2 = vweird.f32 %v2528_v31  ;;  %s949_s23 = scalar_select %p948_p9, %s2641_s8, 1 }
  0x2e   : > { %v998_v4 = vsel %vm997_vm0, %v2864_v2, 0.0  ;;  %1062 = vadd.xlane.f32.xlu0 %v1061_v3  ;;  %v1003_v9 = vsub.f32 1.0, %v1002_v8  ;;  %1177 = vmatpush.bf16.msra.mxu0 %v2428_v11  ;;  %v2427_v13 = vld [vmem:[%s3254_s12] sm:$0xff]  ;;  %s3227_s7 = smov 104   ;;  %s3267_s10 = sld [smem:[#allocation19_spill]] }
  0x2f   : > { %999 = vadd.xlane.f32.xlu1 %v998_v4  ;;  %v1016_v33 = vsub.f32 1.0, %v1015_v32  ;;  %s951_s12 = sadd.s32 %s2323_s6, %s949_s23  ;;  %s3224_s23 = smov 16  }
  0x30   : > { %v1004_v10 = vmul.f32 %v2526_v7, %v1003_v9  ;;  %s2929_s29 = sshll.u32 %s951_s12, 3  ;;  %s3259_s12 = smov 96  }
  0x31   : > { %v1017_v34 = vmul.f32 %v2528_v31, %v1016_v33  ;;  %s969_s6 = scalar_lea.vmem %s3258_s28, %s2929_s29  ;;  %s3266_s26 = smov %s3265_s30 }
  0x32   : > { %v1005_v12 = vadd.f32 %v2526_v7, %v1004_v10  ;;  %1178 = vmatpush.bf16.msra.mxu0 %v2427_v13  ;;  %s3272_s0 = sld [smem:[#allocation12_spill]] }
  0x33   : > { %v1018_v35 = vadd.f32 %v2528_v31, %v1017_v34 }
  0x34   : > { %v2877_v14 = vsel %vm1006_vm1, %v2526_v7, %v1005_v12 }
  0x35   : > { %v2899_v36 = vsel %vm1019_vm2, %v2528_v31, %v1018_v35 }
  0x36   : > { %1065 = vadd.xlane.f32.xlu0 %v1064_v5 }
  0x4a   : > { %1187 = vrot.lane.b32.xlu0 %v2428_v11, %s3214_s4  ;;  %v2907_v11 = vld [vmem:[%s3255_s2] ss:$0 sm:$0xff]  ;;  %s3257_s2 = sld [smem:[#allocation14_spill]] }
  0xa1   : > { %v1063_v15 = vpop.xlane.xlu0 %1062 }
  0xa2   : > { %v1067_v16 = vmul.f32 %v1063_v15, %v2877_v14  ;;  %v1000_v19 = vpop.xlane.xlu1 %999 }
  0xa3   : > { %v1008_v23 = vmul.f32 %v2877_v14, %v1000_v19 }
  0xa4   : > { %v2880_v17 = vsub.f32 %v972_v0, %v1067_v16 }
  0xa5   : > { %v2890_v25 = vsub.f32 %v2864_v2, %v1008_v23 }
  0xa6   : > { %v1071_v18 = vmul.f32 %v2880_v17, %v2880_v17 }
  0xa7   : > { %v1010_v28 = vmul.f32 %v2890_v25, %v2890_v25 }
  0xa8   : > { %v1073_v20 = vsel %vm997_vm0, %v1071_v18, 0.0 }
  0xa9   : > { %1074 = vadd.xlane.f32.xlu1 %v1073_v20  ;;  %v1066_v21 = vpop.xlane.xlu0 %1065  ;;  %v1011_v29 = vsel %vm997_vm0, %v1010_v28, 0.0 }
  0xaa   : > { %v1068_v22 = vmul.f32 %v1066_v21, %v2877_v14 }
  0xac   : > { %v2887_v24 = vsub.f32 %v973_v1, %v1068_v22 }
  0xae   : > { %v1072_v26 = vmul.f32 %v2887_v24, %v2887_v24 }
  0xb0   : > { %v1076_v27 = vsel %vm997_vm0, %v1072_v26, 0.0 }
  0xb1   : > { %1077 = vadd.xlane.f32.xlu2 %v1076_v27 }
  0xb9   : > { %1012 = vadd.xlane.f32.xlu2 %v1011_v29  ;;  %v2508_v29 = vld [vmem:[%s3256_s11] ss:$0 sm:$0xff] }
  0xbc   : > { %v1188_v39 = vpop.permute.xlu0 %1187 }
  0xbd   : > { %1203 = vmatpush.bf16.msra.mxu1 %v1188_v39 }
  0xc2   : > { %1185 = vrot.lane.b32.xlu1 %v2427_v13, %s3214_s4 }
  0xd1   : > { %1191 = vrot.lane.b32.xlu2 %v2907_v11, %s3214_s4  ;;  %s3229_s4 = smov 112  }
 0x11c   : > { %v1075_v37 = vpop.xlane.xlu1 %1074 }
 0x11d   : > { %v1079_v38 = vmul.f32 %v1075_v37, %v2899_v36 }
 0x11f   : > { %2529 = vrsqrt.f32 %v1079_v38  ;;  %vm1093_vm3 = vcmp.eq.f32.partialorder %v1079_v38, inf  ;;  %v1096_v54 = vand.u32 2147483648, %v1079_v38  ;;  %vm1095_vm4 = vcmp.eq.f32.partialorder %v1079_v38, 0.0 }
 0x124   : > { %v1078_v40 = vpop.xlane.xlu2 %1077 }
 0x125   : > { %v2530_v41 = vpop.eup %2529  ;;  %v1080_v42 = vmul.f32 %v1078_v40, %v2899_v36 }
 0x126   : > { %v1087_v43 = vmul.f32 %v2530_v41, %v1079_v38 }
 0x127   : > { %2531 = vrsqrt.f32 %v1080_v42  ;;  %vm1105_vm5 = vcmp.eq.f32.partialorder %v1080_v42, inf  ;;  %v1108_v3 = vand.u32 2147483648, %v1080_v42  ;;  %vm1107_vm6 = vcmp.eq.f32.partialorder %v1080_v42, 0.0 }
 0x128   : > { %v1088_v44 = vmul.f32 %v2530_v41, %v1087_v43 }
 0x12a   : > { %v1089_v45 = vmul.f32 0.5, %v1088_v44 }
 0x12c   : > { %v1090_v46 = vsub.f32 1.5, %v1089_v45  ;;  %v1013_v47 = vpop.xlane.xlu2 %1012  ;;  %v2510_v45 = vld [vmem:[%s3257_s2] ss:$0 sm:$0xff] }
 0x12d   : > { %v2532_v48 = vpop.eup %2531  ;;  %v1021_v49 = vmul.f32 %v2899_v36, %v1013_v47 }
 0x12e   : > { %v1091_v50 = vmul.f32 %v2530_v41, %v1090_v46  ;;  %v1099_v51 = vmul.f32 %v2532_v48, %v1080_v42  ;;  %v1085_v41 = vmul.f32 %v2508_v29, %v2887_v24  ;;  %v2509_v24 = vld [vmem:[%s3256_s11] ss:$0 sm:$0xff] }
 0x12f   : > { %2533 = vrsqrt.f32 %v1021_v49  ;;  %vm1033_vm7 = vcmp.eq.f32.partialorder %v1021_v49, inf  ;;  %v1036_v16 = vand.u32 2147483648, %v1021_v49  ;;  %vm1035_vm8 = vcmp.eq.f32.partialorder %v1021_v49, 0.0 }
 0x130   : > { %v1092_v52 = vmul.f32 %v1091_v50, %v1079_v38  ;;  %v1100_v53 = vmul.f32 %v2532_v48, %v1099_v51 }
 0x132   : > { %v1094_v55 = vsel %vm1093_vm3, %v1079_v38, %v1092_v52  ;;  %v1101_v56 = vmul.f32 0.5, %v1100_v53  ;;  %v1084_v38 = vmul.f32 %v2508_v29, %v2880_v17 }
 0x133   : > { %v1097_v57 = vsel %vm1095_vm4, %v1096_v54, %v1094_v55 }
 0x134   : > { %v1102_v58 = vsub.f32 1.5, %v1101_v56  ;;  %v1186_v59 = vpop.permute.xlu1 %1185  ;;  %v1110_v60 = vadd.f32 1e-06, %v1097_v57  ;;  %v1025_v57 = vmul.f32 %v2509_v24, %v2890_v25 }
 0x135   : > { %v2534_v61 = vpop.eup %2533  ;;  %1204 = vmatpush.bf16.msra.mxu1 %v1186_v59  ;;  %v2511_v59 = vld [vmem:[%s3257_s2] ss:$0 sm:$0xff]  ;;  %s3260_s2 = sld [smem:[#allocation11_spill]] }
 0x136   : > { %v1103_v62 = vmul.f32 %v2532_v48, %v1102_v58  ;;  %v1027_v63 = vmul.f32 %v2534_v61, %v1021_v49  ;;  %2535 = vrcp.f32 %v1110_v60  ;;  %v1123_v23 = vand.u32 2147483648, %v1110_v60 }
 0x137   : > { %vm1117_vm10 = vweird.f32 %v1110_v60  ;;  %v1121_v27 = vand.u32 2147483647, %v1110_v60 }
 0x138   : > { %v1104_v0 = vmul.f32 %v1103_v62, %v1080_v42  ;;  %v1028_v1 = vmul.f32 %v2534_v61, %v1027_v63  ;;  %v1124_v32 = vor.u32 1.1754944e-38, %v1123_v23 }
 0x139   : > { %vm1122_vm12 = vcmp.eq.f32.partialorder %v1121_v27, 8.507059e+37 }
 0x13a   : > { %v1106_v4 = vsel %vm1105_vm5, %v1080_v42, %v1104_v0  ;;  %v1029_v5 = vmul.f32 0.5, %v1028_v1  ;;  %v1192_v0 = vpop.permute.xlu2 %1191 }
 0x13b   : > { %v1109_v6 = vsel %vm1107_vm6, %v1108_v3, %v1106_v4  ;;  %vm1219_vm6 = vcmask 64512   ;;  %s942_s11 = scalar_lea.vmem %s3260_s2, %s3292_s5  ;;  %s3223_s2 = smov 80  }
 0x13c   : > { %v2536_v7 = vpop.eup %2535  ;;  %v1030_v8 = vsub.f32 1.5, %v1029_v5  ;;  %v1111_v9 = vadd.f32 1e-06, %v1109_v6 }
 0x13d   : > { %v1113_v10 = vmul.f32 %v2536_v7, %v1110_v60  ;;  %vm1118_vm9 = vweird.f32 %v2536_v7 }
 0x13e   : > { %v1031_v12 = vmul.f32 %v2534_v61, %v1030_v8  ;;  %2537 = vrcp.f32 %v1111_v9  ;;  %vm1119_vm11 = vmor %vm1117_vm10, %vm1118_vm9  ;;  %v1138_v33 = vand.u32 2147483648, %v1111_v9  ;;  %v1136_v35 = vand.u32 2147483647, %v1111_v9 }
 0x13f   : > { %v1114_v13 = vsub.f32 1.0, %v1113_v10  ;;  %vm1132_vm14 = vweird.f32 %v1111_v9 }
 0x140   : > { %v1032_v15 = vmul.f32 %v1031_v12, %v1021_v49  ;;  %v1139_v42 = vor.u32 1.1754944e-38, %v1138_v33  ;;  %vm1137_vm1 = vcmp.eq.f32.partialorder %v1136_v35, 8.507059e+37 }
 0x141   : > { %v1115_v18 = vmul.f32 %v2536_v7, %v1114_v13 }
 0x142   : > { %v1034_v19 = vsel %vm1033_vm7, %v1021_v49, %v1032_v15 }
 0x143   : > { %v1116_v20 = vadd.f32 %v2536_v7, %v1115_v18  ;;  %v1037_v21 = vsel %vm1035_vm8, %v1036_v16, %v1034_v19 }
 0x144   : > { %v2538_v22 = vpop.eup %2537  ;;  %v1038_v26 = vadd.f32 1e-06, %v1037_v21  ;;  %v978_v21 = vlaneseq }
 0x145   : > { %v1128_v28 = vmul.f32 %v2538_v22, %v1111_v9  ;;  %v1120_v30 = vsel %vm1119_vm11, %v2536_v7, %v1116_v20  ;;  %vm1133_vm13 = vweird.f32 %v2538_v22  ;;  %v985_v20 = vld [vmem:[%s942_s11] sm:$0x1]  ;;  %vm1239_vm11 = vcmask 130048   ;;  %s3222_s11 = smov 72  }
 0x146   : > { %2539 = vrcp.f32 %v1038_v26  ;;  %v1125_v37 = vsel %vm1122_vm12, %v1124_v32, %v1120_v30  ;;  %vm1134_vm15 = vmor %vm1132_vm14, %vm1133_vm13  ;;  %v1048_v49 = vand.u32 2147483647, %v1038_v26  ;;  %v1050_v50 = vand.u32 2147483648, %v1038_v26 }
 0x147   : > { %v1129_v31 = vsub.f32 1.0, %v1128_v28  ;;  %v1126_v43 = vmul.f32 %v1125_v37, %v1084_v38  ;;  %vm1044_vm3 = vweird.f32 %v1038_v26  ;;  %vm986_vm7 = vcmp.gt.f32.partialorder %v985_v20, 0.0 }
 0x148   : > { %v1051_v56 = vor.u32 1.1754944e-38, %v1050_v50  ;;  %vm1049_vm5 = vcmp.eq.f32.partialorder %v1048_v49, 8.507059e+37  ;;  %v979_v23 = vshrl.u32 %v978_v21, 7  ;;  %v2666_v28 = vmov 0  }
 0x149   : > { %v1130_v34 = vmul.f32 %v2538_v22, %v1129_v31  ;;  %v1145_v51 = vadd.f32 %v2510_v45, %v1126_v43  ;;  %v987_v29 = vsel %vm986_vm7, 1, %v2666_v28  ;;  %v983_v31 = vand.u32 127, %v978_v21 }
 0x14a   : > { %v988_v32 = vperm.slane %v987_v29, 0  ;;  %vm1333_vm12 = vcmask 130112   ;;  %vm1393_vm13 = vcmask 195712   ;;  %vm1453_vm14 = vcmask 261312  }
 0x14b   : > { %v1131_v39 = vadd.f32 %v2538_v22, %v1130_v34  ;;  %v2667_v34 = vmov 0.0  }
 0x14c   : > { %v2540_v40 = vpop.eup %2539  ;;  %vm989_vm9 = vcmp.eq.s32.totalorder %v988_v32, 1 }
 0x14d   : > { %v1135_v44 = vsel %vm1134_vm15, %v2538_v22, %v1131_v39  ;;  %v1040_v46 = vmul.f32 %v2540_v40, %v1038_v26  ;;  %vm1045_vm2 = vweird.f32 %v2540_v40 }
 0x14e   : > { %v1140_v47 = vsel %vm1137_vm1, %v1139_v42, %v1135_v44  ;;  %vm1046_vm4 = vmor %vm1044_vm3, %vm1045_vm2 }
 0x14f   : > { %v1141_v48 = vmul.f32 %v1140_v47, %v1085_v41  ;;  %v1041_v17 = vsub.f32 1.0, %v1040_v46 }
 0x151   : > { %v1146_v52 = vadd.f32 %v2510_v45, %v1141_v48  ;;  %v1042_v53 = vmul.f32 %v2540_v40, %v1041_v17 }
 0x153   : > { %v1184_v54 = vpack.c.bf16 %v1146_v52, %v1145_v51  ;;  %v1043_v55 = vadd.f32 %v2540_v40, %v1042_v53 }
 0x155   : > { %2339 = vmatmul.msk.bf16.vlgmr.msra.gmra.mxu1 %vm997_vm0, %v1184_v54  ;;  %v1047_v58 = vsel %vm1046_vm4, %v2540_v40, %v1043_v55 }
 0x156   : > { %v1052_v60 = vsel %vm1049_vm5, %v1051_v56, %v1047_v58 }
 0x157   : > { %v1053_v61 = vmul.f32 %v1052_v60, %v1025_v57 }
 0x159   : > { %v1057_v62 = vadd.f32 %v2511_v59, %v1053_v61 }
 0x15b   : > { %1058 = vst.msk [vmem:[%s969_s6] sm:$0xff] %vm997_vm0, %v1057_v62  ;;  %v1152_v25 = vpack.c.bf16 %v1057_v62, %v1057_v62  ;;  %s3226_s6 = smov 24  }
 0x15d   : > { %2338 = vmatmul.msk.bf16.vlgmr.msra.gmra.mxu0 %vm997_vm0, %v1152_v25 }
 0x1d2   : > { %v1206_v63 = vpop.f32.mrf.mxu1 }
 0x1d3   : > { %v1207_v1 = vadd.f32 %v1206_v63, %v1192_v0 }
 0x1d5   : > { %v1211_v5 = vpack.c.bf16 %v1207_v1, %v1207_v1 }
 0x1d7   : > { %v1216_v8 = vunpack.c.l.b16 %v1211_v5 }
 0x1da   : > { %v1180_v3 = vpop.f32.mrf.mxu0  ;;  %v1208_v4 = vpop.f32.mrf.mxu1 }
 0x1db   : > { %v1209_v6 = vadd.f32 %v1208_v4, %v1192_v0  ;;  %v1181_v15 = vadd.f32 %v2907_v11, %v1180_v3 }
 0x1dd   : > { %v1212_v7 = vpack.c.bf16 %v1209_v6, %v1209_v6  ;;  %v1213_v16 = vpack.c.bf16 %v1181_v15, %v1181_v15 }
 0x1df   : > { %v1217_v9 = vunpack.c.l.b16 %v1212_v7  ;;  %v1273_v18 = vunpack.c.l.b16 %v1213_v16 }
 0x1e1   : > { %v2940_v10 = vpack.c.b16 %v1217_v9, %v1216_v8  ;;  %v1274_v19 = vpack.c.b16 %v1273_v18, %v1273_v18 }
 0x1e2   : > { %v1182_v12 = vpop.f32.mrf.mxu0 }
 0x1e3   : > { %1252 = vrot.lane.b32.xlu1 %v2940_v10, %s3259_s12  ;;  %v1224_v13 = vsel %vm1219_vm6, %v2940_v10, 0 }
 0x1e4   : > { %1233 = vmatpush.bf16.xpose.msra.mxu2 %v1224_v13 }
 0x1eb   : > { %1277 = vrot.lane.b32.xlu1 %v2940_v10, %s3219_s1  ;;  %2340 = vmatmul.msk.bf16.vlgmr.msra.gmra.mxu2 %vm1219_vm6, %v1213_v16 }
 0x1f3   : > { %1275 = vrot.lane.b32.xlu1 %v1274_v19, %s3219_s1  ;;  %s3261_s1 = sshll.u32 %s2641_s8, 3  ;;  %s3225_s8 = smov 88  }
 0x1f4   : > { %v980_v27 = vstv %s3261_s1  ;;  %s3221_s1 = smov 8  }
 0x1f5   : > { %v981_v30 = vadd.s32 %v980_v27, %v979_v23 }
 0x1f7   : > { %vm984_vm8 = vcmp.gt.s32.totalorder %v983_v31, %v981_v30 }
 0x1f8   : > { %vm990_vm10 = vmor %vm984_vm8, %vm989_vm9 }
 0x1f9   : > { %v991_v35 = vsel %vm990_vm10, -1e+18, %v2667_v34 }
 0x1fb   : > { %1337 = vrot.lane.b32.xlu1 %v2940_v10, %s3229_s4 }
 0x203   : > { %1397 = vrot.lane.b32.xlu1 %v2940_v10, %s3227_s7 }
 0x20b   : > { %1395 = vrot.lane.b32.xlu1 %v1274_v19, %s3227_s7  ;;  %s3278_s7 = smov 24  }
 0x255   : > { %v1253_v11 = vpop.permute.xlu1 %1252 }
 0x256   : > { %1265 = vmatpush.bf16.msra.mxu3 %v1253_v11 }
 0x25d   : > { %v1278_v22 = vpop.permute.xlu1 %1277 }
 0x25e   : > { %v1283_v26 = vsel %vm1219_vm6, %v1278_v22, 0 }
 0x25f   : > { %1292 = vmatpush.bf16.xpose.msrb.mxu3 %v1283_v26 }
 0x265   : > { %v1276_v33 = vpop.permute.xlu1 %1275 }
 0x26d   : > { %v1338_v37 = vpop.permute.xlu1 %1337 }
 0x26e   : > { %v1235_v38 = vpop.f32.mrf.mxu2  ;;  %v1343_v39 = vsel %vm1219_vm6, %v1338_v37, 0 }
 0x26f   : > { %v1236_v40 = vadd.f32 %v1235_v38, %v991_v35  ;;  %1352 = vmatpush.bf16.xpose.msrb.mxu1 %v1343_v39 }
 0x271   : > { %v1240_v41 = vsel %vm1239_vm11, %v1236_v40, -inf }
 0x272   : > { %1241 = vmax.xlane.f32.xlu0 %v1240_v41 }
 0x275   : > { %v1398_v51 = vpop.permute.xlu1 %1397 }
 0x276   : > { %v1237_v42 = vpop.f32.mrf.mxu2  ;;  %v1403_v53 = vsel %vm1219_vm6, %v1398_v51, 0 }
 0x27d   : > { %v1396_v58 = vpop.permute.xlu1 %1395 }
 0x286   : > { %1335 = vrot.lane.b32.xlu0 %v1274_v19, %s3229_s4  ;;  %s3263_s4 = sld [smem:[#allocation18_spill]] }
 0x28c   : > { %v2513_v51 = vld [vmem:[%s3263_s4] ss:$0 sm:$0xff]  ;;  %s3277_s4 = smov 8  }
 0x28e   : > { %1310 = vrot.lane.b32.xlu0 %v2940_v10, %s3225_s8  ;;  %s2425_s8 = sshll.u32 %s3292_s5, 3 }
 0x2e5   : > { %v1242_v43 = vpop.xlane.xlu0 %1241 }
 0x2e6   : > { %v1243_v44 = vsub.f32 %v1236_v40, %v1242_v43 }
 0x2e8   : > { %v1244_v45 = vmul.f32 1.442695, %v1243_v44 }
 0x2ea   : > { %2541 = vpow2.f32 %v1244_v45 }
 0x2f0   : > { %v2542_v46 = vpop.eup %2541 }
 0x2f1   : > { %v1246_v47 = vsel %vm1239_vm11, %v2542_v46, 0.0 }
 0x2f2   : > { %1247 = vadd.xlane.f32.xlu2 %v1246_v47 }
 0x2f8   : > { %v1336_v48 = vpop.permute.xlu0 %1335 }
 0x2f9   : > { %2344 = vmatmul.msk.bf16.vlgmr.msrb.gmra.mxu1 %vm1219_vm6, %v1336_v48 }
 0x300   : > { %v1311_v17 = vpop.permute.xlu0 %1310 }
 0x301   : > { %1323 = vmatpush.bf16.msrb.mxu0 %v1311_v17 }
 0x365   : > { %v1248_v49 = vpop.xlane.xlu2 %1247 }
 0x366   : > { %2543 = vrcp.f32 %v1248_v49 }
 0x36c   : > { %v2544_v50 = vpop.eup %2543 }
 0x36d   : > { %v1250_v24 = vmul.f32 %v2544_v50, %v2542_v46 }
 0x36f   : > { %v1251_v52 = vpack.c.bf16 %v1250_v24, %v1250_v24 }
 0x371   : > { %2341 = vmatmul.msk.bf16.vlgmr.msra.gmra.mxu3 %vm1239_vm11, %v1251_v52 }
 0x372   : > { %1412 = vmatpush.bf16.xpose.msra.mxu3 %v1403_v53 }
 0x376   : > { %v1354_v54 = vpop.f32.mrf.mxu1 }
 0x377   : > { %v1355_v55 = vadd.f32 %v1354_v54, %v991_v35 }
 0x379   : > { %v1358_v56 = vsel %vm1239_vm11, %v1355_v55, -inf }
 0x37a   : > { %1359 = vmax.xlane.f32.xlu1 %v1358_v56 }
 0x37e   : > { %v1356_v57 = vpop.f32.mrf.mxu1 }
 0x381   : > { %2342 = vmatmul.msk.bf16.vlgmr.msrb.gmra.mxu3 %vm1219_vm6, %v1276_v33 }
 0x391   : > { %2346 = vmatmul.msk.bf16.vlgmr.msra.gmra.mxu3 %vm1219_vm6, %v1396_v58 }
 0x393   : > { %1430 = vrot.lane.b32.xlu1 %v2940_v10, %s3222_s11 }
 0x3ed   : > { %v1360_v61 = vpop.xlane.xlu1 %1359 }
 0x3ee   : > { %v1361_v3 = vsub.f32 %v1355_v55, %v1360_v61 }
 0x3f0   : > { %v1362_v4 = vmul.f32 1.442695, %v1361_v3 }
 0x3f2   : > { %2545 = vpow2.f32 %v1362_v4 }
 0x3f4   : > { %v1267_v59 = vpop.f32.mrf.mxu3 }
 0x3f5   : > { %1271 = vst.msk [vmem:[#allocation2] sm:$0xff] %vm1219_vm6, %v1267_v59 }
 0x3f8   : > { %v2546_v8 = vpop.eup %2545 }
 0x3f9   : > { %v1364_v12 = vsel %vm1239_vm11, %v2546_v8, 0.0 }
 0x3fc   : > { %v1269_v60 = vpop.f32.mrf.mxu3 }
 0x404   : > { %v1294_v62 = vpop.f32.mrf.mxu3 }
 0x405   : > { %v1295_v25 = vadd.f32 %v1294_v62, %v991_v35  ;;  %v1431_v63 = vpop.permute.xlu1 %1430  ;;  %v2434_v62 = vld [vmem:[%s3193_s14 + $0x8] sm:$0xff] }
 0x406   : > { %1443 = vmatpush.bf16.msra.mxu0 %v1431_v63  ;;  %1613 = vmatpush.bf16.msrb.mxu3 %v2434_v62  ;;  %v2432_v63 = vld [vmem:[%s3265_s30 + $0x8] sm:$0xff] }
 0x407   : > { %v1298_v0 = vsel %vm1239_vm11, %v1295_v25, -inf }
 0x408   : > { %1299 = vmax.xlane.f32.xlu2 %v1298_v0  ;;  %v2431_v0 = vld [vmem:[%s3266_s26] sm:$0xff] }
 0x40c   : > { %v1296_v1 = vpop.f32.mrf.mxu3 }
 0x414   : > { %v1414_v5 = vpop.f32.mrf.mxu3 }
 0x415   : > { %v1415_v6 = vadd.f32 %v1414_v5, %v991_v35 }
 0x417   : > { %v1418_v7 = vsel %vm1239_vm11, %v1415_v6, -inf }
 0x418   : > { %1419 = vmax.xlane.f32.xlu2 %v1418_v7 }
 0x41c   : > { %v1416_v9 = vpop.f32.mrf.mxu3 }
 0x420   : > { %1365 = vadd.xlane.f32.xlu2 %v1364_v12 }
 0x47b   : > { %v1300_v13 = vpop.xlane.xlu2 %1299 }
 0x47c   : > { %v1301_v15 = vsub.f32 %v1295_v25, %v1300_v13 }
 0x47e   : > { %v1302_v16 = vmul.f32 1.442695, %v1301_v15 }
 0x480   : > { %2547 = vpow2.f32 %v1302_v16 }
 0x486   : > { %v2548_v18 = vpop.eup %2547 }
 0x487   : > { %v1304_v19 = vsel %vm1239_vm11, %v2548_v18, 0.0 }
 0x488   : > { %1305 = vadd.xlane.f32.xlu2 %v1304_v19 }
 0x48b   : > { %v1420_v11 = vpop.xlane.xlu2 %1419 }
 0x48c   : > { %v1421_v20 = vsub.f32 %v1415_v6, %v1420_v11 }
 0x48e   : > { %v1422_v21 = vmul.f32 1.442695, %v1421_v20 }
 0x490   : > { %2549 = vpow2.f32 %v1422_v21 }
 0x493   : > { %v1366_v26 = vpop.xlane.xlu2 %1365 }
 0x494   : > { %2551 = vrcp.f32 %v1366_v26 }
 0x496   : > { %v2550_v22 = vpop.eup %2549 }
 0x497   : > { %v1424_v23 = vsel %vm1239_vm11, %v2550_v22, 0.0 }
 0x498   : > { %1425 = vadd.xlane.f32.xlu0 %v1424_v23 }
 0x49a   : > { %v2552_v28 = vpop.eup %2551 }
 0x49b   : > { %v1368_v29 = vmul.f32 %v2552_v28, %v2546_v8 }
 0x49d   : > { %v1369_v35 = vpack.c.bf16 %v1368_v29, %v1368_v29 }
 0x4a0   : > { %1370 = vrot.lane.b32.xlu2 %v2940_v10, %s3223_s2  ;;  %s3262_s2 = sld [smem:[#allocation17_spill]] }
 0x4a6   : > { %v2430_v48 = vld [vmem:[%s3262_s2 + $0x8] sm:$0xff]  ;;  %v2429_v17 = vld [vmem:[%s3262_s2] sm:$0xff]  ;;  %s3264_s2 = sld [smem:[#allocation10_spill]] }
 0x4a7   : > { %1486 = vmatpush.bf16.msra.mxu1 %v2430_v48  ;;  %v2517_v48 = vld [vmem:[%s3192_s13] ss:$0 sm:$0xff] }
 0x4ab   : > { %1487 = vmatpush.bf16.msra.mxu1 %v2429_v17 }
 0x4ac   : > { %s939_s28 = scalar_lea.vmem %s3264_s2, %s2425_s8  ;;  %s3268_s8 = sld [smem:[#allocation20_spill]] }
 0x4ad   : > { %v2426_v25 = vld [vmem:[%s939_s28] sm:$0xff]  ;;  %s3271_s28 = smov 104   ;;  %s945_s2 = scalar_lea.vmem %s3272_s0, %s3292_s5 }
 0x4ae   : > { %s3273_s5 = smov 88  }
 0x4fb   : > { %v1306_v27 = vpop.xlane.xlu2 %1305 }
 0x4fc   : > { %2553 = vrcp.f32 %v1306_v27 }
 0x502   : > { %v2554_v30 = vpop.eup %2553 }
 0x503   : > { %v1308_v31 = vmul.f32 %v2554_v30, %v2548_v18  ;;  %v1371_v32 = vpop.permute.xlu2 %1370 }
 0x504   : > { %1383 = vmatpush.bf16.msrb.mxu2 %v1371_v32 }
 0x505   : > { %v1309_v33 = vpack.c.bf16 %v1308_v31, %v1308_v31  ;;  %v2515_v31 = vld [vmem:[%s3268_s8] ss:$0 sm:$0xff]  ;;  %s3274_s8 = smov 80  }
 0x507   : > { %2343 = vmatmul.msk.bf16.vlgmr.msrb.gmra.mxu0 %vm1239_vm11, %v1309_v33  ;;  %2345 = vmatmul.msk.bf16.vlgmr.msrb.gmra.mxu2 %vm1239_vm11, %v1369_v35 }
 0x508   : > { %1572 = vmatpush.bf16.msra.mxu2 %v2432_v63 }
 0x50b   : > { %v1426_v37 = vpop.xlane.xlu0 %1425 }
 0x50c   : > { %2555 = vrcp.f32 %v1426_v37  ;;  %1573 = vmatpush.bf16.msra.mxu2 %v2431_v0 }
 0x512   : > { %v2556_v38 = vpop.eup %2555 }
 0x513   : > { %v1428_v10 = vmul.f32 %v2556_v38, %v2550_v22  ;;  %v2514_v22 = vld [vmem:[%s3267_s10] ss:$0 sm:$0xff]  ;;  %s3279_s10 = sld [smem:[#allocation23_spill]] }
 0x514   : > { %v2516_v38 = vld [vmem:[%s3194_s15] ss:$0 sm:$0xff] }
 0x515   : > { %v1429_v39 = vpack.c.bf16 %v1428_v10, %v1428_v10 }
 0x517   : > { %2347 = vmatmul.msk.bf16.vlgmr.msra.gmra.mxu0 %vm1239_vm11, %v1429_v39 }
 0x519   : > { %s953_s0 = scalar_lea.vmem %s3279_s10, %s2929_s29 }
 0x584   : > { %v1325_v40 = vpop.f32.mrf.mxu0 }
 0x585   : > { %1330 = vrot.lane.b32.xlu2 %v1325_v40, %s3221_s1  ;;  %s961_s1 = scalar_lea.vmem %s3206_s27, %s2929_s29 }
 0x58a   : > { %v1385_v41 = vpop.f32.mrf.mxu2 }
 0x58c   : > { %v1327_v42 = vpop.f32.mrf.mxu0 }
 0x58d   : > { %1390 = vrot.lane.b32.xlu2 %v1385_v41, %s3224_s23  ;;  %s3269_s23 = smov 120  }
 0x592   : > { %v1387_v43 = vpop.f32.mrf.mxu2 }
 0x594   : > { %v1445_v44 = vpop.f32.mrf.mxu0 }
 0x595   : > { %1450 = vrot.lane.b32.xlu0 %v1445_v44, %s3226_s6  ;;  %s3270_s6 = smov 112  }
 0x59c   : > { %v1447_v45 = vpop.f32.mrf.mxu0 }
 0x5df   : > { %v1331_v46 = vpop.permute.xlu2 %1330 }
 0x5e0   : > { %1334 = vst.msk [vmem:[#allocation2] sm:$0xff] %vm1333_vm12, %v1331_v46 }
 0x5e7   : > { %v1391_v47 = vpop.permute.xlu2 %1390 }
 0x5e8   : > { %1394 = vst.msk [vmem:[#allocation2] sm:$0xff] %vm1393_vm13, %v1391_v47 }
 0x607   : > { %v1451_v49 = vpop.permute.xlu0 %1450 }
 0x608   : > { %1454 = vst.msk [vmem:[#allocation2] sm:$0xff] %vm1453_vm14, %v1451_v49 }
 0x60f   : > { %v1455_v50 = vld [vmem:[#allocation2] sm:$0xff] }
 0x610   : > { %v1461_v24 = vpack.c.bf16 %v1455_v50, %v1455_v50 }
 0x612   : > { %2356 = vmatmul.msk.bf16.vlgmr.msra.gmra.mxu1 %vm997_vm0, %v1461_v24 }
 0x68f   : > { %v1489_v52 = vpop.f32.mrf.mxu1 }
 0x690   : > { %v1490_v53 = vadd.f32 %v2513_v51, %v1489_v52 }
 0x692   : > { %v3006_v54 = vadd.f32 %v1490_v53, %v2864_v2  ;;  %v2433_v2 = vld [vmem:[%s3193_s14] sm:$0xff] }
 0x693   : > { %1614 = vmatpush.bf16.msrb.mxu3 %v2433_v2 }
 0x694   : > { %v1496_v55 = vsel %vm997_vm0, %v3006_v54, 0.0 }
 0x695   : > { %1497 = vadd.xlane.f32.xlu2 %v1496_v55 }
 0x696   : > { %2378 = vmatmul.msk.bf16.vlgmr.msrb.gmra.mxu3 %vm997_vm0, %v2426_v25 }
 0x697   : > { %v1491_v56 = vpop.f32.mrf.mxu1 }
 0x708   : > { %v1498_v57 = vpop.xlane.xlu2 %1497 }
 0x709   : > { %v1499_v58 = vmul.f32 %v1498_v57, %v2877_v14 }
 0x70b   : > { %v1500_v59 = vsub.f32 %v3006_v54, %v1499_v58  ;;  %v992_v58 = vld [vmem:[%s945_s2] sm:$0x1] }
 0x70c   : > { %vm993_vm7 = vcmp.gt.f32.partialorder %v992_v58, 0.0 }
 0x70d   : > { %v1501_v60 = vmul.f32 %v1500_v59, %v1500_v59  ;;  %v1509_v29 = vmul.f32 %v2514_v22, %v1500_v59 }
 0x70f   : > { %v1502_v61 = vsel %vm997_vm0, %v1501_v60, 0.0 }
 0x710   : > { %1503 = vadd.xlane.f32.xlu1 %v1502_v61  ;;  %v994_v61 = vsel %vm993_vm7, -1e+18, %v2667_v34 }
 0x711   : > { %v1625_v62 = vperm.slane %v994_v61, 0 }
 0x719   : > { %v1616_v10 = vpop.f32.mrf.mxu3 }
 0x71a   : > { %v1617_v39 = vadd.f32 %v2516_v38, %v1616_v10 }
 0x71c   : > { %v1621_v40 = vpack.c.bf16 %v1617_v39, %v1617_v39 }
 0x71e   : > { %v1629_v43 = vunpack.c.l.b16 %v1621_v40 }
 0x721   : > { %v1618_v41 = vpop.f32.mrf.mxu3 }
 0x722   : > { %v1619_v42 = vadd.f32 %v2516_v38, %v1618_v41 }
 0x724   : > { %v1622_v44 = vpack.c.bf16 %v1619_v42, %v1619_v42 }
 0x726   : > { %v1630_v45 = vunpack.c.l.b16 %v1622_v44 }
 0x728   : > { %v3041_v46 = vpack.c.b16 %v1630_v45, %v1629_v43 }
 0x72a   : > { %1688 = vrot.lane.b32.xlu0 %v3041_v46, %s3269_s23  ;;  %1747 = vrot.lane.b32.xlu2 %v3041_v46, %s3270_s6  ;;  %v1636_v47 = vsel %vm1219_vm6, %v3041_v46, 0 }
 0x72b   : > { %1645 = vmatpush.bf16.xpose.msrb.mxu0 %v1636_v47 }
 0x783   : > { %v1504_v1 = vpop.xlane.xlu1 %1503 }
 0x784   : > { %v1505_v3 = vmul.f32 %v1504_v1, %v2899_v36  ;;  %v1748_v53 = vpop.permute.xlu2 %1747 }
 0x785   : > { %v1753_v55 = vsel %vm1219_vm6, %v1748_v53, 0 }
 0x786   : > { %2557 = vrsqrt.f32 %v1505_v3  ;;  %vm1517_vm15 = vcmp.eq.f32.partialorder %v1505_v3, inf  ;;  %v1520_v13 = vand.u32 2147483648, %v1505_v3  ;;  %vm1519_vm1 = vcmp.eq.f32.partialorder %v1505_v3, 0.0  ;;  %1762 = vmatpush.bf16.xpose.msra.mxu0 %v1753_v55 }
 0x78c   : > { %v2558_v4 = vpop.eup %2557 }
 0x78d   : > { %v1511_v5 = vmul.f32 %v2558_v4, %v1505_v3 }
 0x78f   : > { %v1512_v6 = vmul.f32 %v2558_v4, %v1511_v5 }
 0x791   : > { %v1513_v7 = vmul.f32 0.5, %v1512_v6 }
 0x793   : > { %v1514_v8 = vsub.f32 1.5, %v1513_v7 }
 0x795   : > { %v1515_v9 = vmul.f32 %v2558_v4, %v1514_v8 }
 0x797   : > { %v1516_v12 = vmul.f32 %v1515_v9, %v1505_v3 }
 0x799   : > { %v1518_v15 = vsel %vm1517_vm15, %v1505_v3, %v1516_v12 }
 0x79a   : > { %v1521_v16 = vsel %vm1519_vm1, %v1520_v13, %v1518_v15 }
 0x79b   : > { %v1522_v18 = vadd.f32 1e-06, %v1521_v16 }
 0x79c   : > { %v1689_v56 = vpop.permute.xlu0 %1688 }
 0x79d   : > { %2559 = vrcp.f32 %v1522_v18  ;;  %v1534_v21 = vand.u32 2147483648, %v1522_v18  ;;  %v1532_v26 = vand.u32 2147483647, %v1522_v18  ;;  %vm1528_vm3 = vweird.f32 %v1522_v18 }
 0x79e   : > { %v1694_v57 = vsel %vm1219_vm6, %v1689_v56, 0 }
 0x79f   : > { %v1535_v28 = vor.u32 1.1754944e-38, %v1534_v21  ;;  %vm1533_vm5 = vcmp.eq.f32.partialorder %v1532_v26, 8.507059e+37  ;;  %1703 = vmatpush.bf16.xpose.msrb.mxu2 %v1694_v57 }
 0x7a3   : > { %v2560_v19 = vpop.eup %2559 }
 0x7a4   : > { %v1524_v11 = vmul.f32 %v2560_v19, %v1522_v18  ;;  %vm1529_vm2 = vweird.f32 %v2560_v19 }
 0x7a5   : > { %vm1530_vm4 = vmor %vm1528_vm3, %vm1529_vm2 }
 0x7a6   : > { %v1525_v20 = vsub.f32 1.0, %v1524_v11 }
 0x7a8   : > { %v1526_v23 = vmul.f32 %v2560_v19, %v1525_v20 }
 0x7aa   : > { %v1527_v27 = vadd.f32 %v2560_v19, %v1526_v23 }
 0x7ac   : > { %v1531_v30 = vsel %vm1530_vm4, %v2560_v19, %v1527_v27 }
 0x7ad   : > { %v1536_v32 = vsel %vm1533_vm5, %v1535_v28, %v1531_v30 }
 0x7ae   : > { %v1537_v33 = vmul.f32 %v1536_v32, %v1509_v29 }
 0x7b0   : > { %v1541_v35 = vadd.f32 %v2515_v31, %v1537_v33 }
 0x7b2   : > { %v1547_v37 = vpack.c.bf16 %v1541_v35, %v1541_v35 }
 0x7b4   : > { %2365 = vmatmul.msk.bf16.vlgmr.msra.gmra.mxu2 %vm997_vm0, %v1547_v37 }
 0x837   : > { %v1575_v17 = vpop.f32.mrf.mxu2 }
 0x838   : > { %v1576_v49 = vadd.f32 %v2517_v48, %v1575_v17 }
 0x83a   : > { %v1623_v50 = vpack.c.bf16 %v1576_v49, %v1576_v49 }
 0x83c   : > { %v1684_v24 = vunpack.c.l.b16 %v1623_v50  ;;  %2379 = vmatmul.msk.bf16.vlgmr.msrb.gmra.mxu0 %vm1219_vm6, %v1623_v50 }
 0x83e   : > { %v1685_v51 = vpack.c.b16 %v1684_v24, %v1684_v24 }
 0x83f   : > { %v1577_v52 = vpop.f32.mrf.mxu2 }
 0x840   : > { %1745 = vrot.lane.b32.xlu1 %v1685_v51, %s3270_s6  ;;  %1686 = vrot.lane.b32.xlu0 %v1685_v51, %s3269_s23  ;;  %s3275_s23 = smov 72   ;;  %s3276_s6 = smov 16  }
 0x848   : > { %1806 = vrot.lane.b32.xlu0 %v3041_v46, %s3271_s28 }
 0x850   : > { %1804 = vrot.lane.b32.xlu0 %v1685_v51, %s3271_s28 }
 0x8b2   : > { %v1746_v59 = vpop.permute.xlu1 %1745  ;;  %v1687_v60 = vpop.permute.xlu0 %1686 }
 0x8b3   : > { %2381 = vmatmul.msk.bf16.vlgmr.msrb.gmra.mxu2 %vm1219_vm6, %v1687_v60  ;;  %2383 = vmatmul.msk.bf16.vlgmr.msra.gmra.mxu0 %vm1219_vm6, %v1746_v59 }
 0x8b9   : > { %v1647_v2 = vpop.f32.mrf.mxu0 }
 0x8ba   : > { %v1648_v25 = vadd.f32 %v1647_v2, %v1625_v62  ;;  %v1807_v63 = vpop.permute.xlu0 %1806 }
 0x8bb   : > { %v1812_v0 = vsel %vm1219_vm6, %v1807_v63, 0 }
 0x8bc   : > { %1821 = vmatpush.bf16.xpose.msra.mxu2 %v1812_v0  ;;  %v1651_v1 = vsel %vm1239_vm11, %v1648_v25, -inf }
 0x8bd   : > { %1652 = vmax.xlane.f32.xlu2 %v1651_v1 }
 0x8c1   : > { %v1649_v3 = vpop.f32.mrf.mxu0 }
 0x8c2   : > { %v1805_v4 = vpop.permute.xlu0 %1804 }
 0x8c3   : > { %2385 = vmatmul.msk.bf16.vlgmr.msra.gmra.mxu2 %vm1219_vm6, %v1805_v4  ;;  %v2436_v4 = vld [vmem:[%s3195_s16 + $0x8] sm:$0xff] }
 0x8c4   : > { %1894 = vmatpush.bf16.msrb.mxu0 %v2436_v4 }
 0x8d5   : > { %1721 = vrot.lane.b32.xlu2 %v3041_v46, %s3273_s5 }
 0x8dd   : > { %1780 = vrot.lane.b32.xlu2 %v3041_v46, %s3274_s8 }
 0x930   : > { %v1764_v34 = vpop.f32.mrf.mxu0  ;;  %v1653_v5 = vpop.xlane.xlu2 %1652 }
 0x931   : > { %v1654_v8 = vsub.f32 %v1648_v25, %v1653_v5  ;;  %v1765_v16 = vadd.f32 %v1764_v34, %v1625_v62  ;;  %v2435_v34 = vld [vmem:[%s3195_s16] sm:$0xff] }
 0x932   : > { %1895 = vmatpush.bf16.msrb.mxu0 %v2435_v34 }
 0x933   : > { %v1655_v15 = vmul.f32 1.442695, %v1654_v8  ;;  %v1768_v19 = vsel %vm1239_vm11, %v1765_v16, -inf }
 0x935   : > { %2561 = vpow2.f32 %v1655_v15 }
 0x936   : > { %v1705_v6 = vpop.f32.mrf.mxu2 }
 0x937   : > { %v1706_v7 = vadd.f32 %v1705_v6, %v1625_v62 }
 0x938   : > { %v1766_v9 = vpop.f32.mrf.mxu0  ;;  %v1722_v12 = vpop.permute.xlu2 %1721 }
 0x939   : > { %1734 = vmatpush.bf16.msra.mxu3 %v1722_v12  ;;  %v1709_v13 = vsel %vm1239_vm11, %v1706_v7, -inf  ;;  %v2518_v12 = vld [vmem:[%s3196_s17] ss:$0 sm:$0xff] }
 0x93a   : > { %1710 = vmax.xlane.f32.xlu0 %v1709_v13 }
 0x93b   : > { %v2562_v11 = vpop.eup %2561 }
 0x93c   : > { %v1657_v23 = vsel %vm1239_vm11, %v2562_v11, 0.0 }
 0x93e   : > { %v1707_v18 = vpop.f32.mrf.mxu2 }
 0x940   : > { %v1781_v48 = vpop.permute.xlu2 %1780 }
 0x942   : > { %1769 = vmax.xlane.f32.xlu0 %v1768_v19 }
 0x946   : > { %v1823_v20 = vpop.f32.mrf.mxu2 }
 0x947   : > { %v1824_v21 = vadd.f32 %v1823_v20, %v1625_v62 }
 0x949   : > { %v1827_v22 = vsel %vm1239_vm11, %v1824_v21, -inf }
 0x94a   : > { %1828 = vmax.xlane.f32.xlu1 %v1827_v22  ;;  %1658 = vadd.xlane.f32.xlu0 %v1657_v23 }
 0x94e   : > { %v1825_v26 = vpop.f32.mrf.mxu2 }
 0x94f   : > { %v2438_v26 = vld [vmem:[%s3199_s20 + $0x8] sm:$0xff] }
 0x963   : > { %1663 = vrot.lane.b32.xlu1 %v3041_v46, %s3259_s12 }
 0x9ad   : > { %v1711_v27 = vpop.xlane.xlu0 %1710 }
 0x9ae   : > { %v1712_v30 = vsub.f32 %v1706_v7, %v1711_v27 }
 0x9b0   : > { %v1713_v32 = vmul.f32 1.442695, %v1712_v30 }
 0x9b5   : > { %v1770_v28 = vpop.xlane.xlu0 %1769 }
 0x9b6   : > { %v1771_v29 = vsub.f32 %v1765_v16, %v1770_v28 }
 0x9b8   : > { %v1772_v31 = vmul.f32 1.442695, %v1771_v29 }
 0x9ba   : > { %2563 = vpow2.f32 %v1772_v31 }
 0x9bd   : > { %v1829_v33 = vpop.xlane.xlu1 %1828  ;;  %v1659_v35 = vpop.xlane.xlu0 %1658 }
 0x9be   : > { %2565 = vrcp.f32 %v1659_v35  ;;  %v1830_v38 = vsub.f32 %v1824_v21, %v1829_v33  ;;  %v2442_v35 = vld [vmem:[%s3201_s22 + $0x18] sm:$0xff] }
 0x9bf   : > { %2567 = vpow2.f32 %v1713_v32  ;;  %2034 = vmatpush.bf16.msrb.mxu2 %v2442_v35 }
 0x9c0   : > { %v2564_v37 = vpop.eup %2563  ;;  %v1831_v40 = vmul.f32 1.442695, %v1830_v38  ;;  %v2441_v38 = vld [vmem:[%s3201_s22 + $0x10] sm:$0xff] }
 0x9c1   : > { %v1774_v10 = vsel %vm1239_vm11, %v2564_v37, 0.0 }
 0x9c2   : > { %1775 = vadd.xlane.f32.xlu0 %v1774_v10  ;;  %2569 = vpow2.f32 %v1831_v40 }
 0x9c3   : > { %2035 = vmatpush.bf16.msrb.mxu2 %v2441_v38  ;;  %v2524_v38 = vld [vmem:[%s3204_s25] ss:$0 sm:$0xff] }
 0x9c4   : > { %v2566_v39 = vpop.eup %2565 }
 0x9c5   : > { %v1661_v41 = vmul.f32 %v2566_v39, %v2562_v11  ;;  %v2568_v42 = vpop.eup %2567 }
 0x9c6   : > { %v1715_v43 = vsel %vm1239_vm11, %v2568_v42, 0.0 }
 0x9c7   : > { %1902 = vst.msk [vmem:[%s961_s1] sm:$0xff] %vm1239_vm11, %v1661_v41  ;;  %v1662_v17 = vpack.c.bf16 %v1661_v41, %v1661_v41 }
 0x9c8   : > { %v2570_v44 = vpop.eup %2569 }
 0x9c9   : > { %v1833_v45 = vsel %vm1239_vm11, %v2570_v44, 0.0 }
 0x9ca   : > { %1716 = vadd.xlane.f32.xlu0 %v1715_v43 }
 0x9d2   : > { %1834 = vadd.xlane.f32.xlu0 %v1833_v45 }
 0x9d5   : > { %v1664_v47 = vpop.permute.xlu1 %1663 }
 0x9d6   : > { %1676 = vmatpush.bf16.msrb.mxu1 %v1664_v47 }
 0x9d9   : > { %2380 = vmatmul.msk.bf16.vlgmr.msrb.gmra.mxu1 %vm1239_vm11, %v1662_v17 }
 0x9da   : > { %1793 = vmatpush.bf16.msra.mxu1 %v1781_v48  ;;  %v2519_v48 = vld [vmem:[%s3197_s18] ss:$0 sm:$0xff] }
 0x9de   : > { %1981 = vmatpush.bf16.msrb.mxu1 %v2438_v26 }
 0x9e6   : > { %1839 = vrot.lane.b32.xlu0 %v3041_v46, %s3275_s23 }
 0xa35   : > { %v1776_v49 = vpop.xlane.xlu0 %1775 }
 0xa36   : > { %2571 = vrcp.f32 %v1776_v49 }
 0xa3c   : > { %v2572_v50 = vpop.eup %2571 }
 0xa3d   : > { %v1778_v24 = vmul.f32 %v2572_v50, %v2564_v37  ;;  %v1717_v51 = vpop.xlane.xlu0 %1716 }
 0xa3e   : > { %2573 = vrcp.f32 %v1717_v51 }
 0xa3f   : > { %v1779_v52 = vpack.c.bf16 %v1778_v24, %v1778_v24 }
 0xa41   : > { %2384 = vmatmul.msk.bf16.vlgmr.msra.gmra.mxu1 %vm1239_vm11, %v1779_v52 }
 0xa44   : > { %v2574_v53 = vpop.eup %2573 }
 0xa45   : > { %v1719_v55 = vmul.f32 %v2574_v53, %v2568_v42  ;;  %v1835_v57 = vpop.xlane.xlu0 %1834  ;;  %v2520_v53 = vld [vmem:[%s3198_s19] ss:$0 sm:$0xff] }
 0xa46   : > { %2575 = vrcp.f32 %v1835_v57 }
 0xa47   : > { %v1720_v56 = vpack.c.bf16 %v1719_v55, %v1719_v55 }
 0xa49   : > { %2382 = vmatmul.msk.bf16.vlgmr.msra.gmra.mxu3 %vm1239_vm11, %v1720_v56 }
 0xa4c   : > { %v2576_v58 = vpop.eup %2575 }
 0xa4d   : > { %v1837_v59 = vmul.f32 %v2576_v58, %v2570_v44 }
 0xa4f   : > { %v1838_v61 = vpack.c.bf16 %v1837_v59, %v1837_v59  ;;  %v2440_v59 = vld [vmem:[%s3201_s22 + $0x8] sm:$0xff] }
 0xa50   : > { %2036 = vmatpush.bf16.msrb.mxu2 %v2440_v59 }
 0xa56   : > { %v1678_v60 = vpop.f32.mrf.mxu1 }
 0xa57   : > { %1682 = vst.msk [vmem:[#allocation2] sm:$0xff] %vm1219_vm6, %v1678_v60  ;;  %v2439_v60 = vld [vmem:[%s3201_s22] sm:$0xff] }
 0xa58   : > { %v1840_v46 = vpop.permute.xlu0 %1839  ;;  %2037 = vmatpush.bf16.msrb.mxu2 %v2439_v60 }
 0xa59   : > { %1852 = vmatpush.bf16.msrb.mxu3 %v1840_v46  ;;  %v2521_v46 = vld [vmem:[%s3200_s21] ss:$0 sm:$0xff] }
 0xa5c   : > { %2386 = vmatmul.msk.bf16.vlgmr.msrb.gmra.mxu3 %vm1239_vm11, %v1838_v61 }
 0xa5e   : > { %v1680_v62 = vpop.f32.mrf.mxu1 }
 0xabe   : > { %v1795_v2 = vpop.f32.mrf.mxu1 }
 0xabf   : > { %1800 = vrot.lane.b32.xlu2 %v1795_v2, %s3276_s6 }
 0xac6   : > { %v1797_v25 = vpop.f32.mrf.mxu1 }
 0xacc   : > { %v1736_v63 = vpop.f32.mrf.mxu3 }
 0xacd   : > { %1741 = vrot.lane.b32.xlu1 %v1736_v63, %s3277_s4 }
 0xad4   : > { %v1738_v0 = vpop.f32.mrf.mxu3 }
 0xad5   : > { %v2522_v0 = vld [vmem:[#allocation3] ss:$0 sm:$0xff] }
 0xadf   : > { %v1854_v1 = vpop.f32.mrf.mxu3 }
 0xae0   : > { %1859 = vrot.lane.b32.xlu1 %v1854_v1, %s3278_s7 }
 0xae7   : > { %v1856_v3 = vpop.f32.mrf.mxu3 }
 0xb19   : > { %v1801_v6 = vpop.permute.xlu2 %1800 }
 0xb3f   : > { %v1742_v5 = vpop.permute.xlu1 %1741 }
 0xb40   : > { %1744 = vst.msk [vmem:[#allocation2] sm:$0xff] %vm1333_vm12, %v1742_v5 }
 0xb41   : > { %1803 = vst.msk [vmem:[#allocation2] sm:$0xff] %vm1393_vm13, %v1801_v6  ;;  %vm2026_vm13 = vcmask 523264  }
 0xb52   : > { %v1860_v7 = vpop.permute.xlu1 %1859 }
 0xb53   : > { %1862 = vst.msk [vmem:[#allocation2] sm:$0xff] %vm1453_vm14, %v1860_v7 }
 0xb5a   : > { %v1863_v8 = vld [vmem:[#allocation2] sm:$0xff] }
 0xb5b   : > { %v1869_v9 = vpack.c.bf16 %v1863_v8, %v1863_v8 }
 0xb5d   : > { %2395 = vmatmul.msk.bf16.vlgmr.msrb.gmra.mxu0 %vm997_vm0, %v1869_v9 }
 0xbda   : > { %v1897_v13 = vpop.f32.mrf.mxu0 }
 0xbdb   : > { %v1898_v15 = vadd.f32 %v2518_v12, %v1897_v13 }
 0xbdd   : > { %v3112_v16 = vadd.f32 %v1898_v15, %v3006_v54  ;;  %v2437_v54 = vld [vmem:[%s3199_s20] sm:$0xff] }
 0xbde   : > { %1982 = vmatpush.bf16.msrb.mxu1 %v2437_v54 }
 0xbdf   : > { %v1905_v18 = vsel %vm997_vm0, %v3112_v16, 0.0 }
 0xbe0   : > { %1906 = vadd.xlane.f32.xlu2 %v1905_v18 }
 0xbe2   : > { %v1899_v19 = vpop.f32.mrf.mxu0 }
 0xc53   : > { %v1907_v11 = vpop.xlane.xlu2 %1906 }
 0xc54   : > { %v1908_v20 = vmul.f32 %v1907_v11, %v2877_v14 }
 0xc56   : > { %v1909_v21 = vsub.f32 %v3112_v16, %v1908_v20 }
 0xc58   : > { %v1910_v22 = vmul.f32 %v1909_v21, %v1909_v21  ;;  %v1918_v51 = vmul.f32 %v2519_v48, %v1909_v21 }
 0xc5a   : > { %v1911_v23 = vsel %vm997_vm0, %v1910_v22, 0.0 }
 0xc5b   : > { %1912 = vadd.xlane.f32.xlu0 %v1911_v23 }
 0xcce   : > { %v1913_v27 = vpop.xlane.xlu0 %1912 }
 0xccf   : > { %v1914_v28 = vmul.f32 %v1913_v27, %v2899_v36 }
 0xcd1   : > { %2577 = vrsqrt.f32 %v1914_v28  ;;  %vm1926_vm6 = vcmp.eq.f32.partialorder %v1914_v28, inf  ;;  %v1929_v39 = vand.u32 2147483648, %v1914_v28  ;;  %vm1928_vm8 = vcmp.eq.f32.partialorder %v1914_v28, 0.0 }
 0xcd7   : > { %v2578_v29 = vpop.eup %2577 }
 0xcd8   : > { %v1920_v30 = vmul.f32 %v2578_v29, %v1914_v28 }
 0xcda   : > { %v1921_v31 = vmul.f32 %v2578_v29, %v1920_v30  ;;  %v2523_v30 = vld [vmem:[%s3203_s24] ss:$0 sm:$0xff] }
 0xcdc   : > { %v1922_v32 = vmul.f32 0.5, %v1921_v31 }
 0xcde   : > { %v1923_v33 = vsub.f32 1.5, %v1922_v32 }
 0xce0   : > { %v1924_v37 = vmul.f32 %v2578_v29, %v1923_v33 }
 0xce2   : > { %v1925_v10 = vmul.f32 %v1924_v37, %v1914_v28 }
 0xce4   : > { %v1927_v40 = vsel %vm1926_vm6, %v1914_v28, %v1925_v10 }
 0xce5   : > { %v1930_v41 = vsel %vm1928_vm8, %v1929_v39, %v1927_v40 }
 0xce6   : > { %v1931_v42 = vadd.f32 1e-06, %v1930_v41 }
 0xce8   : > { %2579 = vrcp.f32 %v1931_v42  ;;  %v1943_v47 = vand.u32 2147483648, %v1931_v42  ;;  %v1941_v49 = vand.u32 2147483647, %v1931_v42  ;;  %vm1937_vm10 = vweird.f32 %v1931_v42 }
 0xcea   : > { %v1944_v24 = vor.u32 1.1754944e-38, %v1943_v47  ;;  %vm1942_vm12 = vcmp.eq.f32.partialorder %v1941_v49, 8.507059e+37 }
 0xcee   : > { %v2580_v43 = vpop.eup %2579 }
 0xcef   : > { %v1933_v44 = vmul.f32 %v2580_v43, %v1931_v42  ;;  %vm1938_vm9 = vweird.f32 %v2580_v43 }
 0xcf0   : > { %vm1939_vm11 = vmor %vm1937_vm10, %vm1938_vm9 }
 0xcf1   : > { %v1934_v45 = vsub.f32 1.0, %v1933_v44 }
 0xcf3   : > { %v1935_v17 = vmul.f32 %v2580_v43, %v1934_v45 }
 0xcf5   : > { %v1936_v50 = vadd.f32 %v2580_v43, %v1935_v17 }
 0xcf7   : > { %v1940_v52 = vsel %vm1939_vm11, %v2580_v43, %v1936_v50 }
 0xcf8   : > { %v1945_v55 = vsel %vm1942_vm12, %v1944_v24, %v1940_v52 }
 0xcf9   : > { %v1946_v56 = vmul.f32 %v1945_v55, %v1918_v51 }
 0xcfb   : > { %v1950_v57 = vadd.f32 %v2520_v53, %v1946_v56 }
 0xcfd   : > { %v1956_v58 = vpack.c.bf16 %v1950_v57, %v1950_v57 }
 0xcff   : > { %2404 = vmatmul.msk.bf16.vlgmr.msrb.gmra.mxu1 %vm997_vm0, %v1956_v58 }
 0xd7c   : > { %v1984_v61 = vpop.f32.mrf.mxu1 }
 0xd7d   : > { %v1985_v62 = vadd.f32 %v2521_v46, %v1984_v61 }
 0xd7f   : > { %v1988_v2 = vmax.f32 %v1985_v62, 0.0 }
 0xd81   : > { %v1998_v25 = vpack.c.bf16 %v1988_v2, %v1988_v2 }
 0xd83   : > { %2421 = vmatmul.msk.bf16.vlgmr.msrb.gmra.mxu2 %vm2026_vm13, %v1998_v25 }
 0xd84   : > { %v1986_v63 = vpop.f32.mrf.mxu1 }
 0xe06   : > { %v2039_v1 = vpop.f32.mrf.mxu2 }
 0xe07   : > { %v2040_v3 = vadd.f32 %v2522_v0, %v2039_v1 }
 0xe09   : > { %v2043_v4 = vadd.f32 %v2040_v3, %v3112_v16 }
 0xe0b   : > { %v2046_v34 = vsel %vm997_vm0, %v2043_v4, 0.0 }
 0xe0c   : > { %2047 = vadd.xlane.f32.xlu1 %v2046_v34 }
 0xe0e   : > { %v2041_v5 = vpop.f32.mrf.mxu2 }
 0xe7f   : > { %v2048_v6 = vpop.xlane.xlu1 %2047 }
 0xe80   : > { %v2049_v7 = vmul.f32 %v2048_v6, %v2877_v14 }
 0xe82   : > { %v2050_v8 = vsub.f32 %v2043_v4, %v2049_v7 }
 0xe84   : > { %v2051_v9 = vmul.f32 %v2050_v8, %v2050_v8  ;;  %v2059_v37 = vmul.f32 %v2523_v30, %v2050_v8 }
 0xe86   : > { %v2052_v12 = vsel %vm997_vm0, %v2051_v9, 0.0 }
 0xe87   : > { %2053 = vadd.xlane.f32.xlu2 %v2052_v12 }
 0xefa   : > { %v2054_v13 = vpop.xlane.xlu2 %2053 }
 0xefb   : > { %v2055_v15 = vmul.f32 %v2054_v13, %v2899_v36 }
 0xefd   : > { %2581 = vrsqrt.f32 %v2055_v15  ;;  %vm2067_vm14 = vcmp.eq.f32.partialorder %v2055_v15, inf  ;;  %v2070_v23 = vand.u32 2147483648, %v2055_v15  ;;  %vm2069_vm15 = vcmp.eq.f32.partialorder %v2055_v15, 0.0 }
 0xf03   : > { %v2582_v18 = vpop.eup %2581 }
 0xf04   : > { %v2061_v19 = vmul.f32 %v2582_v18, %v2055_v15 }
 0xf06   : > { %v2062_v11 = vmul.f32 %v2582_v18, %v2061_v19 }
 0xf08   : > { %v2063_v16 = vmul.f32 0.5, %v2062_v11 }
 0xf0a   : > { %v2064_v20 = vsub.f32 1.5, %v2063_v16 }
 0xf0c   : > { %v2065_v21 = vmul.f32 %v2582_v18, %v2064_v20 }
 0xf0e   : > { %v2066_v22 = vmul.f32 %v2065_v21, %v2055_v15 }
 0xf10   : > { %v2068_v26 = vsel %vm2067_vm14, %v2055_v15, %v2066_v22 }
 0xf11   : > { %v2071_v14 = vsel %vm2069_vm15, %v2070_v23, %v2068_v26 }
 0xf12   : > { %v2072_v54 = vadd.f32 1e-06, %v2071_v14 }
 0xf14   : > { %2583 = vrcp.f32 %v2072_v54  ;;  %v2084_v36 = vand.u32 2147483648, %v2072_v54  ;;  %v2082_v32 = vand.u32 2147483647, %v2072_v54  ;;  %vm2078_vm2 = vweird.f32 %v2072_v54 }
 0xf16   : > { %v2085_v35 = vor.u32 1.1754944e-38, %v2084_v36  ;;  %vm2083_vm4 = vcmp.eq.f32.partialorder %v2082_v32, 8.507059e+37 }
 0xf1a   : > { %v2584_v27 = vpop.eup %2583 }
 0xf1b   : > { %v2074_v28 = vmul.f32 %v2584_v27, %v2072_v54  ;;  %vm2079_vm1 = vweird.f32 %v2584_v27 }
 0xf1c   : > { %vm2080_vm3 = vmor %vm2078_vm2, %vm2079_vm1 }
 0xf1d   : > { %v2075_v29 = vsub.f32 1.0, %v2074_v28 }
 0xf1f   : > { %v2076_v31 = vmul.f32 %v2584_v27, %v2075_v29 }
 0xf21   : > { %v2077_v33 = vadd.f32 %v2584_v27, %v2076_v31 }
 0xf23   : > { %v2081_v10 = vsel %vm2080_vm3, %v2584_v27, %v2077_v33 }
 0xf24   : > { %v2086_v39 = vsel %vm2083_vm4, %v2085_v35, %v2081_v10 }
 0xf25   : > { %v2087_v40 = vmul.f32 %v2086_v39, %v2059_v37 }
 0xf27   : > { %v2091_v41 = vadd.f32 %v2524_v38, %v2087_v40 }
 0xf29   : > { %2092 = vst.msk [vmem:[%s953_s0] sm:$0xff] %vm997_vm0, %v2091_v41 }
 0xf2a PF: > { %s40_s3 = sadd.s32 1, %s2657_s3   ;;  %s3280_s5 = sld [smem:[#allocation6_spill]] }
 0xf2b   : > { %p37_p10 = scmp.ge.s32.totalorder %s40_s3, 6   ;;  %s3281_s2 = sld [smem:[#allocation7_spill]] }
 0xf2c   : > { %s3282_s30 = sld [smem:[#allocation8_spill]]  ;;  %s3283_s8 = smov %s2649_s9 }
 0xf2d   :  { %39 = sbr.rel (!%p37_p10) target bundleno = 20 (0x14), region = 193 }
 0xf31   : > { %s3284_s9 = smov %s3281_s2 }
 0xf32   :  { %2164 = vsyncpa [#allocation4], 1 }
 0xf33   :  { %2166 = vsyncpa [#allocation4 + $0x1], 1 }

</bundles_post_ra>
